<compile_context>
chip_gen: v7x
topology: tpu7x:2x2x1
jax: 0.10.0
libtpu: 0.0.40
codegen_flags: <defaults>
</compile_context>

<pallas_src>
import jax
import jax.numpy as jnp
from jax import lax
from jax.experimental import pallas as pl
from jax.experimental.pallas import tpu as pltpu


# ----------------------------------------------------------------------------
# Kernel 1: fused conv stage (one image per grid point).
#   conv1 (1->10, k=5)  -> maxpool2 + relu : 28x28 -> 24x24 -> 12x12
#   conv2 (10->20, k=5) -> maxpool2 + relu : 12x12 ->  8x8  ->  4x4
# Channel axes padded to 128 lanes; padded channels carry exact zeros.
# ----------------------------------------------------------------------------
def conv_stage_kernel(p_ref, w1_ref, b1_ref, w2_ref, b2_ref, o_ref, h1_ref):
    # ---- conv1 + pool1 + relu --------------------------------------------
    # Patch rows are pre-ordered (dy, dx, yo, xo): the 4 leading 144-row chunks
    # are the 4 members of each 2x2 pooling window, so pooling is a max over
    # the 4 partial matmul results (per-channel bias added after the max).
    pooled = None
    for q in range(4):
        part = jnp.dot(
            p_ref[0, q * 144:(q + 1) * 144, :], w1_ref[...],
            preferred_element_type=jnp.float32,
        )  # (144, 128)
        pooled = part if pooled is None else jnp.maximum(pooled, part)
    h1 = jnp.maximum(pooled + b1_ref[...], 0.0)       # (144, 128), row = yo*12+xo
    h1_ref[...] = h1                                   # keep feature map in VMEM

    # ---- conv2: 25 shifted (8x8)-window matmuls over the h1 map ------------
    acc = jnp.zeros((64, 128), jnp.float32)
    for kh in range(5):
        for kw in range(5):
            rows = [
                h1_ref[(y + kh) * 12 + kw:(y + kh) * 12 + kw + 8, :]
                for y in range(8)
            ]
            lhs = jnp.concatenate(rows, axis=0)        # (64, 128), row = y*8+x
            acc = acc + jnp.dot(
                lhs, w2_ref[kh * 5 + kw], preferred_element_type=jnp.float32
            )
    c2 = acc + b2_ref[...]                             # (64, 128)

    # ---- pool2 + relu (lane-dense, no narrow stores) ------------------------
    c2 = c2.reshape(8, 8, 128)                         # [y, x, c]
    v = jnp.max(c2.reshape(4, 2, 8, 128), axis=1)      # max over y pairs: (4,8,128)
    vshift = jnp.concatenate([v[:, 1:, :], v[:, 7:8, :]], axis=1)
    h2 = jnp.maximum(jnp.maximum(v, vshift), 0.0)      # valid pooled values at even x
    o_ref[0] = h2                                      # (4, 8, 128)


def conv_stage(patches, w1, b1, w2, b2):
    B = patches.shape[0]
    return pl.pallas_call(
        conv_stage_kernel,
        out_shape=jax.ShapeDtypeStruct((B, 4, 8, 128), jnp.float32),
        grid=(B,),
        in_specs=[
            pl.BlockSpec((1, 576, 32), lambda b: (b, 0, 0)),
            pl.BlockSpec((32, 128), lambda b: (0, 0)),
            pl.BlockSpec((1, 128), lambda b: (0, 0)),
            pl.BlockSpec((25, 128, 128), lambda b: (0, 0, 0)),
            pl.BlockSpec((1, 128), lambda b: (0, 0)),
        ],
        out_specs=pl.BlockSpec((1, 4, 8, 128), lambda b: (b, 0, 0, 0)),
        scratch_shapes=[pltpu.VMEM((144, 128), jnp.float32)],
        compiler_params=pltpu.CompilerParams(dimension_semantics=("parallel",)),
    )(patches, w1, b1, w2, b2)


# ----------------------------------------------------------------------------
# Kernel 2: fused fc stage over the whole batch.
#   fc1 (320->100) + relu -> fc2 (100->50) + relu -> fc3 (50->10) -> log_softmax
# All N dims padded to 128; log_softmax is masked to the 10 real classes.
# ----------------------------------------------------------------------------
def fc_stage_kernel(x_ref, w1_ref, b1_ref, w2_ref, b2_ref, w3_ref, b3_ref, o_ref):
    z = jnp.dot(x_ref[...], w1_ref[...], preferred_element_type=jnp.float32)
    z = jnp.maximum(z + b1_ref[...], 0.0)
    # TODO(synk): F.dropout is identity here (inference / eval mode).
    z = jnp.dot(z, w2_ref[...], preferred_element_type=jnp.float32)
    z = jnp.maximum(z + b2_ref[...], 0.0)
    z = jnp.dot(z, w3_ref[...], preferred_element_type=jnp.float32) + b3_ref[...]
    col = lax.broadcasted_iota(jnp.int32, z.shape, 1)
    z = jnp.where(col < 10, z, -1e30)                  # mask padded class lanes
    m = jnp.max(z, axis=-1, keepdims=True)
    e = jnp.exp(z - m)
    lse = jnp.log(jnp.sum(e, axis=-1, keepdims=True))
    o_ref[...] = z - m - lse


def fc_stage(x, w1, b1, w2, b2, w3, b3):
    B = x.shape[0]
    return pl.pallas_call(
        fc_stage_kernel,
        out_shape=jax.ShapeDtypeStruct((B, 128), jnp.float32),
        grid=(1,),
        in_specs=[
            pl.BlockSpec((B, 320), lambda i: (0, 0)),
            pl.BlockSpec((320, 128), lambda i: (0, 0)),
            pl.BlockSpec((1, 128), lambda i: (0, 0)),
            pl.BlockSpec((128, 128), lambda i: (0, 0)),
            pl.BlockSpec((1, 128), lambda i: (0, 0)),
            pl.BlockSpec((128, 128), lambda i: (0, 0)),
            pl.BlockSpec((1, 128), lambda i: (0, 0)),
        ],
        out_specs=pl.BlockSpec((B, 128), lambda i: (0, 0)),
        compiler_params=pltpu.CompilerParams(dimension_semantics=("arbitrary",)),
    )(x, w1, b1, w2, b2, w3, b3)


# ----------------------------------------------------------------------------
# One-time parameter packing (pre-transposed, zero-padded to lane-dense 128).
# ----------------------------------------------------------------------------
def prepare_params(params):
    f32 = jnp.float32
    # conv1: (10,1,5,5) -> (25,10) -> (32,128); rows ordered t = kh*5+kw
    w1 = params["conv1_w"].astype(f32).reshape(10, 25).T
    w1 = jnp.pad(w1, ((0, 7), (0, 118)))
    b1 = jnp.pad(params["conv1_b"].astype(f32), (0, 118)).reshape(1, 128)
    # conv2: (20,10,5,5) -> (25,10,20) -> (25,128,128); [t, ci, o]
    w2 = jnp.transpose(params["conv2_w"].astype(f32), (2, 3, 1, 0)).reshape(25, 10, 20)
    w2 = jnp.pad(w2, ((0, 0), (0, 118), (0, 108)))
    b2 = jnp.pad(params["conv2_b"].astype(f32), (0, 108)).reshape(1, 128)
    # fc weights: pre-transposed once, padded to (K, 128)
    f1 = jnp.pad(params["fc1_w"].astype(f32).T, ((0, 0), (0, 28)))     # (320,128)
    g1 = jnp.pad(params["fc1_b"].astype(f32), (0, 28)).reshape(1, 128)
    f2 = jnp.pad(params["fc2_w"].astype(f32).T, ((0, 28), (0, 78)))    # (128,128)
    g2 = jnp.pad(params["fc2_b"].astype(f32), (0, 78)).reshape(1, 128)
    f3 = jnp.pad(params["fc3_w"].astype(f32).T, ((0, 78), (0, 118)))   # (128,128)
    g3 = jnp.pad(params["fc3_b"].astype(f32), (0, 118)).reshape(1, 128)
    return dict(w1=w1, b1=b1, w2=w2, b2=b2,
                f1=f1, g1=g1, f2=f2, g2=g2, f3=f3, g3=g3)


# ----------------------------------------------------------------------------
# Wrapper glue: conv1 patch extraction from the raw input, ordered so pool1 is
# a leading-axis max inside the kernel (rows ordered (dy, dx, yo, xo)).
# ----------------------------------------------------------------------------
def build_conv1_patches(img):  # img: (B, 28, 28) -> (B, 576, 32)
    B = img.shape[0]
    taps = [img[:, kh:kh + 24, kw:kw + 24] for kh in range(5) for kw in range(5)]
    pat = jnp.stack(taps, axis=-1)                 # (B, 24, 24, 25)  [y, x, t]
    pat = pat.reshape(B, 12, 2, 12, 2, 25)         # [yo, dy, xo, dx, t]
    pat = pat.transpose(0, 2, 4, 1, 3, 5)          # [dy, dx, yo, xo, t]
    pat = pat.reshape(B, 576, 25)
    return jnp.pad(pat, ((0, 0), (0, 0), (0, 7))).astype(jnp.float32)


def net2_forward(packed, x_nchw):
    B = x_nchw.shape[0]
    img = x_nchw[:, 0].astype(jnp.float32)                       # (B, 28, 28)
    patches = build_conv1_patches(img)                           # (B, 576, 32)

    conv_out = conv_stage(patches, packed["w1"], packed["b1"],
                          packed["w2"], packed["b2"])            # (B, 4, 8, 128)

    # Valid pooled values sit at even x; real channels are the first 20.
    h2 = conv_out[:, :, 0:8:2, :20]                              # (B, 4, 4, 20)
    # Flatten in PyTorch NCHW order: (B, 20, 4, 4) -> (B, 320)
    flat = jnp.transpose(h2, (0, 3, 1, 2)).reshape(B, 320)

    logits = fc_stage(flat, packed["f1"], packed["g1"],
                      packed["f2"], packed["g2"],
                      packed["f3"], packed["g3"])                # (B, 128)
    return logits[:, :10]                                        # log-probs


# ----------------------------------------------------------------------------
# Deterministic PyTorch-shaped parameter init (same as before).
# ----------------------------------------------------------------------------
def init_params(key):
    ks = jax.random.split(key, 10)

    def rnd(k, shape, fan_in):
        return jax.random.normal(k, shape, dtype=jnp.float32) / jnp.sqrt(
            jnp.float32(fan_in)
        )

    return {
        "conv1_w": rnd(ks[0], (10, 1, 5, 5), 1 * 5 * 5),
        "conv1_b": rnd(ks[1], (10,), 1 * 5 * 5),
        "conv2_w": rnd(ks[2], (20, 10, 5, 5), 10 * 5 * 5),
        "conv2_b": rnd(ks[3], (20,), 10 * 5 * 5),
        "fc1_w": rnd(ks[4], (100, 320), 320),
        "fc1_b": rnd(ks[5], (100,), 320),
        "fc2_w": rnd(ks[6], (50, 100), 100),
        "fc2_b": rnd(ks[7], (50,), 100),
        "fc3_w": rnd(ks[8], (10, 50), 50),
        "fc3_b": rnd(ks[9], (10,), 50),
    }


if __name__ == "__main__":
    key = jax.random.PRNGKey(0)
    k_x, k_p = jax.random.split(key)
    B = 2
    x = jax.random.normal(k_x, (B, 1, 28, 28), dtype=jnp.float32)  # NCHW input
    params = init_params(k_p)
    packed = prepare_params(params)

    fwd = jax.jit(net2_forward)
    out = jax.block_until_ready(fwd(packed, x))

    assert out.shape == (B, 10) and out.dtype == jnp.float32
    assert bool(jnp.all(jnp.isfinite(out)))
    # log_softmax rows should (approximately) sum to 1 after exp
    assert jnp.allclose(jnp.sum(jnp.exp(out), axis=-1), 1.0, atol=1e-4)
    print("KERNEL_OK")
</pallas_src>

<mosaic_0001>
module attributes {stable_mosaic.version = 11 : i64} {
  func.func @conv_stage_kernel(%arg0: i32, %arg1: memref<1x576x32xf32, #tpu.memory_space<vmem>>, %arg2: memref<32x128xf32, #tpu.memory_space<vmem>>, %arg3: memref<1x128xf32, #tpu.memory_space<vmem>>, %arg4: memref<25x128x128xf32, #tpu.memory_space<vmem>>, %arg5: memref<1x128xf32, #tpu.memory_space<vmem>>, %arg6: memref<1x4x8x128xf32, #tpu.memory_space<vmem>>, %arg7: memref<144x128xf32, #tpu.memory_space<vmem>>) attributes {dimension_semantics = [#tpu.dimension_semantics<parallel>], iteration_bounds = array<i64: 2>, scalar_prefetch = 0 : i64, scratch_operands = 1 : i64, tpu.core_type = #tpu.core_type<tc>, window_params = [{transform_indices = @transform_0, window_bounds = array<i64: 1, 576, 32>}, {pipeline_mode = #tpu.pipeline_mode<synchronous>, transform_indices = @transform_1, window_bounds = array<i64: 32, 128>}, {pipeline_mode = #tpu.pipeline_mode<synchronous>, transform_indices = @transform_2, window_bounds = array<i64: 1, 128>}, {pipeline_mode = #tpu.pipeline_mode<synchronous>, transform_indices = @transform_3, window_bounds = array<i64: 25, 128, 128>}, {pipeline_mode = #tpu.pipeline_mode<synchronous>, transform_indices = @transform_4, window_bounds = array<i64: 1, 128>}, {transform_indices = @transform_5, window_bounds = array<i64: 1, 4, 8, 128>}]} {
    %c0 = arith.constant 0 : index
    %c0_0 = arith.constant 0 : index
    %c0_1 = arith.constant 0 : index
    %0 = vector.load %arg1[%c0, %c0_0, %c0_1] : memref<1x576x32xf32, #tpu.memory_space<vmem>>, vector<1x144x32xf32>
    %1 = vector.shape_cast %0 : vector<1x144x32xf32> to vector<144x32xf32>
    %c0_2 = arith.constant 0 : index
    %c0_3 = arith.constant 0 : index
    %2 = vector.load %arg2[%c0_2, %c0_3] : memref<32x128xf32, #tpu.memory_space<vmem>>, vector<32x128xf32>
    %cst = arith.constant dense<0.000000e+00> : vector<144x128xf32>
    %3 = tpu.matmul %1, %2, %cst {dimension_numbers = #tpu.dot_dimension_numbers<[1], [0], [0], [1], [0, 0, 1, 1], [], []>} : vector<144x32xf32>, vector<32x128xf32>, vector<144x128xf32> -> vector<144x128xf32>
    %c0_4 = arith.constant 0 : index
    %c144 = arith.constant 144 : index
    %c0_5 = arith.constant 0 : index
    %4 = vector.load %arg1[%c0_4, %c144, %c0_5] : memref<1x576x32xf32, #tpu.memory_space<vmem>>, vector<1x144x32xf32>
    %5 = vector.shape_cast %4 : vector<1x144x32xf32> to vector<144x32xf32>
    %c0_6 = arith.constant 0 : index
    %c0_7 = arith.constant 0 : index
    %6 = vector.load %arg2[%c0_6, %c0_7] : memref<32x128xf32, #tpu.memory_space<vmem>>, vector<32x128xf32>
    %cst_8 = arith.constant dense<0.000000e+00> : vector<144x128xf32>
    %7 = tpu.matmul %5, %6, %cst_8 {dimension_numbers = #tpu.dot_dimension_numbers<[1], [0], [0], [1], [0, 0, 1, 1], [], []>} : vector<144x32xf32>, vector<32x128xf32>, vector<144x128xf32> -> vector<144x128xf32>
    %8 = arith.maximumf %3, %7 : vector<144x128xf32>
    %c0_9 = arith.constant 0 : index
    %c288 = arith.constant 288 : index
    %c0_10 = arith.constant 0 : index
    %9 = vector.load %arg1[%c0_9, %c288, %c0_10] : memref<1x576x32xf32, #tpu.memory_space<vmem>>, vector<1x144x32xf32>
    %10 = vector.shape_cast %9 : vector<1x144x32xf32> to vector<144x32xf32>
    %c0_11 = arith.constant 0 : index
    %c0_12 = arith.constant 0 : index
    %11 = vector.load %arg2[%c0_11, %c0_12] : memref<32x128xf32, #tpu.memory_space<vmem>>, vector<32x128xf32>
    %cst_13 = arith.constant dense<0.000000e+00> : vector<144x128xf32>
    %12 = tpu.matmul %10, %11, %cst_13 {dimension_numbers = #tpu.dot_dimension_numbers<[1], [0], [0], [1], [0, 0, 1, 1], [], []>} : vector<144x32xf32>, vector<32x128xf32>, vector<144x128xf32> -> vector<144x128xf32>
    %13 = arith.maximumf %8, %12 : vector<144x128xf32>
    %c0_14 = arith.constant 0 : index
    %c432 = arith.constant 432 : index
    %c0_15 = arith.constant 0 : index
    %14 = vector.load %arg1[%c0_14, %c432, %c0_15] : memref<1x576x32xf32, #tpu.memory_space<vmem>>, vector<1x144x32xf32>
    %15 = vector.shape_cast %14 : vector<1x144x32xf32> to vector<144x32xf32>
    %c0_16 = arith.constant 0 : index
    %c0_17 = arith.constant 0 : index
    %16 = vector.load %arg2[%c0_16, %c0_17] : memref<32x128xf32, #tpu.memory_space<vmem>>, vector<32x128xf32>
    %cst_18 = arith.constant dense<0.000000e+00> : vector<144x128xf32>
    %17 = tpu.matmul %15, %16, %cst_18 {dimension_numbers = #tpu.dot_dimension_numbers<[1], [0], [0], [1], [0, 0, 1, 1], [], []>} : vector<144x32xf32>, vector<32x128xf32>, vector<144x128xf32> -> vector<144x128xf32>
    %18 = arith.maximumf %13, %17 : vector<144x128xf32>
    %c0_19 = arith.constant 0 : index
    %c0_20 = arith.constant 0 : index
    %19 = vector.load %arg3[%c0_19, %c0_20] : memref<1x128xf32, #tpu.memory_space<vmem>>, vector<1x128xf32>
    %20 = vector.broadcast %19 : vector<1x128xf32> to vector<144x128xf32>
    %21 = arith.addf %18, %20 : vector<144x128xf32>
    %cst_21 = arith.constant 0.000000e+00 : f32
    %22 = vector.broadcast %cst_21 : f32 to vector<144x128xf32>
    %23 = arith.maximumf %21, %22 : vector<144x128xf32>
    %c0_22 = arith.constant 0 : index
    %c0_23 = arith.constant 0 : index
    %24 = vector.load %arg7[%c0_22, %c0_23] : memref<144x128xf32, #tpu.memory_space<vmem>>, vector<144x128xf32>
    tpu.vector_store %arg7[%c0_22, %c0_23], %23 {strides = array<i32>} : memref<144x128xf32, #tpu.memory_space<vmem>>, vector<144x128xf32>,
    %cst_24 = arith.constant 0.000000e+00 : f32
    %25 = vector.broadcast %cst_24 : f32 to vector<64x128xf32>
    %c0_25 = arith.constant 0 : index
    %c0_26 = arith.constant 0 : index
    %26 = vector.load %arg7[%c0_25, %c0_26] : memref<144x128xf32, #tpu.memory_space<vmem>>, vector<8x128xf32>
    %c12 = arith.constant 12 : index
    %c0_27 = arith.constant 0 : index
    %27 = vector.load %arg7[%c12, %c0_27] : memref<144x128xf32, #tpu.memory_space<vmem>>, vector<8x128xf32>
    %c24 = arith.constant 24 : index
    %c0_28 = arith.constant 0 : index
    %28 = vector.load %arg7[%c24, %c0_28] : memref<144x128xf32, #tpu.memory_space<vmem>>, vector<8x128xf32>
    %c36 = arith.constant 36 : index
    %c0_29 = arith.constant 0 : index
    %29 = vector.load %arg7[%c36, %c0_29] : memref<144x128xf32, #tpu.memory_space<vmem>>, vector<8x128xf32>
    %c48 = arith.constant 48 : index
    %c0_30 = arith.constant 0 : index
    %30 = vector.load %arg7[%c48, %c0_30] : memref<144x128xf32, #tpu.memory_space<vmem>>, vector<8x128xf32>
    %c60 = arith.constant 60 : index
    %c0_31 = arith.constant 0 : index
    %31 = vector.load %arg7[%c60, %c0_31] : memref<144x128xf32, #tpu.memory_space<vmem>>, vector<8x128xf32>
    %c72 = arith.constant 72 : index
    %c0_32 = arith.constant 0 : index
    %32 = vector.load %arg7[%c72, %c0_32] : memref<144x128xf32, #tpu.memory_space<vmem>>, vector<8x128xf32>
    %c84 = arith.constant 84 : index
    %c0_33 = arith.constant 0 : index
    %33 = vector.load %arg7[%c84, %c0_33] : memref<144x128xf32, #tpu.memory_space<vmem>>, vector<8x128xf32>
    %34 = tpu.concatenate %26, %27, %28, %29, %30, %31, %32, %33 in 0 : vector<8x128xf32>, vector<8x128xf32>, vector<8x128xf32>, vector<8x128xf32>, vector<8x128xf32>, vector<8x128xf32>, vector<8x128xf32>, vector<8x128xf32> -> vector<64x128xf32>
    %c0_34 = arith.constant 0 : index
    %c0_35 = arith.constant 0 : index
    %c0_36 = arith.constant 0 : index
    %35 = vector.load %arg4[%c0_34, %c0_35, %c0_36] : memref<25x128x128xf32, #tpu.memory_space<vmem>>, vector<1x128x128xf32>
    %36 = vector.shape_cast %35 : vector<1x128x128xf32> to vector<128x128xf32>
    %cst_37 = arith.constant dense<0.000000e+00> : vector<64x128xf32>
    %37 = tpu.matmul %34, %36, %cst_37 {dimension_numbers = #tpu.dot_dimension_numbers<[1], [0], [0], [1], [0, 0, 1, 1], [], []>} : vector<64x128xf32>, vector<128x128xf32>, vector<64x128xf32> -> vector<64x128xf32>
    %38 = arith.addf %25, %37 : vector<64x128xf32>
    %c1 = arith.constant 1 : index
    %c0_38 = arith.constant 0 : index
    %39 = vector.load %arg7[%c1, %c0_38] : memref<144x128xf32, #tpu.memory_space<vmem>>, vector<8x128xf32>
    %c13 = arith.constant 13 : index
    %c0_39 = arith.constant 0 : index
    %40 = vector.load %arg7[%c13, %c0_39] : memref<144x128xf32, #tpu.memory_space<vmem>>, vector<8x128xf32>
    %c25 = arith.constant 25 : index
    %c0_40 = arith.constant 0 : index
    %41 = vector.load %arg7[%c25, %c0_40] : memref<144x128xf32, #tpu.memory_space<vmem>>, vector<8x128xf32>
    %c37 = arith.constant 37 : index
    %c0_41 = arith.constant 0 : index
    %42 = vector.load %arg7[%c37, %c0_41] : memref<144x128xf32, #tpu.memory_space<vmem>>, vector<8x128xf32>
    %c49 = arith.constant 49 : index
    %c0_42 = arith.constant 0 : index
    %43 = vector.load %arg7[%c49, %c0_42] : memref<144x128xf32, #tpu.memory_space<vmem>>, vector<8x128xf32>
    %c61 = arith.constant 61 : index
    %c0_43 = arith.constant 0 : index
    %44 = vector.load %arg7[%c61, %c0_43] : memref<144x128xf32, #tpu.memory_space<vmem>>, vector<8x128xf32>
    %c73 = arith.constant 73 : index
    %c0_44 = arith.constant 0 : index
    %45 = vector.load %arg7[%c73, %c0_44] : memref<144x128xf32, #tpu.memory_space<vmem>>, vector<8x128xf32>
    %c85 = arith.constant 85 : index
    %c0_45 = arith.constant 0 : index
    %46 = vector.load %arg7[%c85, %c0_45] : memref<144x128xf32, #tpu.memory_space<vmem>>, vector<8x128xf32>
    %47 = tpu.concatenate %39, %40, %41, %42, %43, %44, %45, %46 in 0 : vector<8x128xf32>, vector<8x128xf32>, vector<8x128xf32>, vector<8x128xf32>, vector<8x128xf32>, vector<8x128xf32>, vector<8x128xf32>, vector<8x128xf32> -> vector<64x128xf32>
    %c1_46 = arith.constant 1 : index
    %c0_47 = arith.constant 0 : index
    %c0_48 = arith.constant 0 : index
    %48 = vector.load %arg4[%c1_46, %c0_47, %c0_48] : memref<25x128x128xf32, #tpu.memory_space<vmem>>, vector<1x128x128xf32>
    %49 = vector.shape_cast %48 : vector<1x128x128xf32> to vector<128x128xf32>
    %cst_49 = arith.constant dense<0.000000e+00> : vector<64x128xf32>
    %50 = tpu.matmul %47, %49, %cst_49 {dimension_numbers = #tpu.dot_dimension_numbers<[1], [0], [0], [1], [0, 0, 1, 1], [], []>} : vector<64x128xf32>, vector<128x128xf32>, vector<64x128xf32> -> vector<64x128xf32>
    %51 = arith.addf %38, %50 : vector<64x128xf32>
    %c2 = arith.constant 2 : index
    %c0_50 = arith.constant 0 : index
    %52 = vector.load %arg7[%c2, %c0_50] : memref<144x128xf32, #tpu.memory_space<vmem>>, vector<8x128xf32>
    %c14 = arith.constant 14 : index
    %c0_51 = arith.constant 0 : index
    %53 = vector.load %arg7[%c14, %c0_51] : memref<144x128xf32, #tpu.memory_space<vmem>>, vector<8x128xf32>
    %c26 = arith.constant 26 : index
    %c0_52 = arith.constant 0 : index
    %54 = vector.load %arg7[%c26, %c0_52] : memref<144x128xf32, #tpu.memory_space<vmem>>, vector<8x128xf32>
    %c38 = arith.constant 38 : index
    %c0_53 = arith.constant 0 : index
    %55 = vector.load %arg7[%c38, %c0_53] : memref<144x128xf32, #tpu.memory_space<vmem>>, vector<8x128xf32>
    %c50 = arith.constant 50 : index
    %c0_54 = arith.constant 0 : index
    %56 = vector.load %arg7[%c50, %c0_54] : memref<144x128xf32, #tpu.memory_space<vmem>>, vector<8x128xf32>
    %c62 = arith.constant 62 : index
    %c0_55 = arith.constant 0 : index
    %57 = vector.load %arg7[%c62, %c0_55] : memref<144x128xf32, #tpu.memory_space<vmem>>, vector<8x128xf32>
    %c74 = arith.constant 74 : index
    %c0_56 = arith.constant 0 : index
    %58 = vector.load %arg7[%c74, %c0_56] : memref<144x128xf32, #tpu.memory_space<vmem>>, vector<8x128xf32>
    %c86 = arith.constant 86 : index
    %c0_57 = arith.constant 0 : index
    %59 = vector.load %arg7[%c86, %c0_57] : memref<144x128xf32, #tpu.memory_space<vmem>>, vector<8x128xf32>
    %60 = tpu.concatenate %52, %53, %54, %55, %56, %57, %58, %59 in 0 : vector<8x128xf32>, vector<8x128xf32>, vector<8x128xf32>, vector<8x128xf32>, vector<8x128xf32>, vector<8x128xf32>, vector<8x128xf32>, vector<8x128xf32> -> vector<64x128xf32>
    %c2_58 = arith.constant 2 : index
    %c0_59 = arith.constant 0 : index
    %c0_60 = arith.constant 0 : index
    %61 = vector.load %arg4[%c2_58, %c0_59, %c0_60] : memref<25x128x128xf32, #tpu.memory_space<vmem>>, vector<1x128x128xf32>
    %62 = vector.shape_cast %61 : vector<1x128x128xf32> to vector<128x128xf32>
    %cst_61 = arith.constant dense<0.000000e+00> : vector<64x128xf32>
    %63 = tpu.matmul %60, %62, %cst_61 {dimension_numbers = #tpu.dot_dimension_numbers<[1], [0], [0], [1], [0, 0, 1, 1], [], []>} : vector<64x128xf32>, vector<128x128xf32>, vector<64x128xf32> -> vector<64x128xf32>
    %64 = arith.addf %51, %63 : vector<64x128xf32>
    %c3 = arith.constant 3 : index
    %c0_62 = arith.constant 0 : index
    %65 = vector.load %arg7[%c3, %c0_62] : memref<144x128xf32, #tpu.memory_space<vmem>>, vector<8x128xf32>
    %c15 = arith.constant 15 : index
    %c0_63 = arith.constant 0 : index
    %66 = vector.load %arg7[%c15, %c0_63] : memref<144x128xf32, #tpu.memory_space<vmem>>, vector<8x128xf32>
    %c27 = arith.constant 27 : index
    %c0_64 = arith.constant 0 : index
    %67 = vector.load %arg7[%c27, %c0_64] : memref<144x128xf32, #tpu.memory_space<vmem>>, vector<8x128xf32>
    %c39 = arith.constant 39 : index
    %c0_65 = arith.constant 0 : index
    %68 = vector.load %arg7[%c39, %c0_65] : memref<144x128xf32, #tpu.memory_space<vmem>>, vector<8x128xf32>
    %c51 = arith.constant 51 : index
    %c0_66 = arith.constant 0 : index
    %69 = vector.load %arg7[%c51, %c0_66] : memref<144x128xf32, #tpu.memory_space<vmem>>, vector<8x128xf32>
    %c63 = arith.constant 63 : index
    %c0_67 = arith.constant 0 : index
    %70 = vector.load %arg7[%c63, %c0_67] : memref<144x128xf32, #tpu.memory_space<vmem>>, vector<8x128xf32>
    %c75 = arith.constant 75 : index
    %c0_68 = arith.constant 0 : index
    %71 = vector.load %arg7[%c75, %c0_68] : memref<144x128xf32, #tpu.memory_space<vmem>>, vector<8x128xf32>
    %c87 = arith.constant 87 : index
    %c0_69 = arith.constant 0 : index
    %72 = vector.load %arg7[%c87, %c0_69] : memref<144x128xf32, #tpu.memory_space<vmem>>, vector<8x128xf32>
    %73 = tpu.concatenate %65, %66, %67, %68, %69, %70, %71, %72 in 0 : vector<8x128xf32>, vector<8x128xf32>, vector<8x128xf32>, vector<8x128xf32>, vector<8x128xf32>, vector<8x128xf32>, vector<8x128xf32>, vector<8x128xf32> -> vector<64x128xf32>
    %c3_70 = arith.constant 3 : index
    %c0_71 = arith.constant 0 : index
    %c0_72 = arith.constant 0 : index
    %74 = vector.load %arg4[%c3_70, %c0_71, %c0_72] : memref<25x128x128xf32, #tpu.memory_space<vmem>>, vector<1x128x128xf32>
    %75 = vector.shape_cast %74 : vector<1x128x128xf32> to vector<128x128xf32>
    %cst_73 = arith.constant dense<0.000000e+00> : vector<64x128xf32>
    %76 = tpu.matmul %73, %75, %cst_73 {dimension_numbers = #tpu.dot_dimension_numbers<[1], [0], [0], [1], [0, 0, 1, 1], [], []>} : vector<64x128xf32>, vector<128x128xf32>, vector<64x128xf32> -> vector<64x128xf32>
    %77 = arith.addf %64, %76 : vector<64x128xf32>
    %c4 = arith.constant 4 : index
    %c0_74 = arith.constant 0 : index
    %78 = vector.load %arg7[%c4, %c0_74] : memref<144x128xf32, #tpu.memory_space<vmem>>, vector<8x128xf32>
    %c16 = arith.constant 16 : index
    %c0_75 = arith.constant 0 : index
    %79 = vector.load %arg7[%c16, %c0_75] : memref<144x128xf32, #tpu.memory_space<vmem>>, vector<8x128xf32>
    %c28 = arith.constant 28 : index
    %c0_76 = arith.constant 0 : index
    %80 = vector.load %arg7[%c28, %c0_76] : memref<144x128xf32, #tpu.memory_space<vmem>>, vector<8x128xf32>
    %c40 = arith.constant 40 : index
    %c0_77 = arith.constant 0 : index
    %81 = vector.load %arg7[%c40, %c0_77] : memref<144x128xf32, #tpu.memory_space<vmem>>, vector<8x128xf32>
    %c52 = arith.constant 52 : index
    %c0_78 = arith.constant 0 : index
    %82 = vector.load %arg7[%c52, %c0_78] : memref<144x128xf32, #tpu.memory_space<vmem>>, vector<8x128xf32>
    %c64 = arith.constant 64 : index
    %c0_79 = arith.constant 0 : index
    %83 = vector.load %arg7[%c64, %c0_79] : memref<144x128xf32, #tpu.memory_space<vmem>>, vector<8x128xf32>
    %c76 = arith.constant 76 : index
    %c0_80 = arith.constant 0 : index
    %84 = vector.load %arg7[%c76, %c0_80] : memref<144x128xf32, #tpu.memory_space<vmem>>, vector<8x128xf32>
    %c88 = arith.constant 88 : index
    %c0_81 = arith.constant 0 : index
    %85 = vector.load %arg7[%c88, %c0_81] : memref<144x128xf32, #tpu.memory_space<vmem>>, vector<8x128xf32>
    %86 = tpu.concatenate %78, %79, %80, %81, %82, %83, %84, %85 in 0 : vector<8x128xf32>, vector<8x128xf32>, vector<8x128xf32>, vector<8x128xf32>, vector<8x128xf32>, vector<8x128xf32>, vector<8x128xf32>, vector<8x128xf32> -> vector<64x128xf32>
    %c4_82 = arith.constant 4 : index
    %c0_83 = arith.constant 0 : index
    %c0_84 = arith.constant 0 : index
    %87 = vector.load %arg4[%c4_82, %c0_83, %c0_84] : memref<25x128x128xf32, #tpu.memory_space<vmem>>, vector<1x128x128xf32>
    %88 = vector.shape_cast %87 : vector<1x128x128xf32> to vector<128x128xf32>
    %cst_85 = arith.constant dense<0.000000e+00> : vector<64x128xf32>
    %89 = tpu.matmul %86, %88, %cst_85 {dimension_numbers = #tpu.dot_dimension_numbers<[1], [0], [0], [1], [0, 0, 1, 1], [], []>} : vector<64x128xf32>, vector<128x128xf32>, vector<64x128xf32> -> vector<64x128xf32>
    %90 = arith.addf %77, %89 : vector<64x128xf32>
    %c12_86 = arith.constant 12 : index
    %c0_87 = arith.constant 0 : index
    %91 = vector.load %arg7[%c12_86, %c0_87] : memref<144x128xf32, #tpu.memory_space<vmem>>, vector<8x128xf32>
    %c24_88 = arith.constant 24 : index
    %c0_89 = arith.constant 0 : index
    %92 = vector.load %arg7[%c24_88, %c0_89] : memref<144x128xf32, #tpu.memory_space<vmem>>, vector<8x128xf32>
    %c36_90 = arith.constant 36 : index
    %c0_91 = arith.constant 0 : index
    %93 = vector.load %arg7[%c36_90, %c0_91] : memref<144x128xf32, #tpu.memory_space<vmem>>, vector<8x128xf32>
    %c48_92 = arith.constant 48 : index
    %c0_93 = arith.constant 0 : index
    %94 = vector.load %arg7[%c48_92, %c0_93] : memref<144x128xf32, #tpu.memory_space<vmem>>, vector<8x128xf32>
    %c60_94 = arith.constant 60 : index
    %c0_95 = arith.constant 0 : index
    %95 = vector.load %arg7[%c60_94, %c0_95] : memref<144x128xf32, #tpu.memory_space<vmem>>, vector<8x128xf32>
    %c72_96 = arith.constant 72 : index
    %c0_97 = arith.constant 0 : index
    %96 = vector.load %arg7[%c72_96, %c0_97] : memref<144x128xf32, #tpu.memory_space<vmem>>, vector<8x128xf32>
    %c84_98 = arith.constant 84 : index
    %c0_99 = arith.constant 0 : index
    %97 = vector.load %arg7[%c84_98, %c0_99] : memref<144x128xf32, #tpu.memory_space<vmem>>, vector<8x128xf32>
    %c96 = arith.constant 96 : index
    %c0_100 = arith.constant 0 : index
    %98 = vector.load %arg7[%c96, %c0_100] : memref<144x128xf32, #tpu.memory_space<vmem>>, vector<8x128xf32>
    %99 = tpu.concatenate %91, %92, %93, %94, %95, %96, %97, %98 in 0 : vector<8x128xf32>, vector<8x128xf32>, vector<8x128xf32>, vector<8x128xf32>, vector<8x128xf32>, vector<8x128xf32>, vector<8x128xf32>, vector<8x128xf32> -> vector<64x128xf32>
    %c5 = arith.constant 5 : index
    %c0_101 = arith.constant 0 : index
    %c0_102 = arith.constant 0 : index
    %100 = vector.load %arg4[%c5, %c0_101, %c0_102] : memref<25x128x128xf32, #tpu.memory_space<vmem>>, vector<1x128x128xf32>
    %101 = vector.shape_cast %100 : vector<1x128x128xf32> to vector<128x128xf32>
    %cst_103 = arith.constant dense<0.000000e+00> : vector<64x128xf32>
    %102 = tpu.matmul %99, %101, %cst_103 {dimension_numbers = #tpu.dot_dimension_numbers<[1], [0], [0], [1], [0, 0, 1, 1], [], []>} : vector<64x128xf32>, vector<128x128xf32>, vector<64x128xf32> -> vector<64x128xf32>
    %103 = arith.addf %90, %102 : vector<64x128xf32>
    %c13_104 = arith.constant 13 : index
    %c0_105 = arith.constant 0 : index
    %104 = vector.load %arg7[%c13_104, %c0_105] : memref<144x128xf32, #tpu.memory_space<vmem>>, vector<8x128xf32>
    %c25_106 = arith.constant 25 : index
    %c0_107 = arith.constant 0 : index
    %105 = vector.load %arg7[%c25_106, %c0_107] : memref<144x128xf32, #tpu.memory_space<vmem>>, vector<8x128xf32>
    %c37_108 = arith.constant 37 : index
    %c0_109 = arith.constant 0 : index
    %106 = vector.load %arg7[%c37_108, %c0_109] : memref<144x128xf32, #tpu.memory_space<vmem>>, vector<8x128xf32>
    %c49_110 = arith.constant 49 : index
    %c0_111 = arith.constant 0 : index
    %107 = vector.load %arg7[%c49_110, %c0_111] : memref<144x128xf32, #tpu.memory_space<vmem>>, vector<8x128xf32>
    %c61_112 = arith.constant 61 : index
    %c0_113 = arith.constant 0 : index
    %108 = vector.load %arg7[%c61_112, %c0_113] : memref<144x128xf32, #tpu.memory_space<vmem>>, vector<8x128xf32>
    %c73_114 = arith.constant 73 : index
    %c0_115 = arith.constant 0 : index
    %109 = vector.load %arg7[%c73_114, %c0_115] : memref<144x128xf32, #tpu.memory_space<vmem>>, vector<8x128xf32>
    %c85_116 = arith.constant 85 : index
    %c0_117 = arith.constant 0 : index
    %110 = vector.load %arg7[%c85_116, %c0_117] : memref<144x128xf32, #tpu.memory_space<vmem>>, vector<8x128xf32>
    %c97 = arith.constant 97 : index
    %c0_118 = arith.constant 0 : index
    %111 = vector.load %arg7[%c97, %c0_118] : memref<144x128xf32, #tpu.memory_space<vmem>>, vector<8x128xf32>
    %112 = tpu.concatenate %104, %105, %106, %107, %108, %109, %110, %111 in 0 : vector<8x128xf32>, vector<8x128xf32>, vector<8x128xf32>, vector<8x128xf32>, vector<8x128xf32>, vector<8x128xf32>, vector<8x128xf32>, vector<8x128xf32> -> vector<64x128xf32>
    %c6 = arith.constant 6 : index
    %c0_119 = arith.constant 0 : index
    %c0_120 = arith.constant 0 : index
    %113 = vector.load %arg4[%c6, %c0_119, %c0_120] : memref<25x128x128xf32, #tpu.memory_space<vmem>>, vector<1x128x128xf32>
    %114 = vector.shape_cast %113 : vector<1x128x128xf32> to vector<128x128xf32>
    %cst_121 = arith.constant dense<0.000000e+00> : vector<64x128xf32>
    %115 = tpu.matmul %112, %114, %cst_121 {dimension_numbers = #tpu.dot_dimension_numbers<[1], [0], [0], [1], [0, 0, 1, 1], [], []>} : vector<64x128xf32>, vector<128x128xf32>, vector<64x128xf32> -> vector<64x128xf32>
    %116 = arith.addf %103, %115 : vector<64x128xf32>
    %c14_122 = arith.constant 14 : index
    %c0_123 = arith.constant 0 : index
    %117 = vector.load %arg7[%c14_122, %c0_123] : memref<144x128xf32, #tpu.memory_space<vmem>>, vector<8x128xf32>
    %c26_124 = arith.constant 26 : index
    %c0_125 = arith.constant 0 : index
    %118 = vector.load %arg7[%c26_124, %c0_125] : memref<144x128xf32, #tpu.memory_space<vmem>>, vector<8x128xf32>
    %c38_126 = arith.constant 38 : index
    %c0_127 = arith.constant 0 : index
    %119 = vector.load %arg7[%c38_126, %c0_127] : memref<144x128xf32, #tpu.memory_space<vmem>>, vector<8x128xf32>
    %c50_128 = arith.constant 50 : index
    %c0_129 = arith.constant 0 : index
    %120 = vector.load %arg7[%c50_128, %c0_129] : memref<144x128xf32, #tpu.memory_space<vmem>>, vector<8x128xf32>
    %c62_130 = arith.constant 62 : index
    %c0_131 = arith.constant 0 : index
    %121 = vector.load %arg7[%c62_130, %c0_131] : memref<144x128xf32, #tpu.memory_space<vmem>>, vector<8x128xf32>
    %c74_132 = arith.constant 74 : index
    %c0_133 = arith.constant 0 : index
    %122 = vector.load %arg7[%c74_132, %c0_133] : memref<144x128xf32, #tpu.memory_space<vmem>>, vector<8x128xf32>
    %c86_134 = arith.constant 86 : index
    %c0_135 = arith.constant 0 : index
    %123 = vector.load %arg7[%c86_134, %c0_135] : memref<144x128xf32, #tpu.memory_space<vmem>>, vector<8x128xf32>
    %c98 = arith.constant 98 : index
    %c0_136 = arith.constant 0 : index
    %124 = vector.load %arg7[%c98, %c0_136] : memref<144x128xf32, #tpu.memory_space<vmem>>, vector<8x128xf32>
    %125 = tpu.concatenate %117, %118, %119, %120, %121, %122, %123, %124 in 0 : vector<8x128xf32>, vector<8x128xf32>, vector<8x128xf32>, vector<8x128xf32>, vector<8x128xf32>, vector<8x128xf32>, vector<8x128xf32>, vector<8x128xf32> -> vector<64x128xf32>
    %c7 = arith.constant 7 : index
    %c0_137 = arith.constant 0 : index
    %c0_138 = arith.constant 0 : index
    %126 = vector.load %arg4[%c7, %c0_137, %c0_138] : memref<25x128x128xf32, #tpu.memory_space<vmem>>, vector<1x128x128xf32>
    %127 = vector.shape_cast %126 : vector<1x128x128xf32> to vector<128x128xf32>
    %cst_139 = arith.constant dense<0.000000e+00> : vector<64x128xf32>
    %128 = tpu.matmul %125, %127, %cst_139 {dimension_numbers = #tpu.dot_dimension_numbers<[1], [0], [0], [1], [0, 0, 1, 1], [], []>} : vector<64x128xf32>, vector<128x128xf32>, vector<64x128xf32> -> vector<64x128xf32>
    %129 = arith.addf %116, %128 : vector<64x128xf32>
    %c15_140 = arith.constant 15 : index
    %c0_141 = arith.constant 0 : index
    %130 = vector.load %arg7[%c15_140, %c0_141] : memref<144x128xf32, #tpu.memory_space<vmem>>, vector<8x128xf32>
    %c27_142 = arith.constant 27 : index
    %c0_143 = arith.constant 0 : index
    %131 = vector.load %arg7[%c27_142, %c0_143] : memref<144x128xf32, #tpu.memory_space<vmem>>, vector<8x128xf32>
    %c39_144 = arith.constant 39 : index
    %c0_145 = arith.constant 0 : index
    %132 = vector.load %arg7[%c39_144, %c0_145] : memref<144x128xf32, #tpu.memory_space<vmem>>, vector<8x128xf32>
    %c51_146 = arith.constant 51 : index
    %c0_147 = arith.constant 0 : index
    %133 = vector.load %arg7[%c51_146, %c0_147] : memref<144x128xf32, #tpu.memory_space<vmem>>, vector<8x128xf32>
    %c63_148 = arith.constant 63 : index
    %c0_149 = arith.constant 0 : index
    %134 = vector.load %arg7[%c63_148, %c0_149] : memref<144x128xf32, #tpu.memory_space<vmem>>, vector<8x128xf32>
    %c75_150 = arith.constant 75 : index
    %c0_151 = arith.constant 0 : index
    %135 = vector.load %arg7[%c75_150, %c0_151] : memref<144x128xf32, #tpu.memory_space<vmem>>, vector<8x128xf32>
    %c87_152 = arith.constant 87 : index
    %c0_153 = arith.constant 0 : index
    %136 = vector.load %arg7[%c87_152, %c0_153] : memref<144x128xf32, #tpu.memory_space<vmem>>, vector<8x128xf32>
    %c99 = arith.constant 99 : index
    %c0_154 = arith.constant 0 : index
    %137 = vector.load %arg7[%c99, %c0_154] : memref<144x128xf32, #tpu.memory_space<vmem>>, vector<8x128xf32>
    %138 = tpu.concatenate %130, %131, %132, %133, %134, %135, %136, %137 in 0 : vector<8x128xf32>, vector<8x128xf32>, vector<8x128xf32>, vector<8x128xf32>, vector<8x128xf32>, vector<8x128xf32>, vector<8x128xf32>, vector<8x128xf32> -> vector<64x128xf32>
    %c8 = arith.constant 8 : index
    %c0_155 = arith.constant 0 : index
    %c0_156 = arith.constant 0 : index
    %139 = vector.load %arg4[%c8, %c0_155, %c0_156] : memref<25x128x128xf32, #tpu.memory_space<vmem>>, vector<1x128x128xf32>
    %140 = vector.shape_cast %139 : vector<1x128x128xf32> to vector<128x128xf32>
    %cst_157 = arith.constant dense<0.000000e+00> : vector<64x128xf32>
    %141 = tpu.matmul %138, %140, %cst_157 {dimension_numbers = #tpu.dot_dimension_numbers<[1], [0], [0], [1], [0, 0, 1, 1], [], []>} : vector<64x128xf32>, vector<128x128xf32>, vector<64x128xf32> -> vector<64x128xf32>
    %142 = arith.addf %129, %141 : vector<64x128xf32>
    %c16_158 = arith.constant 16 : index
    %c0_159 = arith.constant 0 : index
    %143 = vector.load %arg7[%c16_158, %c0_159] : memref<144x128xf32, #tpu.memory_space<vmem>>, vector<8x128xf32>
    %c28_160 = arith.constant 28 : index
    %c0_161 = arith.constant 0 : index
    %144 = vector.load %arg7[%c28_160, %c0_161] : memref<144x128xf32, #tpu.memory_space<vmem>>, vector<8x128xf32>
    %c40_162 = arith.constant 40 : index
    %c0_163 = arith.constant 0 : index
    %145 = vector.load %arg7[%c40_162, %c0_163] : memref<144x128xf32, #tpu.memory_space<vmem>>, vector<8x128xf32>
    %c52_164 = arith.constant 52 : index
    %c0_165 = arith.constant 0 : index
    %146 = vector.load %arg7[%c52_164, %c0_165] : memref<144x128xf32, #tpu.memory_space<vmem>>, vector<8x128xf32>
    %c64_166 = arith.constant 64 : index
    %c0_167 = arith.constant 0 : index
    %147 = vector.load %arg7[%c64_166, %c0_167] : memref<144x128xf32, #tpu.memory_space<vmem>>, vector<8x128xf32>
    %c76_168 = arith.constant 76 : index
    %c0_169 = arith.constant 0 : index
    %148 = vector.load %arg7[%c76_168, %c0_169] : memref<144x128xf32, #tpu.memory_space<vmem>>, vector<8x128xf32>
    %c88_170 = arith.constant 88 : index
    %c0_171 = arith.constant 0 : index
    %149 = vector.load %arg7[%c88_170, %c0_171] : memref<144x128xf32, #tpu.memory_space<vmem>>, vector<8x128xf32>
    %c100 = arith.constant 100 : index
    %c0_172 = arith.constant 0 : index
    %150 = vector.load %arg7[%c100, %c0_172] : memref<144x128xf32, #tpu.memory_space<vmem>>, vector<8x128xf32>
    %151 = tpu.concatenate %143, %144, %145, %146, %147, %148, %149, %150 in 0 : vector<8x128xf32>, vector<8x128xf32>, vector<8x128xf32>, vector<8x128xf32>, vector<8x128xf32>, vector<8x128xf32>, vector<8x128xf32>, vector<8x128xf32> -> vector<64x128xf32>
    %c9 = arith.constant 9 : index
    %c0_173 = arith.constant 0 : index
    %c0_174 = arith.constant 0 : index
    %152 = vector.load %arg4[%c9, %c0_173, %c0_174] : memref<25x128x128xf32, #tpu.memory_space<vmem>>, vector<1x128x128xf32>
    %153 = vector.shape_cast %152 : vector<1x128x128xf32> to vector<128x128xf32>
    %cst_175 = arith.constant dense<0.000000e+00> : vector<64x128xf32>
    %154 = tpu.matmul %151, %153, %cst_175 {dimension_numbers = #tpu.dot_dimension_numbers<[1], [0], [0], [1], [0, 0, 1, 1], [], []>} : vector<64x128xf32>, vector<128x128xf32>, vector<64x128xf32> -> vector<64x128xf32>
    %155 = arith.addf %142, %154 : vector<64x128xf32>
    %c24_176 = arith.constant 24 : index
    %c0_177 = arith.constant 0 : index
    %156 = vector.load %arg7[%c24_176, %c0_177] : memref<144x128xf32, #tpu.memory_space<vmem>>, vector<8x128xf32>
    %c36_178 = arith.constant 36 : index
    %c0_179 = arith.constant 0 : index
    %157 = vector.load %arg7[%c36_178, %c0_179] : memref<144x128xf32, #tpu.memory_space<vmem>>, vector<8x128xf32>
    %c48_180 = arith.constant 48 : index
    %c0_181 = arith.constant 0 : index
    %158 = vector.load %arg7[%c48_180, %c0_181] : memref<144x128xf32, #tpu.memory_space<vmem>>, vector<8x128xf32>
    %c60_182 = arith.constant 60 : index
    %c0_183 = arith.constant 0 : index
    %159 = vector.load %arg7[%c60_182, %c0_183] : memref<144x128xf32, #tpu.memory_space<vmem>>, vector<8x128xf32>
    %c72_184 = arith.constant 72 : index
    %c0_185 = arith.constant 0 : index
    %160 = vector.load %arg7[%c72_184, %c0_185] : memref<144x128xf32, #tpu.memory_space<vmem>>, vector<8x128xf32>
    %c84_186 = arith.constant 84 : index
    %c0_187 = arith.constant 0 : index
    %161 = vector.load %arg7[%c84_186, %c0_187] : memref<144x128xf32, #tpu.memory_space<vmem>>, vector<8x128xf32>
    %c96_188 = arith.constant 96 : index
    %c0_189 = arith.constant 0 : index
    %162 = vector.load %arg7[%c96_188, %c0_189] : memref<144x128xf32, #tpu.memory_space<vmem>>, vector<8x128xf32>
    %c108 = arith.constant 108 : index
    %c0_190 = arith.constant 0 : index
    %163 = vector.load %arg7[%c108, %c0_190] : memref<144x128xf32, #tpu.memory_space<vmem>>, vector<8x128xf32>
    %164 = tpu.concatenate %156, %157, %158, %159, %160, %161, %162, %163 in 0 : vector<8x128xf32>, vector<8x128xf32>, vector<8x128xf32>, vector<8x128xf32>, vector<8x128xf32>, vector<8x128xf32>, vector<8x128xf32>, vector<8x128xf32> -> vector<64x128xf32>
    %c10 = arith.constant 10 : index
    %c0_191 = arith.constant 0 : index
    %c0_192 = arith.constant 0 : index
    %165 = vector.load %arg4[%c10, %c0_191, %c0_192] : memref<25x128x128xf32, #tpu.memory_space<vmem>>, vector<1x128x128xf32>
    %166 = vector.shape_cast %165 : vector<1x128x128xf32> to vector<128x128xf32>
    %cst_193 = arith.constant dense<0.000000e+00> : vector<64x128xf32>
    %167 = tpu.matmul %164, %166, %cst_193 {dimension_numbers = #tpu.dot_dimension_numbers<[1], [0], [0], [1], [0, 0, 1, 1], [], []>} : vector<64x128xf32>, vector<128x128xf32>, vector<64x128xf32> -> vector<64x128xf32>
    %168 = arith.addf %155, %167 : vector<64x128xf32>
    %c25_194 = arith.constant 25 : index
    %c0_195 = arith.constant 0 : index
    %169 = vector.load %arg7[%c25_194, %c0_195] : memref<144x128xf32, #tpu.memory_space<vmem>>, vector<8x128xf32>
    %c37_196 = arith.constant 37 : index
    %c0_197 = arith.constant 0 : index
    %170 = vector.load %arg7[%c37_196, %c0_197] : memref<144x128xf32, #tpu.memory_space<vmem>>, vector<8x128xf32>
    %c49_198 = arith.constant 49 : index
    %c0_199 = arith.constant 0 : index
    %171 = vector.load %arg7[%c49_198, %c0_199] : memref<144x128xf32, #tpu.memory_space<vmem>>, vector<8x128xf32>
    %c61_200 = arith.constant 61 : index
    %c0_201 = arith.constant 0 : index
    %172 = vector.load %arg7[%c61_200, %c0_201] : memref<144x128xf32, #tpu.memory_space<vmem>>, vector<8x128xf32>
    %c73_202 = arith.constant 73 : index
    %c0_203 = arith.constant 0 : index
    %173 = vector.load %arg7[%c73_202, %c0_203] : memref<144x128xf32, #tpu.memory_space<vmem>>, vector<8x128xf32>
    %c85_204 = arith.constant 85 : index
    %c0_205 = arith.constant 0 : index
    %174 = vector.load %arg7[%c85_204, %c0_205] : memref<144x128xf32, #tpu.memory_space<vmem>>, vector<8x128xf32>
    %c97_206 = arith.constant 97 : index
    %c0_207 = arith.constant 0 : index
    %175 = vector.load %arg7[%c97_206, %c0_207] : memref<144x128xf32, #tpu.memory_space<vmem>>, vector<8x128xf32>
    %c109 = arith.constant 109 : index
    %c0_208 = arith.constant 0 : index
    %176 = vector.load %arg7[%c109, %c0_208] : memref<144x128xf32, #tpu.memory_space<vmem>>, vector<8x128xf32>
    %177 = tpu.concatenate %169, %170, %171, %172, %173, %174, %175, %176 in 0 : vector<8x128xf32>, vector<8x128xf32>, vector<8x128xf32>, vector<8x128xf32>, vector<8x128xf32>, vector<8x128xf32>, vector<8x128xf32>, vector<8x128xf32> -> vector<64x128xf32>
    %c11 = arith.constant 11 : index
    %c0_209 = arith.constant 0 : index
    %c0_210 = arith.constant 0 : index
    %178 = vector.load %arg4[%c11, %c0_209, %c0_210] : memref<25x128x128xf32, #tpu.memory_space<vmem>>, vector<1x128x128xf32>
    %179 = vector.shape_cast %178 : vector<1x128x128xf32> to vector<128x128xf32>
    %cst_211 = arith.constant dense<0.000000e+00> : vector<64x128xf32>
    %180 = tpu.matmul %177, %179, %cst_211 {dimension_numbers = #tpu.dot_dimension_numbers<[1], [0], [0], [1], [0, 0, 1, 1], [], []>} : vector<64x128xf32>, vector<128x128xf32>, vector<64x128xf32> -> vector<64x128xf32>
    %181 = arith.addf %168, %180 : vector<64x128xf32>
    %c26_212 = arith.constant 26 : index
    %c0_213 = arith.constant 0 : index
    %182 = vector.load %arg7[%c26_212, %c0_213] : memref<144x128xf32, #tpu.memory_space<vmem>>, vector<8x128xf32>
    %c38_214 = arith.constant 38 : index
    %c0_215 = arith.constant 0 : index
    %183 = vector.load %arg7[%c38_214, %c0_215] : memref<144x128xf32, #tpu.memory_space<vmem>>, vector<8x128xf32>
    %c50_216 = arith.constant 50 : index
    %c0_217 = arith.constant 0 : index
    %184 = vector.load %arg7[%c50_216, %c0_217] : memref<144x128xf32, #tpu.memory_space<vmem>>, vector<8x128xf32>
    %c62_218 = arith.constant 62 : index
    %c0_219 = arith.constant 0 : index
    %185 = vector.load %arg7[%c62_218, %c0_219] : memref<144x128xf32, #tpu.memory_space<vmem>>, vector<8x128xf32>
    %c74_220 = arith.constant 74 : index
    %c0_221 = arith.constant 0 : index
    %186 = vector.load %arg7[%c74_220, %c0_221] : memref<144x128xf32, #tpu.memory_space<vmem>>, vector<8x128xf32>
    %c86_222 = arith.constant 86 : index
    %c0_223 = arith.constant 0 : index
    %187 = vector.load %arg7[%c86_222, %c0_223] : memref<144x128xf32, #tpu.memory_space<vmem>>, vector<8x128xf32>
    %c98_224 = arith.constant 98 : index
    %c0_225 = arith.constant 0 : index
    %188 = vector.load %arg7[%c98_224, %c0_225] : memref<144x128xf32, #tpu.memory_space<vmem>>, vector<8x128xf32>
    %c110 = arith.constant 110 : index
    %c0_226 = arith.constant 0 : index
    %189 = vector.load %arg7[%c110, %c0_226] : memref<144x128xf32, #tpu.memory_space<vmem>>, vector<8x128xf32>
    %190 = tpu.concatenate %182, %183, %184, %185, %186, %187, %188, %189 in 0 : vector<8x128xf32>, vector<8x128xf32>, vector<8x128xf32>, vector<8x128xf32>, vector<8x128xf32>, vector<8x128xf32>, vector<8x128xf32>, vector<8x128xf32> -> vector<64x128xf32>
    %c12_227 = arith.constant 12 : index
    %c0_228 = arith.constant 0 : index
    %c0_229 = arith.constant 0 : index
    %191 = vector.load %arg4[%c12_227, %c0_228, %c0_229] : memref<25x128x128xf32, #tpu.memory_space<vmem>>, vector<1x128x128xf32>
    %192 = vector.shape_cast %191 : vector<1x128x128xf32> to vector<128x128xf32>
    %cst_230 = arith.constant dense<0.000000e+00> : vector<64x128xf32>
    %193 = tpu.matmul %190, %192, %cst_230 {dimension_numbers = #tpu.dot_dimension_numbers<[1], [0], [0], [1], [0, 0, 1, 1], [], []>} : vector<64x128xf32>, vector<128x128xf32>, vector<64x128xf32> -> vector<64x128xf32>
    %194 = arith.addf %181, %193 : vector<64x128xf32>
    %c27_231 = arith.constant 27 : index
    %c0_232 = arith.constant 0 : index
    %195 = vector.load %arg7[%c27_231, %c0_232] : memref<144x128xf32, #tpu.memory_space<vmem>>, vector<8x128xf32>
    %c39_233 = arith.constant 39 : index
    %c0_234 = arith.constant 0 : index
    %196 = vector.load %arg7[%c39_233, %c0_234] : memref<144x128xf32, #tpu.memory_space<vmem>>, vector<8x128xf32>
    %c51_235 = arith.constant 51 : index
    %c0_236 = arith.constant 0 : index
    %197 = vector.load %arg7[%c51_235, %c0_236] : memref<144x128xf32, #tpu.memory_space<vmem>>, vector<8x128xf32>
    %c63_237 = arith.constant 63 : index
    %c0_238 = arith.constant 0 : index
    %198 = vector.load %arg7[%c63_237, %c0_238] : memref<144x128xf32, #tpu.memory_space<vmem>>, vector<8x128xf32>
    %c75_239 = arith.constant 75 : index
    %c0_240 = arith.constant 0 : index
    %199 = vector.load %arg7[%c75_239, %c0_240] : memref<144x128xf32, #tpu.memory_space<vmem>>, vector<8x128xf32>
    %c87_241 = arith.constant 87 : index
    %c0_242 = arith.constant 0 : index
    %200 = vector.load %arg7[%c87_241, %c0_242] : memref<144x128xf32, #tpu.memory_space<vmem>>, vector<8x128xf32>
    %c99_243 = arith.constant 99 : index
    %c0_244 = arith.constant 0 : index
    %201 = vector.load %arg7[%c99_243, %c0_244] : memref<144x128xf32, #tpu.memory_space<vmem>>, vector<8x128xf32>
    %c111 = arith.constant 111 : index
    %c0_245 = arith.constant 0 : index
    %202 = vector.load %arg7[%c111, %c0_245] : memref<144x128xf32, #tpu.memory_space<vmem>>, vector<8x128xf32>
    %203 = tpu.concatenate %195, %196, %197, %198, %199, %200, %201, %202 in 0 : vector<8x128xf32>, vector<8x128xf32>, vector<8x128xf32>, vector<8x128xf32>, vector<8x128xf32>, vector<8x128xf32>, vector<8x128xf32>, vector<8x128xf32> -> vector<64x128xf32>
    %c13_246 = arith.constant 13 : index
    %c0_247 = arith.constant 0 : index
    %c0_248 = arith.constant 0 : index
    %204 = vector.load %arg4[%c13_246, %c0_247, %c0_248] : memref<25x128x128xf32, #tpu.memory_space<vmem>>, vector<1x128x128xf32>
    %205 = vector.shape_cast %204 : vector<1x128x128xf32> to vector<128x128xf32>
    %cst_249 = arith.constant dense<0.000000e+00> : vector<64x128xf32>
    %206 = tpu.matmul %203, %205, %cst_249 {dimension_numbers = #tpu.dot_dimension_numbers<[1], [0], [0], [1], [0, 0, 1, 1], [], []>} : vector<64x128xf32>, vector<128x128xf32>, vector<64x128xf32> -> vector<64x128xf32>
    %207 = arith.addf %194, %206 : vector<64x128xf32>
    %c28_250 = arith.constant 28 : index
    %c0_251 = arith.constant 0 : index
    %208 = vector.load %arg7[%c28_250, %c0_251] : memref<144x128xf32, #tpu.memory_space<vmem>>, vector<8x128xf32>
    %c40_252 = arith.constant 40 : index
    %c0_253 = arith.constant 0 : index
    %209 = vector.load %arg7[%c40_252, %c0_253] : memref<144x128xf32, #tpu.memory_space<vmem>>, vector<8x128xf32>
    %c52_254 = arith.constant 52 : index
    %c0_255 = arith.constant 0 : index
    %210 = vector.load %arg7[%c52_254, %c0_255] : memref<144x128xf32, #tpu.memory_space<vmem>>, vector<8x128xf32>
    %c64_256 = arith.constant 64 : index
    %c0_257 = arith.constant 0 : index
    %211 = vector.load %arg7[%c64_256, %c0_257] : memref<144x128xf32, #tpu.memory_space<vmem>>, vector<8x128xf32>
    %c76_258 = arith.constant 76 : index
    %c0_259 = arith.constant 0 : index
    %212 = vector.load %arg7[%c76_258, %c0_259] : memref<144x128xf32, #tpu.memory_space<vmem>>, vector<8x128xf32>
    %c88_260 = arith.constant 88 : index
    %c0_261 = arith.constant 0 : index
    %213 = vector.load %arg7[%c88_260, %c0_261] : memref<144x128xf32, #tpu.memory_space<vmem>>, vector<8x128xf32>
    %c100_262 = arith.constant 100 : index
    %c0_263 = arith.constant 0 : index
    %214 = vector.load %arg7[%c100_262, %c0_263] : memref<144x128xf32, #tpu.memory_space<vmem>>, vector<8x128xf32>
    %c112 = arith.constant 112 : index
    %c0_264 = arith.constant 0 : index
    %215 = vector.load %arg7[%c112, %c0_264] : memref<144x128xf32, #tpu.memory_space<vmem>>, vector<8x128xf32>
    %216 = tpu.concatenate %208, %209, %210, %211, %212, %213, %214, %215 in 0 : vector<8x128xf32>, vector<8x128xf32>, vector<8x128xf32>, vector<8x128xf32>, vector<8x128xf32>, vector<8x128xf32>, vector<8x128xf32>, vector<8x128xf32> -> vector<64x128xf32>
    %c14_265 = arith.constant 14 : index
    %c0_266 = arith.constant 0 : index
    %c0_267 = arith.constant 0 : index
    %217 = vector.load %arg4[%c14_265, %c0_266, %c0_267] : memref<25x128x128xf32, #tpu.memory_space<vmem>>, vector<1x128x128xf32>
    %218 = vector.shape_cast %217 : vector<1x128x128xf32> to vector<128x128xf32>
    %cst_268 = arith.constant dense<0.000000e+00> : vector<64x128xf32>
    %219 = tpu.matmul %216, %218, %cst_268 {dimension_numbers = #tpu.dot_dimension_numbers<[1], [0], [0], [1], [0, 0, 1, 1], [], []>} : vector<64x128xf32>, vector<128x128xf32>, vector<64x128xf32> -> vector<64x128xf32>
    %220 = arith.addf %207, %219 : vector<64x128xf32>
    %c36_269 = arith.constant 36 : index
    %c0_270 = arith.constant 0 : index
    %221 = vector.load %arg7[%c36_269, %c0_270] : memref<144x128xf32, #tpu.memory_space<vmem>>, vector<8x128xf32>
    %c48_271 = arith.constant 48 : index
    %c0_272 = arith.constant 0 : index
    %222 = vector.load %arg7[%c48_271, %c0_272] : memref<144x128xf32, #tpu.memory_space<vmem>>, vector<8x128xf32>
    %c60_273 = arith.constant 60 : index
    %c0_274 = arith.constant 0 : index
    %223 = vector.load %arg7[%c60_273, %c0_274] : memref<144x128xf32, #tpu.memory_space<vmem>>, vector<8x128xf32>
    %c72_275 = arith.constant 72 : index
    %c0_276 = arith.constant 0 : index
    %224 = vector.load %arg7[%c72_275, %c0_276] : memref<144x128xf32, #tpu.memory_space<vmem>>, vector<8x128xf32>
    %c84_277 = arith.constant 84 : index
    %c0_278 = arith.constant 0 : index
    %225 = vector.load %arg7[%c84_277, %c0_278] : memref<144x128xf32, #tpu.memory_space<vmem>>, vector<8x128xf32>
    %c96_279 = arith.constant 96 : index
    %c0_280 = arith.constant 0 : index
    %226 = vector.load %arg7[%c96_279, %c0_280] : memref<144x128xf32, #tpu.memory_space<vmem>>, vector<8x128xf32>
    %c108_281 = arith.constant 108 : index
    %c0_282 = arith.constant 0 : index
    %227 = vector.load %arg7[%c108_281, %c0_282] : memref<144x128xf32, #tpu.memory_space<vmem>>, vector<8x128xf32>
    %c120 = arith.constant 120 : index
    %c0_283 = arith.constant 0 : index
    %228 = vector.load %arg7[%c120, %c0_283] : memref<144x128xf32, #tpu.memory_space<vmem>>, vector<8x128xf32>
    %229 = tpu.concatenate %221, %222, %223, %224, %225, %226, %227, %228 in 0 : vector<8x128xf32>, vector<8x128xf32>, vector<8x128xf32>, vector<8x128xf32>, vector<8x128xf32>, vector<8x128xf32>, vector<8x128xf32>, vector<8x128xf32> -> vector<64x128xf32>
    %c15_284 = arith.constant 15 : index
    %c0_285 = arith.constant 0 : index
    %c0_286 = arith.constant 0 : index
    %230 = vector.load %arg4[%c15_284, %c0_285, %c0_286] : memref<25x128x128xf32, #tpu.memory_space<vmem>>, vector<1x128x128xf32>
    %231 = vector.shape_cast %230 : vector<1x128x128xf32> to vector<128x128xf32>
    %cst_287 = arith.constant dense<0.000000e+00> : vector<64x128xf32>
    %232 = tpu.matmul %229, %231, %cst_287 {dimension_numbers = #tpu.dot_dimension_numbers<[1], [0], [0], [1], [0, 0, 1, 1], [], []>} : vector<64x128xf32>, vector<128x128xf32>, vector<64x128xf32> -> vector<64x128xf32>
    %233 = arith.addf %220, %232 : vector<64x128xf32>
    %c37_288 = arith.constant 37 : index
    %c0_289 = arith.constant 0 : index
    %234 = vector.load %arg7[%c37_288, %c0_289] : memref<144x128xf32, #tpu.memory_space<vmem>>, vector<8x128xf32>
    %c49_290 = arith.constant 49 : index
    %c0_291 = arith.constant 0 : index
    %235 = vector.load %arg7[%c49_290, %c0_291] : memref<144x128xf32, #tpu.memory_space<vmem>>, vector<8x128xf32>
    %c61_292 = arith.constant 61 : index
    %c0_293 = arith.constant 0 : index
    %236 = vector.load %arg7[%c61_292, %c0_293] : memref<144x128xf32, #tpu.memory_space<vmem>>, vector<8x128xf32>
    %c73_294 = arith.constant 73 : index
    %c0_295 = arith.constant 0 : index
    %237 = vector.load %arg7[%c73_294, %c0_295] : memref<144x128xf32, #tpu.memory_space<vmem>>, vector<8x128xf32>
    %c85_296 = arith.constant 85 : index
    %c0_297 = arith.constant 0 : index
    %238 = vector.load %arg7[%c85_296, %c0_297] : memref<144x128xf32, #tpu.memory_space<vmem>>, vector<8x128xf32>
    %c97_298 = arith.constant 97 : index
    %c0_299 = arith.constant 0 : index
    %239 = vector.load %arg7[%c97_298, %c0_299] : memref<144x128xf32, #tpu.memory_space<vmem>>, vector<8x128xf32>
    %c109_300 = arith.constant 109 : index
    %c0_301 = arith.constant 0 : index
    %240 = vector.load %arg7[%c109_300, %c0_301] : memref<144x128xf32, #tpu.memory_space<vmem>>, vector<8x128xf32>
    %c121 = arith.constant 121 : index
    %c0_302 = arith.constant 0 : index
    %241 = vector.load %arg7[%c121, %c0_302] : memref<144x128xf32, #tpu.memory_space<vmem>>, vector<8x128xf32>
    %242 = tpu.concatenate %234, %235, %236, %237, %238, %239, %240, %241 in 0 : vector<8x128xf32>, vector<8x128xf32>, vector<8x128xf32>, vector<8x128xf32>, vector<8x128xf32>, vector<8x128xf32>, vector<8x128xf32>, vector<8x128xf32> -> vector<64x128xf32>
    %c16_303 = arith.constant 16 : index
    %c0_304 = arith.constant 0 : index
    %c0_305 = arith.constant 0 : index
    %243 = vector.load %arg4[%c16_303, %c0_304, %c0_305] : memref<25x128x128xf32, #tpu.memory_space<vmem>>, vector<1x128x128xf32>
    %244 = vector.shape_cast %243 : vector<1x128x128xf32> to vector<128x128xf32>
    %cst_306 = arith.constant dense<0.000000e+00> : vector<64x128xf32>
    %245 = tpu.matmul %242, %244, %cst_306 {dimension_numbers = #tpu.dot_dimension_numbers<[1], [0], [0], [1], [0, 0, 1, 1], [], []>} : vector<64x128xf32>, vector<128x128xf32>, vector<64x128xf32> -> vector<64x128xf32>
    %246 = arith.addf %233, %245 : vector<64x128xf32>
    %c38_307 = arith.constant 38 : index
    %c0_308 = arith.constant 0 : index
    %247 = vector.load %arg7[%c38_307, %c0_308] : memref<144x128xf32, #tpu.memory_space<vmem>>, vector<8x128xf32>
    %c50_309 = arith.constant 50 : index
    %c0_310 = arith.constant 0 : index
    %248 = vector.load %arg7[%c50_309, %c0_310] : memref<144x128xf32, #tpu.memory_space<vmem>>, vector<8x128xf32>
    %c62_311 = arith.constant 62 : index
    %c0_312 = arith.constant 0 : index
    %249 = vector.load %arg7[%c62_311, %c0_312] : memref<144x128xf32, #tpu.memory_space<vmem>>, vector<8x128xf32>
    %c74_313 = arith.constant 74 : index
    %c0_314 = arith.constant 0 : index
    %250 = vector.load %arg7[%c74_313, %c0_314] : memref<144x128xf32, #tpu.memory_space<vmem>>, vector<8x128xf32>
    %c86_315 = arith.constant 86 : index
    %c0_316 = arith.constant 0 : index
    %251 = vector.load %arg7[%c86_315, %c0_316] : memref<144x128xf32, #tpu.memory_space<vmem>>, vector<8x128xf32>
    %c98_317 = arith.constant 98 : index
    %c0_318 = arith.constant 0 : index
    %252 = vector.load %arg7[%c98_317, %c0_318] : memref<144x128xf32, #tpu.memory_space<vmem>>, vector<8x128xf32>
    %c110_319 = arith.constant 110 : index
    %c0_320 = arith.constant 0 : index
    %253 = vector.load %arg7[%c110_319, %c0_320] : memref<144x128xf32, #tpu.memory_space<vmem>>, vector<8x128xf32>
    %c122 = arith.constant 122 : index
    %c0_321 = arith.constant 0 : index
    %254 = vector.load %arg7[%c122, %c0_321] : memref<144x128xf32, #tpu.memory_space<vmem>>, vector<8x128xf32>
    %255 = tpu.concatenate %247, %248, %249, %250, %251, %252, %253, %254 in 0 : vector<8x128xf32>, vector<8x128xf32>, vector<8x128xf32>, vector<8x128xf32>, vector<8x128xf32>, vector<8x128xf32>, vector<8x128xf32>, vector<8x128xf32> -> vector<64x128xf32>
    %c17 = arith.constant 17 : index
    %c0_322 = arith.constant 0 : index
    %c0_323 = arith.constant 0 : index
    %256 = vector.load %arg4[%c17, %c0_322, %c0_323] : memref<25x128x128xf32, #tpu.memory_space<vmem>>, vector<1x128x128xf32>
    %257 = vector.shape_cast %256 : vector<1x128x128xf32> to vector<128x128xf32>
    %cst_324 = arith.constant dense<0.000000e+00> : vector<64x128xf32>
    %258 = tpu.matmul %255, %257, %cst_324 {dimension_numbers = #tpu.dot_dimension_numbers<[1], [0], [0], [1], [0, 0, 1, 1], [], []>} : vector<64x128xf32>, vector<128x128xf32>, vector<64x128xf32> -> vector<64x128xf32>
    %259 = arith.addf %246, %258 : vector<64x128xf32>
    %c39_325 = arith.constant 39 : index
    %c0_326 = arith.constant 0 : index
    %260 = vector.load %arg7[%c39_325, %c0_326] : memref<144x128xf32, #tpu.memory_space<vmem>>, vector<8x128xf32>
    %c51_327 = arith.constant 51 : index
    %c0_328 = arith.constant 0 : index
    %261 = vector.load %arg7[%c51_327, %c0_328] : memref<144x128xf32, #tpu.memory_space<vmem>>, vector<8x128xf32>
    %c63_329 = arith.constant 63 : index
    %c0_330 = arith.constant 0 : index
    %262 = vector.load %arg7[%c63_329, %c0_330] : memref<144x128xf32, #tpu.memory_space<vmem>>, vector<8x128xf32>
    %c75_331 = arith.constant 75 : index
    %c0_332 = arith.constant 0 : index
    %263 = vector.load %arg7[%c75_331, %c0_332] : memref<144x128xf32, #tpu.memory_space<vmem>>, vector<8x128xf32>
    %c87_333 = arith.constant 87 : index
    %c0_334 = arith.constant 0 : index
    %264 = vector.load %arg7[%c87_333, %c0_334] : memref<144x128xf32, #tpu.memory_space<vmem>>, vector<8x128xf32>
    %c99_335 = arith.constant 99 : index
    %c0_336 = arith.constant 0 : index
    %265 = vector.load %arg7[%c99_335, %c0_336] : memref<144x128xf32, #tpu.memory_space<vmem>>, vector<8x128xf32>
    %c111_337 = arith.constant 111 : index
    %c0_338 = arith.constant 0 : index
    %266 = vector.load %arg7[%c111_337, %c0_338] : memref<144x128xf32, #tpu.memory_space<vmem>>, vector<8x128xf32>
    %c123 = arith.constant 123 : index
    %c0_339 = arith.constant 0 : index
    %267 = vector.load %arg7[%c123, %c0_339] : memref<144x128xf32, #tpu.memory_space<vmem>>, vector<8x128xf32>
    %268 = tpu.concatenate %260, %261, %262, %263, %264, %265, %266, %267 in 0 : vector<8x128xf32>, vector<8x128xf32>, vector<8x128xf32>, vector<8x128xf32>, vector<8x128xf32>, vector<8x128xf32>, vector<8x128xf32>, vector<8x128xf32> -> vector<64x128xf32>
    %c18 = arith.constant 18 : index
    %c0_340 = arith.constant 0 : index
    %c0_341 = arith.constant 0 : index
    %269 = vector.load %arg4[%c18, %c0_340, %c0_341] : memref<25x128x128xf32, #tpu.memory_space<vmem>>, vector<1x128x128xf32>
    %270 = vector.shape_cast %269 : vector<1x128x128xf32> to vector<128x128xf32>
    %cst_342 = arith.constant dense<0.000000e+00> : vector<64x128xf32>
    %271 = tpu.matmul %268, %270, %cst_342 {dimension_numbers = #tpu.dot_dimension_numbers<[1], [0], [0], [1], [0, 0, 1, 1], [], []>} : vector<64x128xf32>, vector<128x128xf32>, vector<64x128xf32> -> vector<64x128xf32>
    %272 = arith.addf %259, %271 : vector<64x128xf32>
    %c40_343 = arith.constant 40 : index
    %c0_344 = arith.constant 0 : index
    %273 = vector.load %arg7[%c40_343, %c0_344] : memref<144x128xf32, #tpu.memory_space<vmem>>, vector<8x128xf32>
    %c52_345 = arith.constant 52 : index
    %c0_346 = arith.constant 0 : index
    %274 = vector.load %arg7[%c52_345, %c0_346] : memref<144x128xf32, #tpu.memory_space<vmem>>, vector<8x128xf32>
    %c64_347 = arith.constant 64 : index
    %c0_348 = arith.constant 0 : index
    %275 = vector.load %arg7[%c64_347, %c0_348] : memref<144x128xf32, #tpu.memory_space<vmem>>, vector<8x128xf32>
    %c76_349 = arith.constant 76 : index
    %c0_350 = arith.constant 0 : index
    %276 = vector.load %arg7[%c76_349, %c0_350] : memref<144x128xf32, #tpu.memory_space<vmem>>, vector<8x128xf32>
    %c88_351 = arith.constant 88 : index
    %c0_352 = arith.constant 0 : index
    %277 = vector.load %arg7[%c88_351, %c0_352] : memref<144x128xf32, #tpu.memory_space<vmem>>, vector<8x128xf32>
    %c100_353 = arith.constant 100 : index
    %c0_354 = arith.constant 0 : index
    %278 = vector.load %arg7[%c100_353, %c0_354] : memref<144x128xf32, #tpu.memory_space<vmem>>, vector<8x128xf32>
    %c112_355 = arith.constant 112 : index
    %c0_356 = arith.constant 0 : index
    %279 = vector.load %arg7[%c112_355, %c0_356] : memref<144x128xf32, #tpu.memory_space<vmem>>, vector<8x128xf32>
    %c124 = arith.constant 124 : index
    %c0_357 = arith.constant 0 : index
    %280 = vector.load %arg7[%c124, %c0_357] : memref<144x128xf32, #tpu.memory_space<vmem>>, vector<8x128xf32>
    %281 = tpu.concatenate %273, %274, %275, %276, %277, %278, %279, %280 in 0 : vector<8x128xf32>, vector<8x128xf32>, vector<8x128xf32>, vector<8x128xf32>, vector<8x128xf32>, vector<8x128xf32>, vector<8x128xf32>, vector<8x128xf32> -> vector<64x128xf32>
    %c19 = arith.constant 19 : index
    %c0_358 = arith.constant 0 : index
    %c0_359 = arith.constant 0 : index
    %282 = vector.load %arg4[%c19, %c0_358, %c0_359] : memref<25x128x128xf32, #tpu.memory_space<vmem>>, vector<1x128x128xf32>
    %283 = vector.shape_cast %282 : vector<1x128x128xf32> to vector<128x128xf32>
    %cst_360 = arith.constant dense<0.000000e+00> : vector<64x128xf32>
    %284 = tpu.matmul %281, %283, %cst_360 {dimension_numbers = #tpu.dot_dimension_numbers<[1], [0], [0], [1], [0, 0, 1, 1], [], []>} : vector<64x128xf32>, vector<128x128xf32>, vector<64x128xf32> -> vector<64x128xf32>
    %285 = arith.addf %272, %284 : vector<64x128xf32>
    %c48_361 = arith.constant 48 : index
    %c0_362 = arith.constant 0 : index
    %286 = vector.load %arg7[%c48_361, %c0_362] : memref<144x128xf32, #tpu.memory_space<vmem>>, vector<8x128xf32>
    %c60_363 = arith.constant 60 : index
    %c0_364 = arith.constant 0 : index
    %287 = vector.load %arg7[%c60_363, %c0_364] : memref<144x128xf32, #tpu.memory_space<vmem>>, vector<8x128xf32>
    %c72_365 = arith.constant 72 : index
    %c0_366 = arith.constant 0 : index
    %288 = vector.load %arg7[%c72_365, %c0_366] : memref<144x128xf32, #tpu.memory_space<vmem>>, vector<8x128xf32>
    %c84_367 = arith.constant 84 : index
    %c0_368 = arith.constant 0 : index
    %289 = vector.load %arg7[%c84_367, %c0_368] : memref<144x128xf32, #tpu.memory_space<vmem>>, vector<8x128xf32>
    %c96_369 = arith.constant 96 : index
    %c0_370 = arith.constant 0 : index
    %290 = vector.load %arg7[%c96_369, %c0_370] : memref<144x128xf32, #tpu.memory_space<vmem>>, vector<8x128xf32>
    %c108_371 = arith.constant 108 : index
    %c0_372 = arith.constant 0 : index
    %291 = vector.load %arg7[%c108_371, %c0_372] : memref<144x128xf32, #tpu.memory_space<vmem>>, vector<8x128xf32>
    %c120_373 = arith.constant 120 : index
    %c0_374 = arith.constant 0 : index
    %292 = vector.load %arg7[%c120_373, %c0_374] : memref<144x128xf32, #tpu.memory_space<vmem>>, vector<8x128xf32>
    %c132 = arith.constant 132 : index
    %c0_375 = arith.constant 0 : index
    %293 = vector.load %arg7[%c132, %c0_375] : memref<144x128xf32, #tpu.memory_space<vmem>>, vector<8x128xf32>
    %294 = tpu.concatenate %286, %287, %288, %289, %290, %291, %292, %293 in 0 : vector<8x128xf32>, vector<8x128xf32>, vector<8x128xf32>, vector<8x128xf32>, vector<8x128xf32>, vector<8x128xf32>, vector<8x128xf32>, vector<8x128xf32> -> vector<64x128xf32>
    %c20 = arith.constant 20 : index
    %c0_376 = arith.constant 0 : index
    %c0_377 = arith.constant 0 : index
    %295 = vector.load %arg4[%c20, %c0_376, %c0_377] : memref<25x128x128xf32, #tpu.memory_space<vmem>>, vector<1x128x128xf32>
    %296 = vector.shape_cast %295 : vector<1x128x128xf32> to vector<128x128xf32>
    %cst_378 = arith.constant dense<0.000000e+00> : vector<64x128xf32>
    %297 = tpu.matmul %294, %296, %cst_378 {dimension_numbers = #tpu.dot_dimension_numbers<[1], [0], [0], [1], [0, 0, 1, 1], [], []>} : vector<64x128xf32>, vector<128x128xf32>, vector<64x128xf32> -> vector<64x128xf32>
    %298 = arith.addf %285, %297 : vector<64x128xf32>
    %c49_379 = arith.constant 49 : index
    %c0_380 = arith.constant 0 : index
    %299 = vector.load %arg7[%c49_379, %c0_380] : memref<144x128xf32, #tpu.memory_space<vmem>>, vector<8x128xf32>
    %c61_381 = arith.constant 61 : index
    %c0_382 = arith.constant 0 : index
    %300 = vector.load %arg7[%c61_381, %c0_382] : memref<144x128xf32, #tpu.memory_space<vmem>>, vector<8x128xf32>
    %c73_383 = arith.constant 73 : index
    %c0_384 = arith.constant 0 : index
    %301 = vector.load %arg7[%c73_383, %c0_384] : memref<144x128xf32, #tpu.memory_space<vmem>>, vector<8x128xf32>
    %c85_385 = arith.constant 85 : index
    %c0_386 = arith.constant 0 : index
    %302 = vector.load %arg7[%c85_385, %c0_386] : memref<144x128xf32, #tpu.memory_space<vmem>>, vector<8x128xf32>
    %c97_387 = arith.constant 97 : index
    %c0_388 = arith.constant 0 : index
    %303 = vector.load %arg7[%c97_387, %c0_388] : memref<144x128xf32, #tpu.memory_space<vmem>>, vector<8x128xf32>
    %c109_389 = arith.constant 109 : index
    %c0_390 = arith.constant 0 : index
    %304 = vector.load %arg7[%c109_389, %c0_390] : memref<144x128xf32, #tpu.memory_space<vmem>>, vector<8x128xf32>
    %c121_391 = arith.constant 121 : index
    %c0_392 = arith.constant 0 : index
    %305 = vector.load %arg7[%c121_391, %c0_392] : memref<144x128xf32, #tpu.memory_space<vmem>>, vector<8x128xf32>
    %c133 = arith.constant 133 : index
    %c0_393 = arith.constant 0 : index
    %306 = vector.load %arg7[%c133, %c0_393] : memref<144x128xf32, #tpu.memory_space<vmem>>, vector<8x128xf32>
    %307 = tpu.concatenate %299, %300, %301, %302, %303, %304, %305, %306 in 0 : vector<8x128xf32>, vector<8x128xf32>, vector<8x128xf32>, vector<8x128xf32>, vector<8x128xf32>, vector<8x128xf32>, vector<8x128xf32>, vector<8x128xf32> -> vector<64x128xf32>
    %c21 = arith.constant 21 : index
    %c0_394 = arith.constant 0 : index
    %c0_395 = arith.constant 0 : index
    %308 = vector.load %arg4[%c21, %c0_394, %c0_395] : memref<25x128x128xf32, #tpu.memory_space<vmem>>, vector<1x128x128xf32>
    %309 = vector.shape_cast %308 : vector<1x128x128xf32> to vector<128x128xf32>
    %cst_396 = arith.constant dense<0.000000e+00> : vector<64x128xf32>
    %310 = tpu.matmul %307, %309, %cst_396 {dimension_numbers = #tpu.dot_dimension_numbers<[1], [0], [0], [1], [0, 0, 1, 1], [], []>} : vector<64x128xf32>, vector<128x128xf32>, vector<64x128xf32> -> vector<64x128xf32>
    %311 = arith.addf %298, %310 : vector<64x128xf32>
    %c50_397 = arith.constant 50 : index
    %c0_398 = arith.constant 0 : index
    %312 = vector.load %arg7[%c50_397, %c0_398] : memref<144x128xf32, #tpu.memory_space<vmem>>, vector<8x128xf32>
    %c62_399 = arith.constant 62 : index
    %c0_400 = arith.constant 0 : index
    %313 = vector.load %arg7[%c62_399, %c0_400] : memref<144x128xf32, #tpu.memory_space<vmem>>, vector<8x128xf32>
    %c74_401 = arith.constant 74 : index
    %c0_402 = arith.constant 0 : index
    %314 = vector.load %arg7[%c74_401, %c0_402] : memref<144x128xf32, #tpu.memory_space<vmem>>, vector<8x128xf32>
    %c86_403 = arith.constant 86 : index
    %c0_404 = arith.constant 0 : index
    %315 = vector.load %arg7[%c86_403, %c0_404] : memref<144x128xf32, #tpu.memory_space<vmem>>, vector<8x128xf32>
    %c98_405 = arith.constant 98 : index
    %c0_406 = arith.constant 0 : index
    %316 = vector.load %arg7[%c98_405, %c0_406] : memref<144x128xf32, #tpu.memory_space<vmem>>, vector<8x128xf32>
    %c110_407 = arith.constant 110 : index
    %c0_408 = arith.constant 0 : index
    %317 = vector.load %arg7[%c110_407, %c0_408] : memref<144x128xf32, #tpu.memory_space<vmem>>, vector<8x128xf32>
    %c122_409 = arith.constant 122 : index
    %c0_410 = arith.constant 0 : index
    %318 = vector.load %arg7[%c122_409, %c0_410] : memref<144x128xf32, #tpu.memory_space<vmem>>, vector<8x128xf32>
    %c134 = arith.constant 134 : index
    %c0_411 = arith.constant 0 : index
    %319 = vector.load %arg7[%c134, %c0_411] : memref<144x128xf32, #tpu.memory_space<vmem>>, vector<8x128xf32>
    %320 = tpu.concatenate %312, %313, %314, %315, %316, %317, %318, %319 in 0 : vector<8x128xf32>, vector<8x128xf32>, vector<8x128xf32>, vector<8x128xf32>, vector<8x128xf32>, vector<8x128xf32>, vector<8x128xf32>, vector<8x128xf32> -> vector<64x128xf32>
    %c22 = arith.constant 22 : index
    %c0_412 = arith.constant 0 : index
    %c0_413 = arith.constant 0 : index
    %321 = vector.load %arg4[%c22, %c0_412, %c0_413] : memref<25x128x128xf32, #tpu.memory_space<vmem>>, vector<1x128x128xf32>
    %322 = vector.shape_cast %321 : vector<1x128x128xf32> to vector<128x128xf32>
    %cst_414 = arith.constant dense<0.000000e+00> : vector<64x128xf32>
    %323 = tpu.matmul %320, %322, %cst_414 {dimension_numbers = #tpu.dot_dimension_numbers<[1], [0], [0], [1], [0, 0, 1, 1], [], []>} : vector<64x128xf32>, vector<128x128xf32>, vector<64x128xf32> -> vector<64x128xf32>
    %324 = arith.addf %311, %323 : vector<64x128xf32>
    %c51_415 = arith.constant 51 : index
    %c0_416 = arith.constant 0 : index
    %325 = vector.load %arg7[%c51_415, %c0_416] : memref<144x128xf32, #tpu.memory_space<vmem>>, vector<8x128xf32>
    %c63_417 = arith.constant 63 : index
    %c0_418 = arith.constant 0 : index
    %326 = vector.load %arg7[%c63_417, %c0_418] : memref<144x128xf32, #tpu.memory_space<vmem>>, vector<8x128xf32>
    %c75_419 = arith.constant 75 : index
    %c0_420 = arith.constant 0 : index
    %327 = vector.load %arg7[%c75_419, %c0_420] : memref<144x128xf32, #tpu.memory_space<vmem>>, vector<8x128xf32>
    %c87_421 = arith.constant 87 : index
    %c0_422 = arith.constant 0 : index
    %328 = vector.load %arg7[%c87_421, %c0_422] : memref<144x128xf32, #tpu.memory_space<vmem>>, vector<8x128xf32>
    %c99_423 = arith.constant 99 : index
    %c0_424 = arith.constant 0 : index
    %329 = vector.load %arg7[%c99_423, %c0_424] : memref<144x128xf32, #tpu.memory_space<vmem>>, vector<8x128xf32>
    %c111_425 = arith.constant 111 : index
    %c0_426 = arith.constant 0 : index
    %330 = vector.load %arg7[%c111_425, %c0_426] : memref<144x128xf32, #tpu.memory_space<vmem>>, vector<8x128xf32>
    %c123_427 = arith.constant 123 : index
    %c0_428 = arith.constant 0 : index
    %331 = vector.load %arg7[%c123_427, %c0_428] : memref<144x128xf32, #tpu.memory_space<vmem>>, vector<8x128xf32>
    %c135 = arith.constant 135 : index
    %c0_429 = arith.constant 0 : index
    %332 = vector.load %arg7[%c135, %c0_429] : memref<144x128xf32, #tpu.memory_space<vmem>>, vector<8x128xf32>
    %333 = tpu.concatenate %325, %326, %327, %328, %329, %330, %331, %332 in 0 : vector<8x128xf32>, vector<8x128xf32>, vector<8x128xf32>, vector<8x128xf32>, vector<8x128xf32>, vector<8x128xf32>, vector<8x128xf32>, vector<8x128xf32> -> vector<64x128xf32>
    %c23 = arith.constant 23 : index
    %c0_430 = arith.constant 0 : index
    %c0_431 = arith.constant 0 : index
    %334 = vector.load %arg4[%c23, %c0_430, %c0_431] : memref<25x128x128xf32, #tpu.memory_space<vmem>>, vector<1x128x128xf32>
    %335 = vector.shape_cast %334 : vector<1x128x128xf32> to vector<128x128xf32>
    %cst_432 = arith.constant dense<0.000000e+00> : vector<64x128xf32>
    %336 = tpu.matmul %333, %335, %cst_432 {dimension_numbers = #tpu.dot_dimension_numbers<[1], [0], [0], [1], [0, 0, 1, 1], [], []>} : vector<64x128xf32>, vector<128x128xf32>, vector<64x128xf32> -> vector<64x128xf32>
    %337 = arith.addf %324, %336 : vector<64x128xf32>
    %c52_433 = arith.constant 52 : index
    %c0_434 = arith.constant 0 : index
    %338 = vector.load %arg7[%c52_433, %c0_434] : memref<144x128xf32, #tpu.memory_space<vmem>>, vector<8x128xf32>
    %c64_435 = arith.constant 64 : index
    %c0_436 = arith.constant 0 : index
    %339 = vector.load %arg7[%c64_435, %c0_436] : memref<144x128xf32, #tpu.memory_space<vmem>>, vector<8x128xf32>
    %c76_437 = arith.constant 76 : index
    %c0_438 = arith.constant 0 : index
    %340 = vector.load %arg7[%c76_437, %c0_438] : memref<144x128xf32, #tpu.memory_space<vmem>>, vector<8x128xf32>
    %c88_439 = arith.constant 88 : index
    %c0_440 = arith.constant 0 : index
    %341 = vector.load %arg7[%c88_439, %c0_440] : memref<144x128xf32, #tpu.memory_space<vmem>>, vector<8x128xf32>
    %c100_441 = arith.constant 100 : index
    %c0_442 = arith.constant 0 : index
    %342 = vector.load %arg7[%c100_441, %c0_442] : memref<144x128xf32, #tpu.memory_space<vmem>>, vector<8x128xf32>
    %c112_443 = arith.constant 112 : index
    %c0_444 = arith.constant 0 : index
    %343 = vector.load %arg7[%c112_443, %c0_444] : memref<144x128xf32, #tpu.memory_space<vmem>>, vector<8x128xf32>
    %c124_445 = arith.constant 124 : index
    %c0_446 = arith.constant 0 : index
    %344 = vector.load %arg7[%c124_445, %c0_446] : memref<144x128xf32, #tpu.memory_space<vmem>>, vector<8x128xf32>
    %c136 = arith.constant 136 : index
    %c0_447 = arith.constant 0 : index
    %345 = vector.load %arg7[%c136, %c0_447] : memref<144x128xf32, #tpu.memory_space<vmem>>, vector<8x128xf32>
    %346 = tpu.concatenate %338, %339, %340, %341, %342, %343, %344, %345 in 0 : vector<8x128xf32>, vector<8x128xf32>, vector<8x128xf32>, vector<8x128xf32>, vector<8x128xf32>, vector<8x128xf32>, vector<8x128xf32>, vector<8x128xf32> -> vector<64x128xf32>
    %c24_448 = arith.constant 24 : index
    %c0_449 = arith.constant 0 : index
    %c0_450 = arith.constant 0 : index
    %347 = vector.load %arg4[%c24_448, %c0_449, %c0_450] : memref<25x128x128xf32, #tpu.memory_space<vmem>>, vector<1x128x128xf32>
    %348 = vector.shape_cast %347 : vector<1x128x128xf32> to vector<128x128xf32>
    %cst_451 = arith.constant dense<0.000000e+00> : vector<64x128xf32>
    %349 = tpu.matmul %346, %348, %cst_451 {dimension_numbers = #tpu.dot_dimension_numbers<[1], [0], [0], [1], [0, 0, 1, 1], [], []>} : vector<64x128xf32>, vector<128x128xf32>, vector<64x128xf32> -> vector<64x128xf32>
    %350 = arith.addf %337, %349 : vector<64x128xf32>
    %c0_452 = arith.constant 0 : index
    %c0_453 = arith.constant 0 : index
    %351 = vector.load %arg5[%c0_452, %c0_453] : memref<1x128xf32, #tpu.memory_space<vmem>>, vector<1x128xf32>
    %352 = vector.broadcast %351 : vector<1x128xf32> to vector<64x128xf32>
    %353 = arith.addf %350, %352 : vector<64x128xf32>
    %354 = vector.shape_cast %353 : vector<64x128xf32> to vector<8x8x128xf32>
    %355 = vector.shape_cast %354 : vector<8x8x128xf32> to vector<4x2x8x128xf32>
    %cst_454 = arith.constant dense<0xFF800000> : vector<4x8x128xf32>
    %356 = vector.multi_reduction <maximumf>, %355, %cst_454 [1] : vector<4x2x8x128xf32> to vector<4x8x128xf32>
    %357 = vector.extract_strided_slice %356 {offsets = [0, 1, 0], sizes = [4, 7, 128], strides = [1, 1, 1]} : vector<4x8x128xf32> to vector<4x7x128xf32>
    %358 = vector.extract_strided_slice %356 {offsets = [0, 7, 0], sizes = [4, 1, 128], strides = [1, 1, 1]} : vector<4x8x128xf32> to vector<4x1x128xf32>
    %359 = tpu.concatenate %357, %358 in 1 : vector<4x7x128xf32>, vector<4x1x128xf32> -> vector<4x8x128xf32>
    %360 = arith.maximumf %356, %359 : vector<4x8x128xf32>
    %cst_455 = arith.constant 0.000000e+00 : f32
    %361 = vector.broadcast %cst_455 : f32 to vector<4x8x128xf32>
    %362 = arith.maximumf %360, %361 : vector<4x8x128xf32>
    %c0_456 = arith.constant 0 : index
    %c0_457 = arith.constant 0 : index
    %c0_458 = arith.constant 0 : index
    %c0_459 = arith.constant 0 : index
    %363 = vector.load %arg6[%c0_456, %c0_457, %c0_458, %c0_459] : memref<1x4x8x128xf32, #tpu.memory_space<vmem>>, vector<1x4x8x128xf32>
    %364 = vector.shape_cast %363 : vector<1x4x8x128xf32> to vector<4x8x128xf32>
    %365 = vector.shape_cast %362 : vector<4x8x128xf32> to vector<1x4x8x128xf32>
    tpu.vector_store %arg6[%c0_456, %c0_457, %c0_458, %c0_459], %365 {strides = array<i32>} : memref<1x4x8x128xf32, #tpu.memory_space<vmem>>, vector<1x4x8x128xf32>,
    return
  }
  func.func @transform_0(%arg0: i32) -> (i32, i32, i32) {
    %c0_i32 = arith.constant 0 : i32
    %c0_i32_0 = arith.constant 0 : i32
    %c0_i32_1 = arith.constant 0 : i32
    return %arg0, %c0_i32, %c0_i32_0 : i32, i32, i32
  }
  func.func @transform_1(%arg0: i32) -> (i32, i32) {
    %c0_i32 = arith.constant 0 : i32
    %c0_i32_0 = arith.constant 0 : i32
    %c0_i32_1 = arith.constant 0 : i32
    return %c0_i32, %c0_i32_0 : i32, i32
  }
  func.func @transform_2(%arg0: i32) -> (i32, i32) {
    %c0_i32 = arith.constant 0 : i32
    %c0_i32_0 = arith.constant 0 : i32
    %c0_i32_1 = arith.constant 0 : i32
    return %c0_i32, %c0_i32_0 : i32, i32
  }
  func.func @transform_3(%arg0: i32) -> (i32, i32, i32) {
    %c0_i32 = arith.constant 0 : i32
    %c0_i32_0 = arith.constant 0 : i32
    %c0_i32_1 = arith.constant 0 : i32
    %c0_i32_2 = arith.constant 0 : i32
    return %c0_i32, %c0_i32_0, %c0_i32_1 : i32, i32, i32
  }
  func.func @transform_4(%arg0: i32) -> (i32, i32) {
    %c0_i32 = arith.constant 0 : i32
    %c0_i32_0 = arith.constant 0 : i32
    %c0_i32_1 = arith.constant 0 : i32
    return %c0_i32, %c0_i32_0 : i32, i32
  }
  func.func @transform_5(%arg0: i32) -> (i32, i32, i32, i32) {
    %c0_i32 = arith.constant 0 : i32
    %c0_i32_0 = arith.constant 0 : i32
    %c0_i32_1 = arith.constant 0 : i32
    %c0_i32_2 = arith.constant 0 : i32
    return %arg0, %c0_i32, %c0_i32_0, %c0_i32_1 : i32, i32, i32, i32
  }
}

module attributes {stable_mosaic.version = 11 : i64} {
  func.func @fc_stage_kernel(%arg0: i32, %arg1: memref<2x320xf32, #tpu.memory_space<vmem>>, %arg2: memref<320x128xf32, #tpu.memory_space<vmem>>, %arg3: memref<1x128xf32, #tpu.memory_space<vmem>>, %arg4: memref<128x128xf32, #tpu.memory_space<vmem>>, %arg5: memref<1x128xf32, #tpu.memory_space<vmem>>, %arg6: memref<128x128xf32, #tpu.memory_space<vmem>>, %arg7: memref<1x128xf32, #tpu.memory_space<vmem>>, %arg8: memref<2x128xf32, #tpu.memory_space<vmem>>) attributes {dimension_semantics = [#tpu.dimension_semantics<arbitrary>], iteration_bounds = array<i64: 1>, scalar_prefetch = 0 : i64, scratch_operands = 0 : i64, tpu.core_type = #tpu.core_type<tc>, window_params = [{pipeline_mode = #tpu.pipeline_mode<synchronous>, transform_indices = @transform_0, window_bounds = array<i64: 2, 320>}, {pipeline_mode = #tpu.pipeline_mode<synchronous>, transform_indices = @transform_1, window_bounds = array<i64: 320, 128>}, {pipeline_mode = #tpu.pipeline_mode<synchronous>, transform_indices = @transform_2, window_bounds = array<i64: 1, 128>}, {pipeline_mode = #tpu.pipeline_mode<synchronous>, transform_indices = @transform_3, window_bounds = array<i64: 128, 128>}, {pipeline_mode = #tpu.pipeline_mode<synchronous>, transform_indices = @transform_4, window_bounds = array<i64: 1, 128>}, {pipeline_mode = #tpu.pipeline_mode<synchronous>, transform_indices = @transform_5, window_bounds = array<i64: 128, 128>}, {pipeline_mode = #tpu.pipeline_mode<synchronous>, transform_indices = @transform_6, window_bounds = array<i64: 1, 128>}, {pipeline_mode = #tpu.pipeline_mode<synchronous>, transform_indices = @transform_7, window_bounds = array<i64: 2, 128>}]} {
    %c0 = arith.constant 0 : index
    %c0_0 = arith.constant 0 : index
    %0 = vector.load %arg1[%c0, %c0_0] : memref<2x320xf32, #tpu.memory_space<vmem>>, vector<2x320xf32>
    %c0_1 = arith.constant 0 : index
    %c0_2 = arith.constant 0 : index
    %1 = vector.load %arg2[%c0_1, %c0_2] : memref<320x128xf32, #tpu.memory_space<vmem>>, vector<320x128xf32>
    %cst = arith.constant dense<0.000000e+00> : vector<2x128xf32>
    %2 = tpu.matmul %0, %1, %cst {dimension_numbers = #tpu.dot_dimension_numbers<[1], [0], [0], [1], [0, 0, 1, 1], [], []>} : vector<2x320xf32>, vector<320x128xf32>, vector<2x128xf32> -> vector<2x128xf32>
    %c0_3 = arith.constant 0 : index
    %c0_4 = arith.constant 0 : index
    %3 = vector.load %arg3[%c0_3, %c0_4] : memref<1x128xf32, #tpu.memory_space<vmem>>, vector<1x128xf32>
    %4 = vector.broadcast %3 : vector<1x128xf32> to vector<2x128xf32>
    %5 = arith.addf %2, %4 : vector<2x128xf32>
    %cst_5 = arith.constant 0.000000e+00 : f32
    %6 = vector.broadcast %cst_5 : f32 to vector<2x128xf32>
    %7 = arith.maximumf %5, %6 : vector<2x128xf32>
    %c0_6 = arith.constant 0 : index
    %c0_7 = arith.constant 0 : index
    %8 = vector.load %arg4[%c0_6, %c0_7] : memref<128x128xf32, #tpu.memory_space<vmem>>, vector<128x128xf32>
    %cst_8 = arith.constant dense<0.000000e+00> : vector<2x128xf32>
    %9 = tpu.matmul %7, %8, %cst_8 {dimension_numbers = #tpu.dot_dimension_numbers<[1], [0], [0], [1], [0, 0, 1, 1], [], []>} : vector<2x128xf32>, vector<128x128xf32>, vector<2x128xf32> -> vector<2x128xf32>
    %c0_9 = arith.constant 0 : index
    %c0_10 = arith.constant 0 : index
    %10 = vector.load %arg5[%c0_9, %c0_10] : memref<1x128xf32, #tpu.memory_space<vmem>>, vector<1x128xf32>
    %11 = vector.broadcast %10 : vector<1x128xf32> to vector<2x128xf32>
    %12 = arith.addf %9, %11 : vector<2x128xf32>
    %cst_11 = arith.constant 0.000000e+00 : f32
    %13 = vector.broadcast %cst_11 : f32 to vector<2x128xf32>
    %14 = arith.maximumf %12, %13 : vector<2x128xf32>
    %c0_12 = arith.constant 0 : index
    %c0_13 = arith.constant 0 : index
    %15 = vector.load %arg6[%c0_12, %c0_13] : memref<128x128xf32, #tpu.memory_space<vmem>>, vector<128x128xf32>
    %cst_14 = arith.constant dense<0.000000e+00> : vector<2x128xf32>
    %16 = tpu.matmul %14, %15, %cst_14 {dimension_numbers = #tpu.dot_dimension_numbers<[1], [0], [0], [1], [0, 0, 1, 1], [], []>} : vector<2x128xf32>, vector<128x128xf32>, vector<2x128xf32> -> vector<2x128xf32>
    %c0_15 = arith.constant 0 : index
    %c0_16 = arith.constant 0 : index
    %17 = vector.load %arg7[%c0_15, %c0_16] : memref<1x128xf32, #tpu.memory_space<vmem>>, vector<1x128xf32>
    %18 = vector.broadcast %17 : vector<1x128xf32> to vector<2x128xf32>
    %19 = arith.addf %16, %18 : vector<2x128xf32>
    %20 = tpu.iota {dimensions = array<i32: 1>} : vector<2x128xi32>
    %c10_i32 = arith.constant 10 : i32
    %21 = vector.broadcast %c10_i32 : i32 to vector<2x128xi32>
    %22 = arith.cmpi slt, %20, %21 : vector<2x128xi32>
    %cst_17 = arith.constant -1.000000e+30 : f32
    %23 = vector.broadcast %cst_17 : f32 to vector<2x128xf32>
    %24 = arith.select %22, %19, %23 : vector<2x128xi1>, vector<2x128xf32>
    %cst_18 = arith.constant dense<0xFF800000> : vector<2xf32>
    %25 = vector.multi_reduction <maximumf>, %24, %cst_18 [1] : vector<2x128xf32> to vector<2xf32>
    %26 = vector.shape_cast %25 : vector<2xf32> to vector<2x1xf32>
    %27 = vector.broadcast %26 : vector<2x1xf32> to vector<2x128xf32>
    %28 = arith.subf %24, %27 : vector<2x128xf32>
    %29 = math.exp %28 : vector<2x128xf32>
    %cst_19 = arith.constant dense<0.000000e+00> : vector<2xf32>
    %30 = vector.multi_reduction <add>, %29, %cst_19 [1] : vector<2x128xf32> to vector<2xf32>
    %31 = vector.shape_cast %30 : vector<2xf32> to vector<2x1xf32>
    %32 = math.log %31 : vector<2x1xf32>
    %33 = vector.broadcast %26 : vector<2x1xf32> to vector<2x128xf32>
    %34 = arith.subf %24, %33 : vector<2x128xf32>
    %35 = vector.broadcast %32 : vector<2x1xf32> to vector<2x128xf32>
    %36 = arith.subf %34, %35 : vector<2x128xf32>
    %c0_20 = arith.constant 0 : index
    %c0_21 = arith.constant 0 : index
    %37 = vector.load %arg8[%c0_20, %c0_21] : memref<2x128xf32, #tpu.memory_space<vmem>>, vector<2x128xf32>
    tpu.vector_store %arg8[%c0_20, %c0_21], %36 {strides = array<i32>} : memref<2x128xf32, #tpu.memory_space<vmem>>, vector<2x128xf32>,
    return
  }
  func.func @transform_0(%arg0: i32) -> (i32, i32) {
    %c0_i32 = arith.constant 0 : i32
    %c0_i32_0 = arith.constant 0 : i32
    %c0_i32_1 = arith.constant 0 : i32
    return %c0_i32, %c0_i32_0 : i32, i32
  }
  func.func @transform_1(%arg0: i32) -> (i32, i32) {
    %c0_i32 = arith.constant 0 : i32
    %c0_i32_0 = arith.constant 0 : i32
    %c0_i32_1 = arith.constant 0 : i32
    return %c0_i32, %c0_i32_0 : i32, i32
  }
  func.func @transform_2(%arg0: i32) -> (i32, i32) {
    %c0_i32 = arith.constant 0 : i32
    %c0_i32_0 = arith.constant 0 : i32
    %c0_i32_1 = arith.constant 0 : i32
    return %c0_i32, %c0_i32_0 : i32, i32
  }
  func.func @transform_3(%arg0: i32) -> (i32, i32) {
    %c0_i32 = arith.constant 0 : i32
    %c0_i32_0 = arith.constant 0 : i32
    %c0_i32_1 = arith.constant 0 : i32
    return %c0_i32, %c0_i32_0 : i32, i32
  }
  func.func @transform_4(%arg0: i32) -> (i32, i32) {
    %c0_i32 = arith.constant 0 : i32
    %c0_i32_0 = arith.constant 0 : i32
    %c0_i32_1 = arith.constant 0 : i32
    return %c0_i32, %c0_i32_0 : i32, i32
  }
  func.func @transform_5(%arg0: i32) -> (i32, i32) {
    %c0_i32 = arith.constant 0 : i32
    %c0_i32_0 = arith.constant 0 : i32
    %c0_i32_1 = arith.constant 0 : i32
    return %c0_i32, %c0_i32_0 : i32, i32
  }
  func.func @transform_6(%arg0: i32) -> (i32, i32) {
    %c0_i32 = arith.constant 0 : i32
    %c0_i32_0 = arith.constant 0 : i32
    %c0_i32_1 = arith.constant 0 : i32
    return %c0_i32, %c0_i32_0 : i32, i32
  }
  func.func @transform_7(%arg0: i32) -> (i32, i32) {
    %c0_i32 = arith.constant 0 : i32
    %c0_i32_0 = arith.constant 0 : i32
    %c0_i32_1 = arith.constant 0 : i32
    return %c0_i32, %c0_i32_0 : i32, i32
  }
}

</mosaic_0001>

<bundles_post_ra>
// kernel: net2_forward.3
= control target key start
LH: loop header
LB: loop body
LE: loop exit
PB: predicated region body
PF: predicated region fallthrough
CT: control target
= control target key end

     0   :  { %v80_v3 = vlaneseq  ;;  %v754_v8 = vmov 0.0|0.0   ;;  %v755_v9 = vmov 1983009808   ;;  %vm756_vm0 = vmmov 0   ;;  %s1067_s0 = inlined_call_operand.vmem [shape: f32[2,320], index: 0, kind: input, shape index: {}]   ;;  %s1068_s1 = inlined_call_operand.vmem [shape: f32[320,128], index: 1, kind: input, shape index: {}]   ;;  %s1069_s2 = inlined_call_operand.vmem [shape: f32[1,128], index: 2, kind: input, shape index: {}]   ;;  %s1070_s3 = inlined_call_operand.vmem [shape: f32[128,128], index: 3, kind: input, shape index: {}]   ;;  %s1071_s4 = inlined_call_operand.vmem [shape: f32[1,128], index: 4, kind: input, shape index: {}]   ;;  %s1072_s5 = inlined_call_operand.vmem [shape: f32[128,128], index: 5, kind: input, shape index: {}]   ;;  %s1073_s6 = inlined_call_operand.vmem [shape: f32[1,128], index: 6, kind: input, shape index: {}]   ;;  %s1074_s7 = inlined_call_operand.hbm [shape: f32[2,128], index: 7, kind: output, shape index: {}]  }
   0x1   :  { %v44_v0 = vld [vmem:[%s1068_s1 + $0x80] sm:$0xff]  ;;  %v45_v1 = vld [vmem:[%s1068_s1 + $0x88] sm:$0xff]  ;;  %v46_v6 = vld [vmem:[%s1068_s1 + $0x90] sm:$0xff]  ;;  %660 = vmatprep.subr.bf16.mxu1 %v754_v8  ;;  %v78_v10 = vunpack.c.l.s4 %v755_v9  ;;  %v757_v16 = vmov 0.0  }
   0x2   :  { %v28_v2 = vld [vmem:[%s1068_s1] sm:$0xff]  ;;  %v628_v4 = vpack.c.bf16 %v45_v1, %v44_v0  ;;  %v29_v5 = vld [vmem:[%s1068_s1 + $0x8] sm:$0xff]  ;;  %v47_v7 = vld [vmem:[%s1068_s1 + $0x98] sm:$0xff]  ;;  %555 = vmatprep.mubr.msk.f32.mxu1 %vm756_vm0, %v757_v16  ;;  %v81_v23 = vshrl.u32 %v80_v3, 7 }
   0x3   :  { %v630_v11 = vpack.c.bf16 %v29_v5, %v28_v2  ;;  %v632_v12 = vpack.c.bf16 %v47_v7, %v46_v6  ;;  %v30_v13 = vld [vmem:[%s1068_s1 + $0x10] sm:$0xff]  ;;  %v31_v14 = vld [vmem:[%s1068_s1 + $0x18] sm:$0xff]  ;;  %v48_v15 = vld [vmem:[%s1068_s1 + $0xa0] sm:$0xff]  ;;  %v79_v22 = vunpack.c.0.s8 %v78_v10 }
   0x4   :  { %629 = vmatprep.subr.bf16.mxu0 %v628_v4  ;;  %v49_v17 = vld [vmem:[%s1068_s1 + $0xa8] sm:$0xff]  ;;  %v634_v18 = vpack.c.bf16 %v31_v14, %v30_v13  ;;  %v32_v20 = vld [vmem:[%s1068_s1 + $0x20] sm:$0xff]  ;;  %v50_v24 = vld [vmem:[%s1068_s1 + $0xb0] sm:$0xff] }
   0x5   :  { %631 = vmatpush3.bf16.msra.mxu0 %v630_v11  ;;  %v636_v19 = vpack.c.bf16 %v49_v17, %v48_v15  ;;  %v33_v21 = vld [vmem:[%s1068_s1 + $0x28] sm:$0xff]  ;;  %v51_v25 = vld [vmem:[%s1068_s1 + $0xb8] sm:$0xff]  ;;  %v60_v27 = vld [vmem:[%s1068_s1 + $0x100] sm:$0xff]  ;;  %v82_v34 = vsub.s32 %v79_v22, %v81_v23 }
   0x6   :  { %633 = vmatprep.subr.bf16.mxu0 %v632_v12  ;;  %v638_v26 = vpack.c.bf16 %v33_v21, %v32_v20  ;;  %v61_v28 = vld [vmem:[%s1068_s1 + $0x108] sm:$0xff]  ;;  %v640_v29 = vpack.c.bf16 %v51_v25, %v50_v24  ;;  %v34_v30 = vld [vmem:[%s1068_s1 + $0x30] sm:$0xff]  ;;  %v35_v31 = vld [vmem:[%s1068_s1 + $0x38] sm:$0xff] }
   0x7   :  { %v52_v32 = vld [vmem:[%s1068_s1 + $0xc0] sm:$0xff]  ;;  %v661_v33 = vpack.c.bf16 %v61_v28, %v60_v27  ;;  %v53_v35 = vld [vmem:[%s1068_s1 + $0xc8] sm:$0xff]  ;;  %v62_v36 = vld [vmem:[%s1068_s1 + $0x110] sm:$0xff]  ;;  %v642_v39 = vpack.c.bf16 %v35_v31, %v34_v30 }
   0x8   :  { %v63_v37 = vld [vmem:[%s1068_s1 + $0x118] sm:$0xff]  ;;  %v64_v40 = vld [vmem:[%s1068_s1 + $0x120] sm:$0xff]  ;;  %v65_v41 = vld [vmem:[%s1068_s1 + $0x128] sm:$0xff]  ;;  %v644_v43 = vpack.c.bf16 %v53_v35, %v52_v32 }
   0x9   :  { %635 = vmatpush3.bf16.msra.mxu0 %v634_v18  ;;  %662 = vmatpush3.bf16.msra.mxu1 %v661_v33  ;;  %v664_v38 = vpack.c.bf16 %v63_v37, %v62_v36  ;;  %v27_v42 = vld [vmem:[%s1067_s0] sm:$0x3f]  ;;  %v37_v45 = vld [vmem:[%s1068_s1 + $0x48] sm:$0xff]  ;;  %v54_v47 = vld [vmem:[%s1068_s1 + $0xd0] sm:$0xff]  ;;  %v667_v49 = vpack.c.bf16 %v65_v41, %v64_v40 }
   0xa   :  { %637 = vmatprep.subr.bf16.mxu0 %v636_v19  ;;  %663 = vmatprep.subr.bf16.mxu1 %v754_v8  ;;  %v36_v44 = vld [vmem:[%s1068_s1 + $0x40] sm:$0xff]  ;;  %v83_v46 = vrot.slane %v27_v42, %v82_v34  ;;  %v55_v48 = vld [vmem:[%s1068_s1 + $0xd8] sm:$0xff]  ;;  %v66_v52 = vld [vmem:[%s1068_s1 + $0x130] sm:$0xff] }
   0xb   :  { %v646_v51 = vpack.c.bf16 %v37_v45, %v36_v44  ;;  %v67_v53 = vld [vmem:[%s1068_s1 + $0x138] sm:$0xff]  ;;  %v648_v54 = vpack.c.bf16 %v55_v48, %v54_v47  ;;  %v38_v55 = vld [vmem:[%s1068_s1 + $0x50] sm:$0xff] }
   0xc   :  { %v91_v50 = vcombine.high %v83_v46, %v83_v46  ;;  %v39_v56 = vld [vmem:[%s1068_s1 + $0x58] sm:$0xff] }
   0xd   :  { %639 = vmatpush3.bf16.msra.mxu0 %v638_v26  ;;  %665 = vmatpush3.bf16.msra.mxu1 %v664_v38 }
   0xe   :  { %641 = vmatprep.subr.bf16.mxu0 %v640_v29  ;;  %666 = vmatprep.subr.bf16.mxu1 %v754_v8 }
   0xf   :  { %161 = vmatprep.mubr.f32.mxu0 %v91_v50 }
  0x11   :  { %643 = vmatpush3.bf16.msra.mxu0 %v642_v39 }
  0x12   :  { %645 = vmatprep.subr.bf16.mxu0 %v644_v43 }
  0x13   :  { %12 = vsyncpa [#allocation3], 0  ;;  %v56_v57 = vld [vmem:[%s1068_s1 + $0xe0] sm:$0xff]  ;;  %v57_v58 = vld [vmem:[%s1068_s1 + $0xe8] sm:$0xff]  ;;  %v76_v59 = vcombine.high %v27_v42, %v27_v42  ;;  %668 = vmatpush3.bf16.msra.mxu1 %v667_v49  ;;  %v670_v60 = vpack.c.bf16 %v67_v53, %v66_v52  ;;  %v650_v61 = vpack.c.bf16 %v39_v56, %v38_v55  ;;  %vm94_vm1 = vcmask 523264  }
  0x14   :  { %669 = vmatprep.subr.bf16.mxu1 %v754_v8  ;;  %v238_v62 = vld [vmem:[%s1070_s3] sm:$0xff]  ;;  %v239_v63 = vld [vmem:[%s1070_s3 + $0x8] sm:$0xff]  ;;  %v652_v0 = vpack.c.bf16 %v57_v58, %v56_v57  ;;  %v58_v4 = vld [vmem:[%s1068_s1 + $0xf0] sm:$0xff]  ;;  %vm429_vm3 = vcmask 1041408  }
  0x15   :  { %647 = vmatpush3.bf16.msra.mxu0 %v646_v51  ;;  %v40_v1 = vld [vmem:[%s1068_s1 + $0x60] sm:$0xff]  ;;  %v41_v2 = vld [vmem:[%s1068_s1 + $0x68] sm:$0xff]  ;;  %v59_v5 = vld [vmem:[%s1068_s1 + $0xf8] sm:$0xff]  ;;  %v90_v6 = vrot.slane %v76_v59, %v82_v34  ;;  %v673_v7 = vpack.c.bf16 %v239_v63, %v238_v62 }
  0x16   :  { %649 = vmatprep.subr.bf16.mxu0 %v648_v54  ;;  %v654_v9 = vpack.c.bf16 %v41_v2, %v40_v1  ;;  %v240_v10 = vld [vmem:[%s1070_s3 + $0x10] sm:$0xff]  ;;  %v241_v11 = vld [vmem:[%s1070_s3 + $0x18] sm:$0xff]  ;;  %v656_v12 = vpack.c.bf16 %v59_v5, %v58_v4  ;;  %v242_v18 = vld [vmem:[%s1070_s3 + $0x20] sm:$0xff] }
  0x17   :  { %671 = vmatpush3.bf16.msra.mxu1 %v670_v60  ;;  %v42_v13 = vld [vmem:[%s1068_s1 + $0x70] sm:$0xff]  ;;  %v43_v14 = vld [vmem:[%s1068_s1 + $0x78] sm:$0xff]  ;;  %v676_v15 = vpack.c.bf16 %v241_v11, %v240_v10  ;;  %v243_v19 = vld [vmem:[%s1070_s3 + $0x28] sm:$0xff]  ;;  %v426_v10 = vand.u32 127, %v80_v3 }
  0x18   :  { %672 = vmatprep.subr.bf16.mxu1 %v754_v8  ;;  %v658_v17 = vpack.c.bf16 %v43_v14, %v42_v13  ;;  %v679_v20 = vpack.c.bf16 %v243_v19, %v242_v18  ;;  %v244_v21 = vld [vmem:[%s1070_s3 + $0x30] sm:$0xff]  ;;  %v245_v22 = vld [vmem:[%s1070_s3 + $0x38] sm:$0xff]  ;;  %v246_v24 = vld [vmem:[%s1070_s3 + $0x40] sm:$0xff] }
  0x19   :  { %651 = vmatpush3.bf16.msra.mxu0 %v650_v61  ;;  %v682_v23 = vpack.c.bf16 %v245_v22, %v244_v21  ;;  %v247_v25 = vld [vmem:[%s1070_s3 + $0x48] sm:$0xff]  ;;  %v248_v27 = vld [vmem:[%s1070_s3 + $0x50] sm:$0xff]  ;;  %v249_v28 = vld [vmem:[%s1070_s3 + $0x58] sm:$0xff]  ;;  %vm427_vm2 = vcmp.lt.s32.totalorder %v426_v10, 10 }
  0x1a   :  { %653 = vmatprep.subr.bf16.mxu0 %v652_v0  ;;  %556 = vmatmul.mubr.msk.f32.vlgmr.msra.gmra.mrb[0].mxu1 %vm94_vm1, %v90_v6  ;;  %v685_v26 = vpack.c.bf16 %v247_v25, %v246_v24  ;;  %v688_v29 = vpack.c.bf16 %v249_v28, %v248_v27  ;;  %v251_v30 = vld [vmem:[%s1070_s3 + $0x68] sm:$0xff]  ;;  %v252_v32 = vld [vmem:[%s1070_s3 + $0x70] sm:$0xff]  ;;  %v253_v33 = vld [vmem:[%s1070_s3 + $0x78] sm:$0xff] }
  0x1b   :  { %674 = vmatpush3.bf16.msra.mxu1 %v673_v7  ;;  %590 = vmatprep.mubr.msk.f32.mxu1 %vm756_vm0, %v757_v16  ;;  %v694_v34 = vpack.c.bf16 %v253_v33, %v252_v32  ;;  %v332_v35 = vld [vmem:[%s1072_s5] sm:$0xff]  ;;  %v333_v36 = vld [vmem:[%s1072_s5 + $0x8] sm:$0xff]  ;;  %v334_v37 = vld [vmem:[%s1072_s5 + $0x10] sm:$0xff] }
  0x1c   :  { %675 = vmatprep.subr.bf16.mxu1 %v754_v8  ;;  %v697_v38 = vpack.c.bf16 %v333_v36, %v332_v35  ;;  %v335_v39 = vld [vmem:[%s1072_s5 + $0x18] sm:$0xff]  ;;  %v336_v41 = vld [vmem:[%s1072_s5 + $0x20] sm:$0xff]  ;;  %v337_v42 = vld [vmem:[%s1072_s5 + $0x28] sm:$0xff] }
  0x1d   :  { %655 = vmatpush3.bf16.msra.mxu0 %v654_v9  ;;  %v700_v40 = vpack.c.bf16 %v335_v39, %v334_v37  ;;  %v703_v43 = vpack.c.bf16 %v337_v42, %v336_v41  ;;  %v338_v44 = vld [vmem:[%s1072_s5 + $0x30] sm:$0xff]  ;;  %v339_v45 = vld [vmem:[%s1072_s5 + $0x38] sm:$0xff]  ;;  %v340_v47 = vld [vmem:[%s1072_s5 + $0x40] sm:$0xff] }
  0x1e   :  { %657 = vmatprep.subr.bf16.mxu0 %v656_v12  ;;  %v341_v48 = vld [vmem:[%s1072_s5 + $0x48] sm:$0xff]  ;;  %v342_v50 = vld [vmem:[%s1072_s5 + $0x50] sm:$0xff]  ;;  %v343_v51 = vld [vmem:[%s1072_s5 + $0x58] sm:$0xff] }
  0x1f   :  { %677 = vmatpush3.bf16.msra.mxu1 %v676_v15  ;;  %v709_v49 = vpack.c.bf16 %v341_v48, %v340_v47  ;;  %v712_v52 = vpack.c.bf16 %v343_v51, %v342_v50  ;;  %v344_v53 = vld [vmem:[%s1072_s5 + $0x60] sm:$0xff]  ;;  %v345_v54 = vld [vmem:[%s1072_s5 + $0x68] sm:$0xff]  ;;  %v346_v1 = vld [vmem:[%s1072_s5 + $0x70] sm:$0xff] }
  0x20   :  { %678 = vmatprep.subr.bf16.mxu1 %v754_v8  ;;  %v715_v55 = vpack.c.bf16 %v345_v54, %v344_v53  ;;  %v457_v60 = vld [vmem:[%s1069_s2] ss:$0 sm:$0xff] }
  0x21   :  { %659 = vmatpush3.bf16.msra.mxu0 %v658_v17  ;;  %v459_v4 = vld [vmem:[%s1071_s4] ss:$0 sm:$0xff]  ;;  %s758_s4 = smov [#allocation2]  }
  0x22   :  { %696 = vmatprep.subr.bf16.mxu0 %v754_v8  ;;  %v460_v11 = vld [vmem:[%s1073_s6] ss:$0 sm:$0xff] }
  0x23   :  { %680 = vmatpush3.bf16.msra.mxu1 %v679_v20 }
  0x24   :  { %162 = vmatmul.mubr.f32.vlgmr.msra.gmra.mrb[0].mxu0 %v83_v46  ;;  %681 = vmatprep.subr.bf16.mxu1 %v754_v8  ;;  %v706_v46 = vpack.c.bf16 %v339_v45, %v338_v44 }
  0x25   :  { %625 = vmatprep.mubr.msk.f32.mxu0 %vm756_vm0, %v757_v16  ;;  %v250_v16 = vld [vmem:[%s1070_s3 + $0x60] sm:$0xff]  ;;  %698 = vmatpush3.bf16.msra.mxu0 %v697_v38 }
  0x26   :  { %v691_v31 = vpack.c.bf16 %v251_v30, %v250_v16  ;;  %699 = vmatprep.subr.bf16.mxu0 %v754_v8 }
  0x27   :  { %683 = vmatpush3.bf16.msra.mxu1 %v682_v23 }
  0x28   :  { %684 = vmatprep.subr.bf16.mxu1 %v754_v8 }
  0x29   :  { %701 = vmatpush3.bf16.msra.mxu0 %v700_v40 }
  0x2a   :  { %702 = vmatprep.subr.bf16.mxu0 %v754_v8 }
  0x2b   :  { %686 = vmatpush3.bf16.msra.mxu1 %v685_v26 }
  0x2c   :  { %687 = vmatprep.subr.bf16.mxu1 %v754_v8 }
  0x2d   :  { %704 = vmatpush3.bf16.msra.mxu0 %v703_v43 }
  0x2e   :  { %705 = vmatprep.subr.bf16.mxu0 %v754_v8 }
  0x2f   :  { %689 = vmatpush3.bf16.msra.mxu1 %v688_v29 }
  0x30   :  { %690 = vmatprep.subr.bf16.mxu1 %v754_v8 }
  0x31   :  { %707 = vmatpush3.bf16.msra.mxu0 %v706_v46 }
  0x32   :  { %708 = vmatprep.subr.bf16.mxu0 %v754_v8 }
  0x33   :  { %692 = vmatpush3.bf16.msra.mxu1 %v691_v31 }
  0x34   :  { %693 = vmatprep.subr.bf16.mxu1 %v754_v8 }
  0x35   :  { %710 = vmatpush3.bf16.msra.mxu0 %v709_v49 }
  0x36   :  { %711 = vmatprep.subr.bf16.mxu0 %v754_v8 }
  0x37   :  { %695 = vmatpush3.bf16.msra.mxu1 %v694_v34 }
  0x39   :  { %713 = vmatpush3.bf16.msra.mxu0 %v712_v52 }
  0x3a   :  { %714 = vmatprep.subr.bf16.mxu0 %v754_v8 }
  0x3d   :  { %716 = vmatpush3.bf16.msra.mxu0 %v715_v55 }
  0x3e   :  { %717 = vmatprep.subr.bf16.mxu0 %v754_v8  ;;  %v347_v8 = vld [vmem:[%s1072_s5 + $0x78] sm:$0xff]  ;;  %s449_s5 = sshll.u32 %s758_s4, 4  ;;  %s450_s5 = int_to_ptr.vmem [resolvable:$true] %s449_s5 }
  0x3f   :  { %v718_v2 = vpack.c.bf16 %v347_v8, %v346_v1  ;;  %s730_s6 = scalar_lea.vmem %s450_s5, 32  ;;  %p735_p1 = scmp.lt.s32.totalorder %s450_s5, %s450_s5 }
  0x40   :  { %p731_p0 = scmp.ne.s32.totalorder %s450_s5, %s730_s6  ;;  %p736_p2 = scmp.lt.s32.totalorder %s730_s6, %s730_s6 }
  0x41   :  { %719 = vmatpush3.bf16.msra.mxu0 %v718_v2 }
  0x42   :  { %p737_p3 = por %p736_p2, %p735_p1 }
  0x44   :  { %p738_p4 = pnand %p737_p3, %p731_p0 }
  0xed   :  { %v233_v56 = vpop.f32.mrb[0].mxu1 }
  0xee   :  { %v557_v57 = vpop.f32.mrb[1].mxu1 }
  0xf7   :  { %v493_v58 = vpop.f32.mrb[0].mxu0 }
  0xf8   :  { %v494_v59 = vpop.f32.mrb[1].mxu0 }
  0xf9   :  { %v495_v61 = vadd.f32 %v494_v59, %v493_v58 }
  0xfb   :  { %v164_v62 = vadd.f32 %v495_v61, %v457_v60 }
  0xfd   :  { %v234_v63 = vadd.f32 %v233_v56, %v164_v62 }
  0xff   :  { %v237_v0 = vmax.f32 %v234_v63, 0.0 }
 0x101   :  { %591 = vmatmul.mubr.f32.vlgmr.msra.gmra.mrb[2].mxu1 %v237_v0 }
 0x1d4   :  { %v327_v5 = vpop.f32.mrb[2].mxu1 }
 0x1d5   :  { %v328_v6 = vadd.f32 %v459_v4, %v327_v5  ;;  %v592_v7 = vpop.f32.mrb[3].mxu1 }
 0x1d7   :  { %v331_v9 = vmax.f32 %v328_v6, 0.0 }
 0x1d9   :  { %626 = vmatmul.mubr.f32.vlgmr.msra.gmra.mrb[2].mxu0 %v331_v9 }
 0x2ac   :  { %v421_v12 = vpop.f32.mrb[2].mxu0 }
 0x2ad   :  { %v422_v13 = vadd.f32 %v460_v11, %v421_v12  ;;  %v627_v14 = vpop.f32.mrb[3].mxu0 }
 0x2af   :  { %v428_v15 = vsel %vm427_vm2, %v422_v13, -1e+30 }
 0x2b0   :  { %v430_v17 = vsel %vm429_vm3, %v428_v15, -inf }
 0x2b1   :  { %431 = vmax.xlane.f32.xlu0 %v430_v17 }
 0x33e   :  { %v432_v18 = vpop.xlane.xlu0 %431 }
 0x33f   :  { %v433_v19 = vsub.f32 %v428_v15, %v432_v18 }
 0x341   :  { %v434_v20 = vmul.f32 1.442695, %v433_v19 }
 0x343   :  { %726 = vpow2.f32 %v434_v20 }
 0x34d   :  { %v727_v21 = vpop.eup %726 }
 0x34e   :  { %v436_v22 = vsel %vm429_vm3, %v727_v21, 0.0 }
 0x34f   :  { %437 = vadd.xlane.f32.xlu0 %v436_v22 }
 0x3dc   :  { %v438_v3 = vpop.xlane.xlu0 %437 }
 0x3dd   :  { %728 = vlog2.f32 %v438_v3 }
 0x3e7   :  { %v729_v23 = vpop.eup %728 }
 0x3e8   :  { %v440_v24 = vmul.f32 0.6931472, %v729_v23 }
 0x3ea   :  { %v441_v25 = vsub.f32 %v433_v19, %v440_v24 }
 0x3ec   :  { %442 = vst [vmem:[#allocation2] sm:$0x3] %v441_v25 }
 0x3ed   :  { %741 = shalt.err (!%p738_p4)
}
 0x3ee   :  { %s742_s30 = scalar_lea.hbm %s1074_s7, 32 }
 0x3ef   :  { %p743_p5 = scmp.ne.s32.totalorder %s1074_s7, %s742_s30  ;;  %p746_p6 = scmp.lt.u32.totalorder %s742_s30, %s1074_s7 }
 0x3f1   :  { %p748_p7 = pnand %p746_p6, %p743_p5 }
 0x3f3   :  { %751 = shalt.err (!%p748_p7)
}
 0x3f4   :  { %452 = dma.vmem_to_hbm [thread:$0]  %s450_s5, 32, %s1074_s7, [#allocation3]  }
 0x3f5   :  { %752 = dma.done.wait [#allocation3], 32  }
 0x3f6   :  { %753 = vsyncadd [#allocation3], 4294967264 }
 0x3f7   :  { %456 = vsyncpa [#allocation3], 1 }

// kernel: net2_forward.2
= control target key start
LH: loop header
LB: loop body
LE: loop exit
PB: predicated region body
PF: predicated region fallthrough
CT: control target
= control target key end

     0   :  { %s8163_s18 = smov 0   ;;  %s9990_s0 = inlined_call_operand.vmem [shape: f32[2,576,32], index: 0, kind: input, shape index: {}]   ;;  %s9991_s1 = inlined_call_operand.vmem [shape: f32[32,128], index: 1, kind: input, shape index: {}]   ;;  %s9992_s2 = inlined_call_operand.vmem [shape: f32[1,128], index: 2, kind: input, shape index: {}]   ;;  %s9993_s3 = inlined_call_operand.vmem [shape: f32[25,128,128], index: 3, kind: input, shape index: {}]   ;;  %s9994_s4 = inlined_call_operand.vmem [shape: f32[1,128], index: 4, kind: input, shape index: {}]   ;;  %s9995_s5 = inlined_call_operand.vmem [shape: f32[2,4,8,128], index: 5, kind: output, shape index: {}]  }
   0x1 LB: > { %s4649_s19 = sadd.s32 4294967295, %s8131_s18   ;;  %p4653_p0 = scmp.ge.s32.totalorder %s8131_s18, 1  ;;  %s8131_s18 = sphi %s8163_s18, %s15_s18  }
   0x2   : > { %p187_p1 = scmp.lt.s32.totalorder %s8131_s18, 3 }
   0x4   : > { %p188_p2 = pnand %p4653_p0, %p187_p1 }
   0x5   : > { %v243_v0 = vld [vmem:[%s9991_s1] sm:$0xff] (!%p188_p2)  ;;  %v244_v1 = vld [vmem:[%s9991_s1 + $0x8] sm:$0xff] (!%p188_p2)  ;;  %v245_v2 = vld [vmem:[%s9991_s1 + $0x10] sm:$0xff] (!%p188_p2)  ;;  %p215_p3 = scmp.lt.s32.totalorder (!%p188_p2), %s4649_s19, 1  ;;  %vm247_vm0 = vcmask (!%p188_p2), 261120   ;;  %vm4577_vm1 = vcmask (!%p188_p2), 1046528  }
   0x6   : > { %191 = sbr.rel (%p188_p2) target bundleno = 991 (0x3df), region = 40  ;;  %v8180_v3 = vpack.c.bf16 (!%p188_p2), %v244_v1, %v243_v0  ;;  %v246_v4 = vld [vmem:[%s9991_s1 + $0x18] sm:$0xff] (!%p188_p2) }
   0x7   : > { %v8185_v5 = vpack.c.bf16 (!%p188_p2), %v246_v4, %v245_v2 }
   0x8   : > { %7047 = vmatprep.subr.bf16.mxu1 (!%p188_p2), %v8180_v3  ;;  %7063 = vmatprep.subr.bf16.mxu0 (!%p188_p2), %v8180_v3 }
   0x9   : > { %7049 = vmatpush3.bf16.msra.mxu1 (!%p188_p2), %v8180_v3  ;;  %7065 = vmatpush3.bf16.msra.mxu0 (!%p188_p2), %v8180_v3 }
   0xa   : > { %7051 = vmatprep.subr.bf16.mxu1 (!%p188_p2), %v8185_v5  ;;  %7067 = vmatprep.subr.bf16.mxu0 (!%p188_p2), %v8185_v5 }
   0xd   : > { %s9997_s19 = smov (!%p215_p3, %s4649_s19), 1  ;;  %7053 = vmatpush3.bf16.msra.mxu1 %v8185_v5  ;;  %7069 = vmatpush3.bf16.msra.mxu0 %v8185_v5 }
   0xe   : > { %s8074_s28 = smul.u32 576, %s9997_s19  ;;  %7055 = vmatprep.subr.bf16.mxu1 %v8180_v3 }
  0x10   : > { %s8199_s6 = scalar_lea.vmem %s9990_s0, %s8074_s28 }
  0x11   : > { %v225_v6 = vld [vmem:[%s8199_s6] sm:$0xff]  ;;  %v226_v7 = vld [vmem:[%s8199_s6 + $0x8] sm:$0xff]  ;;  %v227_v8 = vld [vmem:[%s8199_s6 + $0x10] sm:$0xff] }
  0x12   : > { %5814 = vmatprep.mubr.msk.f32.mxu1 %vm247_vm0, %v225_v6  ;;  %v228_v9 = vld [vmem:[%s8199_s6 + $0x18] sm:$0xff]  ;;  %v229_v10 = vld [vmem:[%s8199_s6 + $0x20] sm:$0xff]  ;;  %v703_v12 = vld [vmem:[%s8199_s6 + $0x128] sm:$0xff] }
  0x13   : > { %5815 = vmatmul.mubr.msk.f32.vlgmr.msra.gmra.mrb[0].mxu1 %vm247_vm0, %v226_v7  ;;  %v702_v11 = vld [vmem:[%s8199_s6 + $0x120] sm:$0xff]  ;;  %v704_v13 = vld [vmem:[%s8199_s6 + $0x130] sm:$0xff]  ;;  %v230_v14 = vld [vmem:[%s8199_s6 + $0x28] sm:$0xff] }
  0x14   : > { %7057 = vmatpush3.bf16.msra.mxu1 %v8180_v3  ;;  %5817 = vmatprep.mubr.msk.f32.mxu1 %vm247_vm0, %v227_v8  ;;  %v705_v15 = vld [vmem:[%s8199_s6 + $0x138] sm:$0xff]  ;;  %v231_v16 = vld [vmem:[%s8199_s6 + $0x30] sm:$0xff]  ;;  %v706_v17 = vld [vmem:[%s8199_s6 + $0x140] sm:$0xff] }
  0x15   : > { %7059 = vmatprep.subr.bf16.mxu1 %v8185_v5  ;;  %5884 = vmatprep.mubr.msk.f32.mxu0 %vm247_vm0, %v702_v11  ;;  %v232_v18 = vld [vmem:[%s8199_s6 + $0x38] sm:$0xff]  ;;  %v707_v19 = vld [vmem:[%s8199_s6 + $0x148] sm:$0xff]  ;;  %v233_v20 = vld [vmem:[%s8199_s6 + $0x40] sm:$0xff] }
  0x16   : > { %5885 = vmatmul.mubr.msk.f32.vlgmr.msra.gmra.mrb[0].mxu0 %vm247_vm0, %v703_v12  ;;  %v708_v21 = vld [vmem:[%s8199_s6 + $0x150] sm:$0xff]  ;;  %v234_v22 = vld [vmem:[%s8199_s6 + $0x48] sm:$0xff]  ;;  %v709_v23 = vld [vmem:[%s8199_s6 + $0x158] sm:$0xff] }
  0x17   : > { %5818 = vmatmul.mubr.msk.f32.gmra.mrb[2].mxu1 %vm247_vm0, %v228_v9  ;;  %5887 = vmatprep.mubr.msk.f32.mxu0 %vm247_vm0, %v704_v13  ;;  %v235_v24 = vld [vmem:[%s8199_s6 + $0x50] sm:$0xff]  ;;  %v710_v25 = vld [vmem:[%s8199_s6 + $0x160] sm:$0xff]  ;;  %v236_v26 = vld [vmem:[%s8199_s6 + $0x58] sm:$0xff] }
  0x18   : > { %5820 = vmatprep.mubr.msk.f32.mxu1 %vm247_vm0, %v229_v10  ;;  %7061 = vmatpush3.bf16.msra.mxu1 %v8185_v5  ;;  %v711_v27 = vld [vmem:[%s8199_s6 + $0x168] sm:$0xff]  ;;  %v237_v28 = vld [vmem:[%s8199_s6 + $0x60] sm:$0xff]  ;;  %v712_v29 = vld [vmem:[%s8199_s6 + $0x170] sm:$0xff] }
  0x19   : > { %7878 = vmatprep.subr.bf16.mxu1 %v8180_v3  ;;  %v238_v30 = vld [vmem:[%s8199_s6 + $0x68] sm:$0xff]  ;;  %v713_v31 = vld [vmem:[%s8199_s6 + $0x178] sm:$0xff]  ;;  %v239_v32 = vld [vmem:[%s8199_s6 + $0x70] sm:$0xff] }
  0x1a   : > { %5888 = vmatmul.mubr.msk.f32.gmra.mrb[2].mxu0 %vm247_vm0, %v705_v15  ;;  %v714_v33 = vld [vmem:[%s8199_s6 + $0x180] sm:$0xff]  ;;  %v240_v34 = vld [vmem:[%s8199_s6 + $0x78] sm:$0xff]  ;;  %v715_v35 = vld [vmem:[%s8199_s6 + $0x188] sm:$0xff] }
  0x1b   : > { %5821 = vmatmul.mubr.msk.f32.gmra.mrb[4].mxu1 %vm247_vm0, %v230_v14  ;;  %5890 = vmatprep.mubr.msk.f32.mxu0 %vm247_vm0, %v706_v17  ;;  %v241_v36 = vld [vmem:[%s8199_s6 + $0x80] sm:$0xff]  ;;  %v716_v37 = vld [vmem:[%s8199_s6 + $0x190] sm:$0xff]  ;;  %v242_v38 = vld [vmem:[%s8199_s6 + $0x88] sm:$0xff] }
  0x1c   : > { %5823 = vmatprep.mubr.msk.f32.mxu1 %vm247_vm0, %v231_v16  ;;  %v717_v39 = vld [vmem:[%s8199_s6 + $0x198] sm:$0xff]  ;;  %v457_v40 = vld [vmem:[%s8199_s6 + $0x90] sm:$0xff]  ;;  %v459_v42 = vld [vmem:[%s8199_s6 + $0xa0] sm:$0xff] }
  0x1d   : > { %v458_v41 = vld [vmem:[%s8199_s6 + $0x98] sm:$0xff]  ;;  %v460_v43 = vld [vmem:[%s8199_s6 + $0xa8] sm:$0xff]  ;;  %v461_v44 = vld [vmem:[%s8199_s6 + $0xb0] sm:$0xff] }
  0x1e   : > { %5891 = vmatmul.mubr.msk.f32.gmra.mrb[4].mxu0 %vm247_vm0, %v707_v19  ;;  %v462_v45 = vld [vmem:[%s8199_s6 + $0xb8] sm:$0xff]  ;;  %v463_v46 = vld [vmem:[%s8199_s6 + $0xc0] sm:$0xff]  ;;  %v464_v47 = vld [vmem:[%s8199_s6 + $0xc8] sm:$0xff] }
  0x1f   : > { %5824 = vmatmul.mubr.msk.f32.gmra.mrb[6].mxu1 %vm247_vm0, %v232_v18  ;;  %5893 = vmatprep.mubr.msk.f32.mxu0 %vm247_vm0, %v708_v21  ;;  %v465_v48 = vld [vmem:[%s8199_s6 + $0xd0] sm:$0xff]  ;;  %v466_v49 = vld [vmem:[%s8199_s6 + $0xd8] sm:$0xff]  ;;  %v467_v50 = vld [vmem:[%s8199_s6 + $0xe0] sm:$0xff] }
  0x20   : > { %5826 = vmatprep.mubr.msk.f32.mxu1 %vm247_vm0, %v233_v20  ;;  %v468_v51 = vld [vmem:[%s8199_s6 + $0xe8] sm:$0xff]  ;;  %v469_v52 = vld [vmem:[%s8199_s6 + $0xf0] sm:$0xff]  ;;  %v470_v53 = vld [vmem:[%s8199_s6 + $0xf8] sm:$0xff] }
  0x21   : > { %v471_v54 = vld [vmem:[%s8199_s6 + $0x100] sm:$0xff]  ;;  %v472_v55 = vld [vmem:[%s8199_s6 + $0x108] sm:$0xff]  ;;  %v473_v56 = vld [vmem:[%s8199_s6 + $0x110] sm:$0xff] }
  0x22   : > { %5894 = vmatmul.mubr.msk.f32.gmra.mrb[6].mxu0 %vm247_vm0, %v709_v23  ;;  %v474_v57 = vld [vmem:[%s8199_s6 + $0x118] sm:$0xff]  ;;  %v718_v58 = vld [vmem:[%s8199_s6 + $0x1a0] sm:$0xff]  ;;  %v719_v59 = vld [vmem:[%s8199_s6 + $0x1a8] sm:$0xff] }
  0x23   : > { %5827 = vmatmul.mubr.msk.f32.gmra.mrb[8].mxu1 %vm247_vm0, %v234_v22  ;;  %5896 = vmatprep.mubr.msk.f32.mxu0 %vm247_vm0, %v710_v25  ;;  %v947_v60 = vld [vmem:[%s8199_s6 + $0x1b0] sm:$0xff]  ;;  %v948_v61 = vld [vmem:[%s8199_s6 + $0x1b8] sm:$0xff]  ;;  %v949_v62 = vld [vmem:[%s8199_s6 + $0x1c0] sm:$0xff] }
  0x24   : > { %5829 = vmatprep.mubr.msk.f32.mxu1 %vm247_vm0, %v235_v24  ;;  %v950_v63 = vld [vmem:[%s8199_s6 + $0x1c8] sm:$0xff]  ;;  %v951_v0 = vld [vmem:[%s8199_s6 + $0x1d0] sm:$0xff]  ;;  %v952_v1 = vld [vmem:[%s8199_s6 + $0x1d8] sm:$0xff] }
  0x25   : > { %v953_v2 = vld [vmem:[%s8199_s6 + $0x1e0] sm:$0xff]  ;;  %v955_v4 = vld [vmem:[%s8199_s6 + $0x1f0] sm:$0xff]  ;;  %v958_v7 = vld [vmem:[%s8199_s6 + $0x208] sm:$0xff] }
  0x26   : > { %5897 = vmatmul.mubr.msk.f32.gmra.mrb[8].mxu0 %vm247_vm0, %v711_v27  ;;  %v957_v6 = vld [vmem:[%s8199_s6 + $0x200] sm:$0xff]  ;;  %v959_v8 = vld [vmem:[%s8199_s6 + $0x210] sm:$0xff]  ;;  %v960_v9 = vld [vmem:[%s8199_s6 + $0x218] sm:$0xff] }
  0x27   : > { %5830 = vmatmul.mubr.msk.f32.gmra.mrb[10].mxu1 %vm247_vm0, %v236_v26  ;;  %5899 = vmatprep.mubr.msk.f32.mxu0 %vm247_vm0, %v712_v29  ;;  %v961_v10 = vld [vmem:[%s8199_s6 + $0x220] sm:$0xff]  ;;  %v962_v11 = vld [vmem:[%s8199_s6 + $0x228] sm:$0xff]  ;;  %v963_v12 = vld [vmem:[%s8199_s6 + $0x230] sm:$0xff] }
  0x28   : > { %5832 = vmatprep.mubr.msk.f32.mxu1 %vm247_vm0, %v237_v28  ;;  %v964_v13 = vld [vmem:[%s8199_s6 + $0x238] sm:$0xff]  ;;  %v4730_v14 = vld [vmem:[%s9993_s3 + $0x80] sm:$0xff]  ;;  %v4731_v15 = vld [vmem:[%s9993_s3 + $0x88] sm:$0xff] }
  0x29   : > { %v7078_v16 = vpack.c.bf16 %v4731_v15, %v4730_v14  ;;  %v4732_v17 = vld [vmem:[%s9993_s3 + $0x90] sm:$0xff]  ;;  %v4733_v18 = vld [vmem:[%s9993_s3 + $0x98] sm:$0xff]  ;;  %v4890_v20 = vld [vmem:[%s9993_s3 + $0x580] sm:$0xff] }
  0x2a   : > { %5900 = vmatmul.mubr.msk.f32.gmra.mrb[10].mxu0 %vm247_vm0, %v713_v31  ;;  %v7082_v19 = vpack.c.bf16 %v4733_v18, %v4732_v17  ;;  %v4891_v21 = vld [vmem:[%s9993_s3 + $0x588] sm:$0xff]  ;;  %v4734_v23 = vld [vmem:[%s9993_s3 + $0xa0] sm:$0xff]  ;;  %v4892_v26 = vld [vmem:[%s9993_s3 + $0x590] sm:$0xff] }
  0x2b   : > { %5833 = vmatmul.mubr.msk.f32.gmra.mrb[12].mxu1 %vm247_vm0, %v238_v30  ;;  %5902 = vmatprep.mubr.msk.f32.mxu0 %vm247_vm0, %v714_v33  ;;  %v7430_v22 = vpack.c.bf16 %v4891_v21, %v4890_v20  ;;  %v4735_v24 = vld [vmem:[%s9993_s3 + $0xa8] sm:$0xff]  ;;  %v4893_v27 = vld [vmem:[%s9993_s3 + $0x598] sm:$0xff]  ;;  %v4736_v29 = vld [vmem:[%s9993_s3 + $0xb0] sm:$0xff] }
  0x2c   : > { %5835 = vmatprep.mubr.msk.f32.mxu1 %vm247_vm0, %v239_v32  ;;  %v7086_v25 = vpack.c.bf16 %v4735_v24, %v4734_v23  ;;  %v7434_v28 = vpack.c.bf16 %v4893_v27, %v4892_v26  ;;  %v4737_v30 = vld [vmem:[%s9993_s3 + $0xb8] sm:$0xff]  ;;  %v4894_v32 = vld [vmem:[%s9993_s3 + $0x5a0] sm:$0xff]  ;;  %v4895_v33 = vld [vmem:[%s9993_s3 + $0x5a8] sm:$0xff] }
  0x2d   : > { %7431 = vmatprep.subr.bf16.mxu0 %v7430_v22  ;;  %v7090_v31 = vpack.c.bf16 %v4737_v30, %v4736_v29 }
  0x2e   : > { %5903 = vmatmul.mubr.msk.f32.gmra.mrb[12].mxu0 %vm247_vm0, %v715_v35  ;;  %v4738_v35 = vld [vmem:[%s9993_s3 + $0xc0] sm:$0xff] }
  0x2f   : > { %5836 = vmatmul.mubr.msk.f32.gmra.mrb[14].mxu1 %vm247_vm0, %v240_v34  ;;  %5905 = vmatprep.mubr.msk.f32.mxu0 %vm247_vm0, %v716_v37  ;;  %v7438_v34 = vpack.c.bf16 %v4895_v33, %v4894_v32 }
  0x30   : > { %5838 = vmatprep.mubr.msk.f32.mxu1 %vm247_vm0, %v241_v36  ;;  %7433 = vmatpush3.bf16.msra.mxu0 %v7430_v22  ;;  %v4739_v36 = vld [vmem:[%s9993_s3 + $0xc8] sm:$0xff] }
  0x31   : > { %7435 = vmatprep.subr.bf16.mxu0 %v7434_v28  ;;  %v7094_v37 = vpack.c.bf16 %v4739_v36, %v4738_v35 }
  0x32   : > { %5906 = vmatmul.mubr.msk.f32.gmra.mrb[14].mxu0 %vm247_vm0, %v717_v39  ;;  %v4897_v39 = vld [vmem:[%s9993_s3 + $0x5b8] sm:$0xff] }
  0x33   : > { %5839 = vmatmul.mubr.msk.f32.gmra.mrb[16].mxu1 %vm247_vm0, %v242_v38  ;;  %v4896_v38 = vld [vmem:[%s9993_s3 + $0x5b0] sm:$0xff] }
  0x34   : > { %5849 = vmatprep.mubr.msk.f32.mxu1 %vm247_vm0, %v457_v40  ;;  %7437 = vmatpush3.bf16.msra.mxu0 %v7434_v28  ;;  %v7442_v40 = vpack.c.bf16 %v4897_v39, %v4896_v38 }
  0x35   : > { %7439 = vmatprep.subr.bf16.mxu0 %v7438_v34 }
  0x37   : > { %5850 = vmatmul.mubr.msk.f32.vlgmr.msra.gmra.mrb[18].mxu1 %vm247_vm0, %v458_v41  ;;  %v4740_v41 = vld [vmem:[%s9993_s3 + $0xd0] sm:$0xff] }
  0x38   : > { %7880 = vmatpush3.bf16.msra.mxu1 %v8180_v3  ;;  %5852 = vmatprep.mubr.msk.f32.mxu1 %vm247_vm0, %v459_v42  ;;  %v4741_v42 = vld [vmem:[%s9993_s3 + $0xd8] sm:$0xff] }
  0x39   : > { %7879 = vmatprep.subr.bf16.mxu1 %v8185_v5  ;;  %7441 = vmatpush3.bf16.msra.mxu0 %v7438_v34 }
  0x3a   : > { %7443 = vmatprep.subr.bf16.mxu0 %v7442_v40 }
  0x3b   : > { %5853 = vmatmul.mubr.msk.f32.gmra.mrb[20].mxu1 %vm247_vm0, %v460_v43  ;;  %v7098_v43 = vpack.c.bf16 %v4741_v42, %v4740_v41 }
  0x3c   : > { %5855 = vmatprep.mubr.msk.f32.mxu1 %vm247_vm0, %v461_v44  ;;  %7881 = vmatpush3.bf16.msra.mxu1 %v8185_v5  ;;  %v4898_v44 = vld [vmem:[%s9993_s3 + $0x5c0] sm:$0xff] }
  0x3d   : > { %7071 = vmatprep.subr.bf16.mxu1 %v8180_v3  ;;  %7445 = vmatpush3.bf16.msra.mxu0 %v7442_v40 }
  0x3f   : > { %5856 = vmatmul.mubr.msk.f32.gmra.mrb[22].mxu1 %vm247_vm0, %v462_v45  ;;  %v4899_v45 = vld [vmem:[%s9993_s3 + $0x5c8] sm:$0xff] }
  0x40   : > { %5858 = vmatprep.mubr.msk.f32.mxu1 %vm247_vm0, %v463_v46  ;;  %v7446_v46 = vpack.c.bf16 %v4899_v45, %v4898_v44 }
  0x42   : > { %7447 = vmatprep.subr.bf16.mxu0 %v7446_v46 }
  0x43   : > { %5859 = vmatmul.mubr.msk.f32.gmra.mrb[24].mxu1 %vm247_vm0, %v464_v47  ;;  %v4742_v47 = vld [vmem:[%s9993_s3 + $0xe0] sm:$0xff]  ;;  %7449 = vmatpush3.bf16.msra.mxu0 %v7446_v46 }
  0x44   : > { %5861 = vmatprep.mubr.msk.f32.mxu1 %vm247_vm0, %v465_v48  ;;  %v4743_v48 = vld [vmem:[%s9993_s3 + $0xe8] sm:$0xff] }
  0x47   : > { %5862 = vmatmul.mubr.msk.f32.gmra.mrb[26].mxu1 %vm247_vm0, %v466_v49  ;;  %v7102_v49 = vpack.c.bf16 %v4743_v48, %v4742_v47 }
  0x48   : > { %5864 = vmatprep.mubr.msk.f32.mxu1 %vm247_vm0, %v467_v50  ;;  %v4900_v50 = vld [vmem:[%s9993_s3 + $0x5d0] sm:$0xff] }
  0x4b   : > { %5865 = vmatmul.mubr.msk.f32.gmra.mrb[28].mxu1 %vm247_vm0, %v468_v51  ;;  %v4901_v51 = vld [vmem:[%s9993_s3 + $0x5d8] sm:$0xff] }
  0x4c   : > { %5867 = vmatprep.mubr.msk.f32.mxu1 %vm247_vm0, %v469_v52  ;;  %v7450_v52 = vpack.c.bf16 %v4901_v51, %v4900_v50 }
  0x4e   : > { %7451 = vmatprep.subr.bf16.mxu0 %v7450_v52 }
  0x4f   : > { %5868 = vmatmul.mubr.msk.f32.gmra.mrb[30].mxu1 %vm247_vm0, %v470_v53  ;;  %v4744_v53 = vld [vmem:[%s9993_s3 + $0xf0] sm:$0xff]  ;;  %7453 = vmatpush3.bf16.msra.mxu0 %v7450_v52 }
  0x50   : > { %5870 = vmatprep.mubr.msk.f32.mxu1 %vm247_vm0, %v471_v54  ;;  %v4745_v54 = vld [vmem:[%s9993_s3 + $0xf8] sm:$0xff] }
  0x53   : > { %5871 = vmatmul.mubr.msk.f32.gmra.mrb[32].mxu1 %vm247_vm0, %v472_v55  ;;  %v7106_v55 = vpack.c.bf16 %v4745_v54, %v4744_v53 }
  0x54   : > { %5873 = vmatprep.mubr.msk.f32.mxu1 %vm247_vm0, %v473_v56  ;;  %v4902_v56 = vld [vmem:[%s9993_s3 + $0x5e0] sm:$0xff] }
  0x57   : > { %5874 = vmatmul.mubr.msk.f32.gmra.mrb[34].mxu1 %vm247_vm0, %v474_v57  ;;  %v4903_v57 = vld [vmem:[%s9993_s3 + $0x5e8] sm:$0xff] }
  0x58   : > { %5908 = vmatprep.mubr.msk.f32.mxu1 %vm247_vm0, %v718_v58  ;;  %v7454_v58 = vpack.c.bf16 %v4903_v57, %v4902_v56 }
  0x5a   : > { %7455 = vmatprep.subr.bf16.mxu0 %v7454_v58 }
  0x5b   : > { %5909 = vmatmul.mubr.msk.f32.vlgmr.msra.gmra.mrb[36].mxu1 %vm247_vm0, %v719_v59  ;;  %v1261_v59 = vld [vmem:[%s9993_s3] sm:$0xff]  ;;  %7457 = vmatpush3.bf16.msra.mxu0 %v7454_v58 }
  0x5c   : > { %7073 = vmatpush3.bf16.msra.mxu1 %v8180_v3  ;;  %5919 = vmatprep.mubr.msk.f32.mxu1 %vm247_vm0, %v947_v60  ;;  %v954_v3 = vld [vmem:[%s8199_s6 + $0x1e8] sm:$0xff] }
  0x5d   : > { %7075 = vmatprep.subr.bf16.mxu1 %v8185_v5  ;;  %v1262_v60 = vld [vmem:[%s9993_s3 + $0x8] sm:$0xff] }
  0x60   : > { %7077 = vmatpush3.bf16.msra.mxu1 %v8185_v5  ;;  %v956_v5 = vld [vmem:[%s8199_s6 + $0x1f8] sm:$0xff]  ;;  %s5117_s6 = sshll.u32 %s9997_s19, 5 }
  0x61   : > { %7079 = vmatprep.subr.bf16.mxu1 %v7078_v16  ;;  %s224_s9 = scalar_lea.vmem %s9995_s5, %s5117_s6 }
  0x63   : > { %5920 = vmatmul.mubr.msk.f32.vlgmr.msra.gmra.mrb[38].mxu1 %vm247_vm0, %v948_v61  ;;  %v8455_v61 = vpack.c.bf16 %v1262_v60, %v1261_v59 }
  0x64   : > { %5922 = vmatprep.mubr.msk.f32.mxu1 %vm247_vm0, %v949_v62  ;;  %7081 = vmatpush3.bf16.msra.mxu1 %v7078_v16  ;;  %v4904_v62 = vld [vmem:[%s9993_s3 + $0x5f0] sm:$0xff] }
  0x65   : > { %7083 = vmatprep.subr.bf16.mxu1 %v7082_v19 }
  0x67   : > { %5923 = vmatmul.mubr.msk.f32.gmra.mrb[40].mxu1 %vm247_vm0, %v950_v63  ;;  %v4905_v63 = vld [vmem:[%s9993_s3 + $0x5f8] sm:$0xff] }
  0x68   : > { %5925 = vmatprep.mubr.msk.f32.mxu1 %vm247_vm0, %v951_v0  ;;  %7085 = vmatpush3.bf16.msra.mxu1 %v7082_v19  ;;  %v7458_v0 = vpack.c.bf16 %v4905_v63, %v4904_v62 }
  0x69   : > { %7087 = vmatprep.subr.bf16.mxu1 %v7086_v25 }
  0x6a   : > { %7459 = vmatprep.subr.bf16.mxu0 %v7458_v0 }
  0x6b   : > { %5926 = vmatmul.mubr.msk.f32.gmra.mrb[42].mxu1 %vm247_vm0, %v952_v1  ;;  %7461 = vmatpush3.bf16.msra.mxu0 %v7458_v0  ;;  %v4906_v1 = vld [vmem:[%s9993_s3 + $0x600] sm:$0xff] }
  0x6c   : > { %5928 = vmatprep.mubr.msk.f32.mxu1 %vm247_vm0, %v953_v2  ;;  %7089 = vmatpush3.bf16.msra.mxu1 %v7086_v25  ;;  %v4907_v2 = vld [vmem:[%s9993_s3 + $0x608] sm:$0xff] }
  0x6d   : > { %7091 = vmatprep.subr.bf16.mxu1 %v7090_v31 }
  0x6f   : > { %5929 = vmatmul.mubr.msk.f32.gmra.mrb[44].mxu1 %vm247_vm0, %v954_v3  ;;  %v8470_v3 = vpack.c.bf16 %v4907_v2, %v4906_v1 }
  0x70   : > { %5931 = vmatprep.mubr.msk.f32.mxu1 %vm247_vm0, %v955_v4  ;;  %7093 = vmatpush3.bf16.msra.mxu1 %v7090_v31 }
  0x71   : > { %7095 = vmatprep.subr.bf16.mxu1 %v7094_v37  ;;  %7463 = vmatprep.subr.bf16.mxu0 %v8470_v3 }
  0x73   : > { %5932 = vmatmul.mubr.msk.f32.gmra.mrb[46].mxu1 %vm247_vm0, %v956_v5 }
  0x74   : > { %5934 = vmatprep.mubr.msk.f32.mxu1 %vm247_vm0, %v957_v6  ;;  %7097 = vmatpush3.bf16.msra.mxu1 %v7094_v37 }
  0x75   : > { %7099 = vmatprep.subr.bf16.mxu1 %v7098_v43 }
  0x77   : > { %5935 = vmatmul.mubr.msk.f32.gmra.mrb[48].mxu1 %vm247_vm0, %v958_v7 }
  0x78   : > { %5937 = vmatprep.mubr.msk.f32.mxu1 %vm247_vm0, %v959_v8  ;;  %7101 = vmatpush3.bf16.msra.mxu1 %v7098_v43 }
  0x79   : > { %7103 = vmatprep.subr.bf16.mxu1 %v7102_v49 }
  0x7b   : > { %5938 = vmatmul.mubr.msk.f32.gmra.mrb[50].mxu1 %vm247_vm0, %v960_v9 }
  0x7c   : > { %5940 = vmatprep.mubr.msk.f32.mxu1 %vm247_vm0, %v961_v10  ;;  %7105 = vmatpush3.bf16.msra.mxu1 %v7102_v49 }
  0x7d   : > { %7107 = vmatprep.subr.bf16.mxu1 %v7106_v55 }
  0x7f   : > { %5941 = vmatmul.mubr.msk.f32.gmra.mrb[52].mxu1 %vm247_vm0, %v962_v11 }
  0x80   : > { %5943 = vmatprep.mubr.msk.f32.mxu1 %vm247_vm0, %v963_v12  ;;  %7109 = vmatpush3.bf16.msra.mxu1 %v7106_v55 }
  0x81   : > { %7111 = vmatprep.subr.bf16.mxu1 %v8455_v61 }
  0x83   : > { %5944 = vmatmul.mubr.msk.f32.gmra.mrb[54].mxu1 %vm247_vm0, %v964_v13 }
  0xe6   : > { %v5816_v4 = vpop.f32.mrb[0].mxu1 }
  0xe7   : > { %v368_v5 = vpop.f32.mrb[1].mxu1 }
  0xe9   : > { %v5886_v7 = vpop.f32.mrb[0].mxu0 }
  0xea   : > { %v5819_v6 = vpop.f32.mrb[2].mxu1  ;;  %v840_v9 = vpop.f32.mrb[1].mxu0 }
  0xeb   : > { %v378_v8 = vpop.f32.mrb[3].mxu1 }
  0xed   : > { %v5889_v11 = vpop.f32.mrb[2].mxu0 }
  0xee   : > { %v5822_v10 = vpop.f32.mrb[4].mxu1  ;;  %v850_v13 = vpop.f32.mrb[3].mxu0 }
  0xef   : > { %v388_v12 = vpop.f32.mrb[5].mxu1 }
  0xf1   : > { %v5892_v15 = vpop.f32.mrb[4].mxu0 }
  0xf2   : > { %v5825_v14 = vpop.f32.mrb[6].mxu1  ;;  %v860_v17 = vpop.f32.mrb[5].mxu0 }
  0xf3   : > { %v398_v16 = vpop.f32.mrb[7].mxu1 }
  0xf5   : > { %v5895_v19 = vpop.f32.mrb[6].mxu0 }
  0xf6   : > { %v5828_v18 = vpop.f32.mrb[8].mxu1  ;;  %v870_v21 = vpop.f32.mrb[7].mxu0 }
  0xf7   : > { %v408_v20 = vpop.f32.mrb[9].mxu1 }
  0xf9   : > { %v5898_v23 = vpop.f32.mrb[8].mxu0 }
  0xfa   : > { %v5831_v22 = vpop.f32.mrb[10].mxu1  ;;  %v880_v25 = vpop.f32.mrb[9].mxu0 }
  0xfb   : > { %v418_v24 = vpop.f32.mrb[11].mxu1 }
  0xfd   : > { %v5901_v27 = vpop.f32.mrb[10].mxu0 }
  0xfe   : > { %v5834_v26 = vpop.f32.mrb[12].mxu1  ;;  %v890_v29 = vpop.f32.mrb[11].mxu0 }
  0xff   : > { %v428_v28 = vpop.f32.mrb[13].mxu1 }
 0x101   : > { %v5904_v31 = vpop.f32.mrb[12].mxu0 }
 0x102   : > { %v5837_v30 = vpop.f32.mrb[14].mxu1  ;;  %v900_v33 = vpop.f32.mrb[13].mxu0 }
 0x103   : > { %v438_v32 = vpop.f32.mrb[15].mxu1 }
 0x105   : > { %v5907_v35 = vpop.f32.mrb[14].mxu0 }
 0x106   : > { %v5840_v34 = vpop.f32.mrb[16].mxu1  ;;  %v910_v37 = vpop.f32.mrb[15].mxu0 }
 0x107   : > { %v448_v36 = vpop.f32.mrb[17].mxu1 }
 0x10a   : > { %v5851_v38 = vpop.f32.mrb[18].mxu1 }
 0x10b   : > { %v685_v39 = vmax.f32 %v5816_v4, %v5851_v38  ;;  %v595_v40 = vpop.f32.mrb[19].mxu1 }
 0x10c   : > { %v684_v41 = vmax.f32 %v368_v5, %v595_v40 }
 0x10d   : > { %v930_v42 = vmax.f32 %v685_v39, %v5886_v7 }
 0x10e   : > { %v929_v43 = vmax.f32 %v684_v41, %v840_v9  ;;  %v5854_v44 = vpop.f32.mrb[20].mxu1 }
 0x10f   : > { %v687_v45 = vmax.f32 %v5819_v6, %v5854_v44  ;;  %v605_v46 = vpop.f32.mrb[21].mxu1 }
 0x110   : > { %v686_v47 = vmax.f32 %v378_v8, %v605_v46 }
 0x111   : > { %v932_v48 = vmax.f32 %v687_v45, %v5889_v11 }
 0x112   : > { %v931_v49 = vmax.f32 %v686_v47, %v850_v13  ;;  %v5857_v50 = vpop.f32.mrb[22].mxu1 }
 0x113   : > { %v689_v51 = vmax.f32 %v5822_v10, %v5857_v50  ;;  %v615_v52 = vpop.f32.mrb[23].mxu1 }
 0x114   : > { %v688_v53 = vmax.f32 %v388_v12, %v615_v52 }
 0x115   : > { %v8473_v54 = vmax.f32 %v689_v51, %v5892_v15 }
 0x116   : > { %v8475_v55 = vmax.f32 %v688_v53, %v860_v17  ;;  %v5860_v56 = vpop.f32.mrb[24].mxu1 }
 0x117   : > { %v691_v57 = vmax.f32 %v5825_v14, %v5860_v56  ;;  %v625_v58 = vpop.f32.mrb[25].mxu1 }
 0x118   : > { %v690_v59 = vmax.f32 %v398_v16, %v625_v58 }
 0x119   : > { %v8477_v60 = vmax.f32 %v691_v57, %v5895_v19 }
 0x11a   : > { %v8479_v62 = vmax.f32 %v690_v59, %v870_v21  ;;  %v5863_v63 = vpop.f32.mrb[26].mxu1 }
 0x11b   : > { %v693_v0 = vmax.f32 %v5828_v18, %v5863_v63  ;;  %v635_v1 = vpop.f32.mrb[27].mxu1 }
 0x11c   : > { %v692_v2 = vmax.f32 %v408_v20, %v635_v1 }
 0x11d   : > { %v8481_v4 = vmax.f32 %v693_v0, %v5898_v23 }
 0x11e   : > { %v8483_v5 = vmax.f32 %v692_v2, %v880_v25  ;;  %v5866_v6 = vpop.f32.mrb[28].mxu1  ;;  %v1263_v2 = vld [vmem:[%s9993_s3 + $0x10] sm:$0xff] }
 0x11f   : > { %v695_v7 = vmax.f32 %v5831_v22, %v5866_v6  ;;  %v645_v8 = vpop.f32.mrb[29].mxu1  ;;  %v1264_v6 = vld [vmem:[%s9993_s3 + $0x18] sm:$0xff] }
 0x120   : > { %v694_v9 = vmax.f32 %v418_v24, %v645_v8 }
 0x121   : > { %v8485_v10 = vmax.f32 %v695_v7, %v5901_v27 }
 0x122   : > { %v8487_v11 = vmax.f32 %v694_v9, %v890_v29  ;;  %v5869_v12 = vpop.f32.mrb[30].mxu1 }
 0x123   : > { %v697_v13 = vmax.f32 %v5834_v26, %v5869_v12  ;;  %v655_v14 = vpop.f32.mrb[31].mxu1 }
 0x124   : > { %v696_v15 = vmax.f32 %v428_v28, %v655_v14  ;;  %v7114_v14 = vpack.c.bf16 %v1264_v6, %v1263_v2 }
 0x125   : > { %v8489_v16 = vmax.f32 %v697_v13, %v5904_v31 }
 0x126   : > { %v8491_v17 = vmax.f32 %v696_v15, %v900_v33  ;;  %v5872_v18 = vpop.f32.mrb[32].mxu1 }
 0x127   : > { %v699_v19 = vmax.f32 %v5837_v30, %v5872_v18  ;;  %v665_v20 = vpop.f32.mrb[33].mxu1  ;;  %v8504_v30 = vld [vmem:[%s9992_s2] ss:$0 sm:$0xff] }
 0x128   : > { %v698_v21 = vmax.f32 %v438_v32, %v665_v20 }
 0x129   : > { %v8493_v23 = vmax.f32 %v699_v19, %v5907_v35  ;;  %v1265_v19 = vld [vmem:[%s9993_s3 + $0x20] sm:$0xff] }
 0x12a   : > { %v8495_v22 = vmax.f32 %v698_v21, %v910_v37  ;;  %v5875_v24 = vpop.f32.mrb[34].mxu1 }
 0x12b   : > { %v701_v25 = vmax.f32 %v5840_v34, %v5875_v24  ;;  %v675_v27 = vpop.f32.mrb[35].mxu1  ;;  %v4909_v24 = vld [vmem:[%s9993_s3 + $0x618] sm:$0xff] }
 0x12c   : > { %v700_v29 = vmax.f32 %v448_v36, %v675_v27 }
 0x12e   : > { %v5910_v38 = vpop.f32.mrb[36].mxu1 }
 0x12f   : > { %v8497_v26 = vmax.f32 %v701_v25, %v5910_v38  ;;  %v920_v28 = vpop.f32.mrb[37].mxu1 }
 0x130   : > { %v8499_v31 = vmax.f32 %v700_v29, %v920_v28 }
 0x136   : > { %v5921_v33 = vpop.f32.mrb[38].mxu1 }
 0x137   : > { %v1175_v32 = vmax.f32 %v930_v42, %v5921_v33  ;;  %v1085_v35 = vpop.f32.mrb[39].mxu1  ;;  %v1267_v33 = vld [vmem:[%s9993_s3 + $0x30] sm:$0xff] }
 0x138   : > { %v1174_v37 = vmax.f32 %v929_v43, %v1085_v35 }
 0x139   : > { %v1200_v39 = vadd.f32 %v8504_v30, %v1175_v32 }
 0x13a   : > { %v8508_v34 = vadd.f32 %v8504_v30, %v1174_v37  ;;  %v5924_v36 = vpop.f32.mrb[40].mxu1 }
 0x13b   : > { %v1218_v40 = vmax.f32 %v1200_v39, 0.0  ;;  %v1177_v41 = vmax.f32 %v932_v48, %v5924_v36  ;;  %v1095_v44 = vpop.f32.mrb[41].mxu1 }
 0x13c   : > { %v1217_v45 = vmax.f32 %v8508_v34, 0.0  ;;  %v1176_v46 = vmax.f32 %v931_v49, %v1095_v44  ;;  %v4918_v34 = vld [vmem:[%s9993_s3 + $0x660] sm:$0xff] }
 0x13d   : > { %1236 = vst [vmem:[#allocation2 + $0x8] sm:$0xff] %v1218_v40  ;;  %v8512_v47 = vadd.f32 %v8504_v30, %v1177_v41  ;;  %v4910_v40 = vld [vmem:[%s9993_s3 + $0x620] sm:$0xff]  ;;  %v4911_v41 = vld [vmem:[%s9993_s3 + $0x628] sm:$0xff] }
 0x13e   : > { %1235 = vst [vmem:[#allocation2] sm:$0xff] %v1217_v45  ;;  %v1201_v42 = vadd.f32 %v8504_v30, %v1176_v46  ;;  %v5927_v43 = vpop.f32.mrb[42].mxu1 }
 0x13f   : > { %v1220_v50 = vmax.f32 %v8512_v47, 0.0  ;;  %v1179_v51 = vmax.f32 %v8473_v54, %v5927_v43  ;;  %v1105_v52 = vpop.f32.mrb[43].mxu1  ;;  %v4752_v47 = vld [vmem:[%s9993_s3 + $0x130] sm:$0xff] }
 0x140   : > { %v1219_v48 = vmax.f32 %v1201_v42, 0.0  ;;  %v1178_v53 = vmax.f32 %v8475_v55, %v1105_v52 }
 0x141   : > { %1238 = vst [vmem:[#allocation2 + $0x18] sm:$0xff] %v1220_v50  ;;  %v1204_v49 = vadd.f32 %v8504_v30, %v1179_v51 }
 0x142   : > { %1237 = vst [vmem:[#allocation2 + $0x10] sm:$0xff] %v1219_v48  ;;  %v1203_v56 = vadd.f32 %v8504_v30, %v1178_v53  ;;  %v5930_v57 = vpop.f32.mrb[44].mxu1 }
 0x143   : > { %v8524_v58 = vmax.f32 %v1204_v49, 0.0  ;;  %v1181_v59 = vmax.f32 %v8477_v60, %v5930_v57  ;;  %v1115_v63 = vpop.f32.mrb[45].mxu1  ;;  %v7470_v49 = vpack.c.bf16 %v4911_v41, %v4910_v40  ;;  %v4912_v57 = vld [vmem:[%s9993_s3 + $0x630] sm:$0xff]  ;;  %v4746_v41 = vld [vmem:[%s9993_s3 + $0x100] sm:$0xff] }
 0x144   : > { %v1221_v0 = vmax.f32 %v1203_v56, 0.0  ;;  %v1180_v54 = vmax.f32 %v8479_v62, %v1115_v63 }
 0x145   : > { %1240 = vst [vmem:[#allocation2 + $0x28] sm:$0xff] %v8524_v58  ;;  %v1206_v55 = vadd.f32 %v8504_v30, %v1181_v59  ;;  %v1277_v1 = vld [vmem:[#allocation2 + $0x1] sm:$0xff]  ;;  %v4913_v59 = vld [vmem:[%s9993_s3 + $0x638] sm:$0xff] }
 0x146   : > { %1239 = vst [vmem:[#allocation2 + $0x20] sm:$0xff] %v1221_v0  ;;  %v1205_v60 = vadd.f32 %v8504_v30, %v1180_v54  ;;  %v5933_v7 = vpop.f32.mrb[46].mxu1  ;;  %5978 = vmatprep.mubr.f32.mxu1 %v1277_v1 }
 0x147   : > { %v1224_v8 = vmax.f32 %v1206_v55, 0.0  ;;  %v1183_v62 = vmax.f32 %v8481_v4, %v5933_v7  ;;  %v1125_v9 = vpop.f32.mrb[47].mxu1  ;;  %v1266_v4 = vld [vmem:[%s9993_s3 + $0x28] sm:$0xff]  ;;  %v7474_v7 = vpack.c.bf16 %v4913_v59, %v4912_v57 }
 0x148   : > { %v8538_v12 = vmax.f32 %v1205_v60, 0.0  ;;  %v1182_v13 = vmax.f32 %v8483_v5, %v1125_v9  ;;  %v4908_v5 = vld [vmem:[%s9993_s3 + $0x610] sm:$0xff]  ;;  %v7118_v39 = vpack.c.bf16 %v1266_v4, %v1265_v19 }
 0x149   : > { %1242 = vst [vmem:[#allocation2 + $0x38] sm:$0xff] %v1224_v8  ;;  %v1208_v15 = vadd.f32 %v8504_v30, %v1183_v62  ;;  %v1278_v18 = vld [vmem:[#allocation2 + $0xd] sm:$0xff]  ;;  %v1272_v62 = vld [vmem:[%s9993_s3 + $0x58] sm:$0xff] }
 0x14a   : > { %1241 = vst [vmem:[#allocation2 + $0x30] sm:$0xff] %v8538_v12  ;;  %v1207_v20 = vadd.f32 %v8504_v30, %v1182_v13  ;;  %v5936_v21 = vpop.f32.mrb[48].mxu1  ;;  %5979 = vmatmul.mubr.f32.vlgmr.msra.gmra.mrb[56].mxu1 %v1278_v18  ;;  %v4915_v18 = vld [vmem:[%s9993_s3 + $0x648] sm:$0xff] }
 0x14b   : > { %v8556_v25 = vmax.f32 %v1208_v15, 0.0  ;;  %v1185_v27 = vmax.f32 %v8485_v10, %v5936_v21  ;;  %7113 = vmatpush3.bf16.msra.mxu1 %v8455_v61  ;;  %v1135_v29 = vpop.f32.mrb[49].mxu1  ;;  %v7466_v10 = vpack.c.bf16 %v4909_v24, %v4908_v5  ;;  %v1268_v61 = vld [vmem:[%s9993_s3 + $0x38] sm:$0xff]  ;;  %v4914_v15 = vld [vmem:[%s9993_s3 + $0x640] sm:$0xff]  ;;  %v8701_v57 = vld [vmem:[#allocation2 + $0xc] sm:$0xff] }
 0x14c   : > { %v8560_v38 = vmax.f32 %v1207_v20, 0.0  ;;  %v1184_v28 = vmax.f32 %v8487_v11, %v1135_v29  ;;  %7115 = vmatprep.subr.bf16.mxu1 %v7114_v14  ;;  %v7122_v52 = vpack.c.bf16 %v1268_v61, %v1267_v33  ;;  %v7478_v29 = vpack.c.bf16 %v4915_v18, %v4914_v15  ;;  %v4917_v33 = vld [vmem:[%s9993_s3 + $0x658] sm:$0xff]  ;;  %v4754_v18 = vld [vmem:[%s9993_s3 + $0x140] sm:$0xff] }
 0x14d   : > { %1244 = vst [vmem:[#allocation2 + $0x48] sm:$0xff] %v8556_v25  ;;  %v1210_v32 = vadd.f32 %v8504_v30, %v1185_v27  ;;  %v1279_v35 = vld [vmem:[#allocation2 + $0x19] sm:$0xff]  ;;  %v1280_v37 = vld [vmem:[#allocation2 + $0x25] sm:$0xff] }
 0x14e   : > { %1243 = vst [vmem:[#allocation2 + $0x40] sm:$0xff] %v8560_v38  ;;  %v1209_v11 = vadd.f32 %v8504_v30, %v1184_v28  ;;  %v5939_v36 = vpop.f32.mrb[50].mxu1  ;;  %5981 = vmatprep.mubr.f32.mxu1 %v1279_v35  ;;  %6462 = vmatprep.mubr.f32.mxu0 %v1279_v35  ;;  %v4916_v28 = vld [vmem:[%s9993_s3 + $0x650] sm:$0xff]  ;;  %v1276_v61 = vld [vmem:[%s9993_s3 + $0x78] sm:$0xff] }
 0x14f   : > { %v8579_v44 = vmax.f32 %v1210_v32, 0.0  ;;  %v1187_v46 = vmax.f32 %v8489_v16, %v5939_v36  ;;  %7117 = vmatpush3.bf16.msra.mxu1 %v7114_v14  ;;  %v1145_v42 = vpop.f32.mrb[51].mxu1  ;;  %6463 = vmatmul.mubr.f32.vlgmr.msra.gmra.mrb[16].mxu0 %v1280_v37  ;;  %v1269_v16 = vld [vmem:[%s9993_s3 + $0x40] sm:$0xff] }
 0x150   : > { %v1227_v43 = vmax.f32 %v1209_v11, 0.0  ;;  %v1186_v51 = vmax.f32 %v8491_v17, %v1145_v42  ;;  %5982 = vmatmul.mubr.f32.gmra.mrb[58].mxu1 %v1280_v37  ;;  %7465 = vmatpush3.bf16.msra.mxu0 %v8470_v3  ;;  %v1270_v17 = vld [vmem:[%s9993_s3 + $0x48] sm:$0xff]  ;;  %v8680_v42 = vld [vmem:[#allocation2 + $0x1a] sm:$0xff] }
 0x151   : > { %1246 = vst [vmem:[#allocation2 + $0x58] sm:$0xff] %v8579_v44  ;;  %v1212_v48 = vadd.f32 %v8504_v30, %v1187_v46  ;;  %7119 = vmatprep.subr.bf16.mxu1 %v7118_v39  ;;  %v1281_v53 = vld [vmem:[#allocation2 + $0x31] sm:$0xff]  ;;  %7467 = vmatprep.subr.bf16.mxu0 %v7466_v10  ;;  %v7126_v2 = vpack.c.bf16 %v1270_v17, %v1269_v16  ;;  %v4747_v46 = vld [vmem:[%s9993_s3 + $0x108] sm:$0xff]  ;;  %v4922_v16 = vld [vmem:[%s9993_s3 + $0x680] sm:$0xff] }
 0x152   : > { %1245 = vst [vmem:[#allocation2 + $0x50] sm:$0xff] %v1227_v43  ;;  %v8593_v3 = vadd.f32 %v8504_v30, %v1186_v51  ;;  %v5942_v56 = vpop.f32.mrb[52].mxu1  ;;  %5984 = vmatprep.mubr.f32.mxu1 %v1281_v53  ;;  %6465 = vmatprep.mubr.f32.mxu0 %v1281_v53  ;;  %v4920_v43 = vld [vmem:[%s9993_s3 + $0x670] sm:$0xff]  ;;  %v4921_v51 = vld [vmem:[%s9993_s3 + $0x678] sm:$0xff]  ;;  %v4923_v17 = vld [vmem:[%s9993_s3 + $0x688] sm:$0xff] }
 0x153   : > { %v1230_v63 = vmax.f32 %v1212_v48, 0.0  ;;  %v1189_v0 = vmax.f32 %v8493_v23, %v5942_v56  ;;  %7121 = vmatpush3.bf16.msra.mxu1 %v7118_v39  ;;  %v1155_v54 = vpop.f32.mrb[53].mxu1  ;;  %v7482_v39 = vpack.c.bf16 %v4917_v33, %v4916_v28  ;;  %v7490_v48 = vpack.c.bf16 %v4921_v51, %v4920_v43  ;;  %v4748_v53 = vld [vmem:[%s9993_s3 + $0x110] sm:$0xff]  ;;  %v4933_v51 = vld [vmem:[%s9993_s3 + $0x6d8] sm:$0xff] }
 0x154   : > { %v1229_v55 = vmax.f32 %v8593_v3, 0.0  ;;  %v1188_v1 = vmax.f32 %v8495_v22, %v1155_v54  ;;  %7469 = vmatpush3.bf16.msra.mxu0 %v7466_v10  ;;  %7123 = vmatprep.subr.bf16.mxu1 %v7122_v52  ;;  %v1271_v22 = vld [vmem:[%s9993_s3 + $0x50] sm:$0xff]  ;;  %v7494_v59 = vpack.c.bf16 %v4923_v17, %v4922_v16  ;;  %v4934_v17 = vld [vmem:[%s9993_s3 + $0x6e0] sm:$0xff] }
 0x155   : > { %1248 = vst [vmem:[#allocation2 + $0x68] sm:$0xff] %v1230_v63  ;;  %v8605_v6 = vadd.f32 %v8504_v30, %v1189_v0  ;;  %v1282_v60 = vld [vmem:[#allocation2 + $0x3d] sm:$0xff]  ;;  %7471 = vmatprep.subr.bf16.mxu0 %v7470_v49  ;;  %v7130_v24 = vpack.c.bf16 %v1272_v62, %v1271_v22  ;;  %v1275_v10 = vld [vmem:[%s9993_s3 + $0x70] sm:$0xff]  ;;  %v4751_v0 = vld [vmem:[%s9993_s3 + $0x128] sm:$0xff] }
 0x156   : > { %1247 = vst [vmem:[#allocation2 + $0x60] sm:$0xff] %v1229_v55  ;;  %v8610_v23 = vadd.f32 %v8504_v30, %v1188_v1  ;;  %v5945_v8 = vpop.f32.mrb[54].mxu1  ;;  %5985 = vmatmul.mubr.f32.gmra.mrb[60].mxu1 %v1282_v60  ;;  %6466 = vmatmul.mubr.f32.gmra.mrb[18].mxu0 %v1282_v60  ;;  %v7138_v11 = vpack.c.bf16 %v1276_v61, %v1275_v10  ;;  %v4750_v63 = vld [vmem:[%s9993_s3 + $0x120] sm:$0xff]  ;;  %v4924_v54 = vld [vmem:[%s9993_s3 + $0x690] sm:$0xff]  ;;  %v4925_v1 = vld [vmem:[%s9993_s3 + $0x698] sm:$0xff] }
 0x157   : > { %v1232_v9 = vmax.f32 %v8605_v6, 0.0  ;;  %v1191_v13 = vmax.f32 %v8497_v26, %v5945_v8  ;;  %7125 = vmatpush3.bf16.msra.mxu1 %v7122_v52  ;;  %v1165_v14 = vpop.f32.mrb[55].mxu1  ;;  %v1273_v26 = vld [vmem:[%s9993_s3 + $0x60] sm:$0xff]  ;;  %v7142_v52 = vpack.c.bf16 %v4747_v46, %v4746_v41  ;;  %v4927_v62 = vld [vmem:[%s9993_s3 + $0x6a8] sm:$0xff]  ;;  %v4756_v33 = vld [vmem:[%s9993_s3 + $0x150] sm:$0xff] }
 0x158   : > { %v1231_v19 = vmax.f32 %v8610_v23, 0.0  ;;  %v1190_v20 = vmax.f32 %v8499_v31, %v1165_v14  ;;  %7473 = vmatpush3.bf16.msra.mxu0 %v7470_v49  ;;  %7127 = vmatprep.subr.bf16.mxu1 %v7126_v2  ;;  %v1274_v31 = vld [vmem:[%s9993_s3 + $0x68] sm:$0xff]  ;;  %v4749_v49 = vld [vmem:[%s9993_s3 + $0x118] sm:$0xff]  ;;  %v4926_v22 = vld [vmem:[%s9993_s3 + $0x6a0] sm:$0xff] }
 0x159   : > { %1250 = vst [vmem:[#allocation2 + $0x78] sm:$0xff] %v1232_v9  ;;  %v1216_v21 = vadd.f32 %v8504_v30, %v1191_v13  ;;  %v8634_v4 = vld [vmem:[#allocation2 + $0x49] sm:$0xff]  ;;  %7475 = vmatprep.subr.bf16.mxu0 %v7474_v7  ;;  %v8636_v5 = vld [vmem:[#allocation2 + $0x55] sm:$0xff]  ;;  %v7146_v56 = vpack.c.bf16 %v4749_v49, %v4748_v53  ;;  %v4930_v10 = vld [vmem:[%s9993_s3 + $0x6c0] sm:$0xff] }
 0x15a   : > { %1249 = vst [vmem:[#allocation2 + $0x70] sm:$0xff] %v1231_v19  ;;  %v1215_v27 = vadd.f32 %v8504_v30, %v1190_v20  ;;  %5987 = vmatprep.mubr.f32.mxu1 %v8634_v4  ;;  %6468 = vmatprep.mubr.f32.mxu0 %v8634_v4  ;;  %v7134_v30 = vpack.c.bf16 %v1274_v31, %v1273_v26  ;;  %v8718_v60 = vld [vmem:[#allocation2 + $0x24] sm:$0xff]  ;;  %v8737_v13 = vld [vmem:[#allocation2 + $0x32] sm:$0xff]  ;;  %v8740_v15 = vld [vmem:[#allocation2 + $0x3c] sm:$0xff] }
 0x15b   : > { %v1234_v32 = vmax.f32 %v1216_v21, 0.0  ;;  %7129 = vmatpush3.bf16.msra.mxu1 %v7126_v2  ;;  %6469 = vmatmul.mubr.f32.gmra.mrb[20].mxu0 %v8636_v5  ;;  %v7150_v2 = vpack.c.bf16 %v4751_v0, %v4750_v63  ;;  %v8728_v8 = vld [vmem:[#allocation2 + $0x26] sm:$0xff]  ;;  %v7502_v26 = vpack.c.bf16 %v4927_v62, %v4926_v22  ;;  %v8750_v21 = vld [vmem:[#allocation2 + $0x3e] sm:$0xff]  ;;  %v8762_v28 = vld [vmem:[#allocation2 + $0x54] sm:$0xff] }
 0x15c   : > { %v1233_v35 = vmax.f32 %v1215_v27, 0.0  ;;  %5988 = vmatmul.mubr.f32.gmra.mrb[62].mxu1 %v8636_v5  ;;  %7477 = vmatpush3.bf16.msra.mxu0 %v7474_v7  ;;  %v7498_v7 = vpack.c.bf16 %v4925_v1, %v4924_v54  ;;  %v4755_v20 = vld [vmem:[%s9993_s3 + $0x148] sm:$0xff]  ;;  %v4929_v31 = vld [vmem:[%s9993_s3 + $0x6b8] sm:$0xff]  ;;  %v4932_v43 = vld [vmem:[%s9993_s3 + $0x6d0] sm:$0xff] }
 0x15d   : > { %1252 = vst [vmem:[#allocation2 + $0x88] sm:$0xff] %v1234_v32  ;;  %6022 = vmatprep.mubr.f32.mxu1 %v1217_v45  ;;  %7131 = vmatprep.subr.bf16.mxu1 %v7130_v24  ;;  %v8656_v37 = vld [vmem:[#allocation2 + $0x61] sm:$0xff]  ;;  %v8759_v27 = vld [vmem:[#allocation2 + $0x4a] sm:$0xff]  ;;  %v4757_v32 = vld [vmem:[%s9993_s3 + $0x158] sm:$0xff]  ;;  %v7514_v16 = vpack.c.bf16 %v4933_v51, %v4932_v43 }
 0x15e   : > { %1251 = vst [vmem:[#allocation2 + $0x80] sm:$0xff] %v1233_v35  ;;  %6471 = vmatprep.mubr.f32.mxu0 %v8656_v37  ;;  %7479 = vmatprep.subr.bf16.mxu0 %v7478_v29  ;;  %v4919_v45 = vld [vmem:[%s9993_s3 + $0x668] sm:$0xff]  ;;  %v4760_v53 = vld [vmem:[%s9993_s3 + $0x170] sm:$0xff]  ;;  %v4761_v49 = vld [vmem:[%s9993_s3 + $0x178] sm:$0xff] }
 0x15f   : > { %7133 = vmatpush3.bf16.msra.mxu1 %v7130_v24  ;;  %v7486_v40 = vpack.c.bf16 %v4919_v45, %v4918_v34  ;;  %v4928_v24 = vld [vmem:[%s9993_s3 + $0x6b0] sm:$0xff]  ;;  %v1512_v35 = vld [vmem:[#allocation2 + $0x2] sm:$0xff]  ;;  %v7162_v45 = vpack.c.bf16 %v4757_v32, %v4756_v33  ;;  %v4941_v33 = vld [vmem:[%s9993_s3 + $0x718] sm:$0xff] }
 0x160   : > { %7481 = vmatpush3.bf16.msra.mxu0 %v7478_v29  ;;  %7135 = vmatprep.subr.bf16.mxu1 %v7134_v30  ;;  %v7158_v29 = vpack.c.bf16 %v4755_v20, %v4754_v18  ;;  %v4931_v61 = vld [vmem:[%s9993_s3 + $0x6c8] sm:$0xff]  ;;  %v4762_v63 = vld [vmem:[%s9993_s3 + $0x180] sm:$0xff]  ;;  %v4936_v1 = vld [vmem:[%s9993_s3 + $0x6f0] sm:$0xff] }
 0x161   : > { %v8671_v36 = vld [vmem:[#allocation2 + $0x6d] sm:$0xff]  ;;  %7483 = vmatprep.subr.bf16.mxu0 %v7482_v39  ;;  %v8780_v34 = vld [vmem:[#allocation2 + $0x62] sm:$0xff]  ;;  %v7510_v41 = vpack.c.bf16 %v4931_v61, %v4930_v10 }
 0x162   : > { %6472 = vmatmul.mubr.f32.gmra.mrb[22].mxu0 %v8671_v36  ;;  %v8789_v46 = vld [vmem:[#allocation2 + $0x6e] sm:$0xff]  ;;  %v4938_v62 = vld [vmem:[%s9993_s3 + $0x700] sm:$0xff] }
 0x163   : > { %7137 = vmatpush3.bf16.msra.mxu1 %v7134_v30  ;;  %6506 = vmatprep.mubr.f32.mxu0 %v8680_v42  ;;  %v7506_v30 = vpack.c.bf16 %v4929_v31, %v4928_v24  ;;  %v4763_v0 = vld [vmem:[%s9993_s3 + $0x188] sm:$0xff]  ;;  %v4942_v61 = vld [vmem:[%s9993_s3 + $0x720] sm:$0xff]  ;;  %v4980_v3 = vld [vmem:[%s9993_s3 + $0x850] sm:$0xff] }
 0x164   : > { %7485 = vmatpush3.bf16.msra.mxu0 %v7482_v39  ;;  %7139 = vmatprep.subr.bf16.mxu1 %v7138_v11  ;;  %v8771_v39 = vld [vmem:[#allocation2 + $0x56] sm:$0xff]  ;;  %v8837_v20 = vld [vmem:[#allocation2 + $0xe] sm:$0xff]  ;;  %v4966_v23 = vld [vmem:[%s9993_s3 + $0x7e0] sm:$0xff] }
 0x165   : > { %7487 = vmatprep.subr.bf16.mxu0 %v7486_v40  ;;  %v4767_v24 = vld [vmem:[%s9993_s3 + $0x1a8] sm:$0xff]  ;;  %v4982_v6 = vld [vmem:[%s9993_s3 + $0x860] sm:$0xff] }
 0x166   : > { %v8861_v10 = vld [vmem:[#allocation2 + $0x27] sm:$0xff] }
 0x167   : > { %7141 = vmatpush3.bf16.msra.mxu1 %v7138_v11  ;;  %v4758_v11 = vld [vmem:[%s9993_s3 + $0x160] sm:$0xff]  ;;  %v4771_v43 = vld [vmem:[%s9993_s3 + $0x1c8] sm:$0xff] }
 0x168   : > { %7489 = vmatpush3.bf16.msra.mxu0 %v7486_v40  ;;  %7143 = vmatprep.subr.bf16.mxu1 %v7142_v52  ;;  %v4759_v40 = vld [vmem:[%s9993_s3 + $0x168] sm:$0xff] }
 0x169   : > { %7491 = vmatprep.subr.bf16.mxu0 %v7490_v48 }
 0x16a   : > { %6023 = vmatmul.mubr.f32.vlgmr.msra.gmra.mrb[56].mxu1 %v8701_v57 }
 0x16b   : > { %6025 = vmatprep.mubr.f32.mxu1 %v1220_v50  ;;  %7145 = vmatpush3.bf16.msra.mxu1 %v7142_v52  ;;  %v4753_v50 = vld [vmem:[%s9993_s3 + $0x138] sm:$0xff] }
 0x16c   : > { %7493 = vmatpush3.bf16.msra.mxu0 %v7490_v48  ;;  %7147 = vmatprep.subr.bf16.mxu1 %v7146_v56  ;;  %v7154_v14 = vpack.c.bf16 %v4753_v50, %v4752_v47  ;;  %v8798_v52 = vld [vmem:[#allocation2 + $0x1b] sm:$0xff]  ;;  %v7166_v48 = vpack.c.bf16 %v4759_v40, %v4758_v11  ;;  %v7174_v47 = vpack.c.bf16 %v4763_v0, %v4762_v63  ;;  %v4764_v50 = vld [vmem:[%s9993_s3 + $0x190] sm:$0xff]  ;;  %v1650_v63 = vld [vmem:[#allocation2 + $0x3] sm:$0xff] }
 0x16d   : > { %7495 = vmatprep.subr.bf16.mxu0 %v7494_v59  ;;  %v8870_v11 = vld [vmem:[#allocation2 + $0x33] sm:$0xff] }
 0x16e   : > { %6026 = vmatmul.mubr.f32.gmra.mrb[58].mxu1 %v8718_v60 }
 0x16f   : > { %6028 = vmatprep.mubr.f32.mxu1 %v8538_v12  ;;  %7149 = vmatpush3.bf16.msra.mxu1 %v7146_v56  ;;  %v4935_v56 = vld [vmem:[%s9993_s3 + $0x6e8] sm:$0xff] }
 0x170   : > { %6507 = vmatmul.mubr.f32.vlgmr.msra.gmra.mrb[16].mxu0 %v8728_v8  ;;  %7151 = vmatprep.subr.bf16.mxu1 %v7150_v2  ;;  %v7518_v54 = vpack.c.bf16 %v4935_v56, %v4934_v17  ;;  %v4772_v56 = vld [vmem:[%s9993_s3 + $0x1d0] sm:$0xff] }
 0x171   : > { %6509 = vmatprep.mubr.f32.mxu0 %v8737_v13  ;;  %7497 = vmatpush3.bf16.msra.mxu0 %v7494_v59  ;;  %v7170_v59 = vpack.c.bf16 %v4761_v49, %v4760_v53  ;;  %v4944_v53 = vld [vmem:[%s9993_s3 + $0x730] sm:$0xff]  ;;  %v4945_v49 = vld [vmem:[%s9993_s3 + $0x738] sm:$0xff] }
 0x172   : > { %6029 = vmatmul.mubr.f32.gmra.mrb[60].mxu1 %v8740_v15  ;;  %7499 = vmatprep.subr.bf16.mxu0 %v7498_v7  ;;  %v7538_v0 = vpack.c.bf16 %v4945_v49, %v4944_v53  ;;  %v4780_v53 = vld [vmem:[%s9993_s3 + $0x210] sm:$0xff]  ;;  %v4781_v49 = vld [vmem:[%s9993_s3 + $0x218] sm:$0xff] }
 0x173   : > { %6031 = vmatprep.mubr.f32.mxu1 %v8556_v25  ;;  %7153 = vmatpush3.bf16.msra.mxu1 %v7150_v2  ;;  %v4937_v2 = vld [vmem:[%s9993_s3 + $0x6f8] sm:$0xff] }
 0x174   : > { %6510 = vmatmul.mubr.f32.gmra.mrb[18].mxu0 %v8750_v21  ;;  %7155 = vmatprep.subr.bf16.mxu1 %v7154_v14  ;;  %v7522_v22 = vpack.c.bf16 %v4937_v2, %v4936_v1  ;;  %v4946_v1 = vld [vmem:[%s9993_s3 + $0x740] sm:$0xff]  ;;  %v4947_v2 = vld [vmem:[%s9993_s3 + $0x748] sm:$0xff] }
 0x175   : > { %6512 = vmatprep.mubr.f32.mxu0 %v8759_v27  ;;  %7501 = vmatpush3.bf16.msra.mxu0 %v7498_v7  ;;  %v4765_v7 = vld [vmem:[%s9993_s3 + $0x198] sm:$0xff] }
 0x176   : > { %6032 = vmatmul.mubr.f32.gmra.mrb[62].mxu1 %v8762_v28  ;;  %7503 = vmatprep.subr.bf16.mxu0 %v7502_v26  ;;  %v7178_v18 = vpack.c.bf16 %v4765_v7, %v4764_v50  ;;  %v4774_v7 = vld [vmem:[%s9993_s3 + $0x1e0] sm:$0xff] }
 0x177   : > { %7157 = vmatpush3.bf16.msra.mxu1 %v7154_v14  ;;  %6066 = vmatprep.mubr.f32.mxu1 %v1512_v35  ;;  %v4939_v14 = vld [vmem:[%s9993_s3 + $0x708] sm:$0xff]  ;;  %v4768_v35 = vld [vmem:[%s9993_s3 + $0x1b0] sm:$0xff] }
 0x178   : > { %6513 = vmatmul.mubr.f32.gmra.mrb[20].mxu0 %v8771_v39  ;;  %7159 = vmatprep.subr.bf16.mxu1 %v7158_v29  ;;  %v7526_v31 = vpack.c.bf16 %v4939_v14, %v4938_v62  ;;  %v7542_v62 = vpack.c.bf16 %v4947_v2, %v4946_v1  ;;  %v8918_v14 = vld [vmem:[#allocation2 + $0x6f] sm:$0xff]  ;;  %v4782_v1 = vld [vmem:[%s9993_s3 + $0x220] sm:$0xff] }
 0x179   : > { %6515 = vmatprep.mubr.f32.mxu0 %v8780_v34  ;;  %7505 = vmatpush3.bf16.msra.mxu0 %v7502_v26  ;;  %v4766_v26 = vld [vmem:[%s9993_s3 + $0x1a0] sm:$0xff]  ;;  %v4783_v2 = vld [vmem:[%s9993_s3 + $0x228] sm:$0xff] }
 0x17a   : > { %7507 = vmatprep.subr.bf16.mxu0 %v7506_v30  ;;  %v7182_v32 = vpack.c.bf16 %v4767_v24, %v4766_v26  ;;  %v4949_v26 = vld [vmem:[%s9993_s3 + $0x758] sm:$0xff] }
 0x17b   : > { %7161 = vmatpush3.bf16.msra.mxu1 %v7158_v29  ;;  %v4940_v29 = vld [vmem:[%s9993_s3 + $0x710] sm:$0xff]  ;;  %v8927_v24 = vld [vmem:[#allocation2 + $0x1c] sm:$0xff] }
 0x17c   : > { %6516 = vmatmul.mubr.f32.gmra.mrb[22].mxu0 %v8789_v46  ;;  %7163 = vmatprep.subr.bf16.mxu1 %v7162_v45 }
 0x17d   : > { %7509 = vmatpush3.bf16.msra.mxu0 %v7506_v30  ;;  %6550 = vmatprep.mubr.f32.mxu0 %v8798_v52  ;;  %v7530_v30 = vpack.c.bf16 %v4941_v33, %v4940_v29  ;;  %v4776_v29 = vld [vmem:[%s9993_s3 + $0x1f0] sm:$0xff]  ;;  %v4777_v33 = vld [vmem:[%s9993_s3 + $0x1f8] sm:$0xff] }
 0x17e   : > { %7511 = vmatprep.subr.bf16.mxu0 %v7510_v41 }
 0x17f   : > { %7165 = vmatpush3.bf16.msra.mxu1 %v7162_v45  ;;  %v4943_v45 = vld [vmem:[%s9993_s3 + $0x728] sm:$0xff] }
 0x180   : > { %7167 = vmatprep.subr.bf16.mxu1 %v7166_v48  ;;  %v7534_v51 = vpack.c.bf16 %v4943_v45, %v4942_v61  ;;  %v4778_v61 = vld [vmem:[%s9993_s3 + $0x200] sm:$0xff]  ;;  %v4779_v45 = vld [vmem:[%s9993_s3 + $0x208] sm:$0xff] }
 0x181   : > { %7513 = vmatpush3.bf16.msra.mxu0 %v7510_v41  ;;  %v4770_v41 = vld [vmem:[%s9993_s3 + $0x1c0] sm:$0xff] }
 0x182   : > { %7515 = vmatprep.subr.bf16.mxu0 %v7514_v16  ;;  %v7190_v17 = vpack.c.bf16 %v4771_v43, %v4770_v41  ;;  %v4952_v41 = vld [vmem:[%s9993_s3 + $0x770] sm:$0xff]  ;;  %v4953_v43 = vld [vmem:[%s9993_s3 + $0x778] sm:$0xff] }
 0x183   : > { %7169 = vmatpush3.bf16.msra.mxu1 %v7166_v48  ;;  %v8881_v48 = vld [vmem:[#allocation2 + $0x3f] sm:$0xff] }
 0x184   : > { %7171 = vmatprep.subr.bf16.mxu1 %v7170_v59 }
 0x185   : > { %7517 = vmatpush3.bf16.msra.mxu0 %v7514_v16  ;;  %v8890_v16 = vld [vmem:[#allocation2 + $0x4b] sm:$0xff] }
 0x186   : > { %7519 = vmatprep.subr.bf16.mxu0 %v7518_v54 }
 0x187   : > { %7173 = vmatpush3.bf16.msra.mxu1 %v7170_v59  ;;  %v4773_v59 = vld [vmem:[%s9993_s3 + $0x1d8] sm:$0xff] }
 0x188   : > { %7175 = vmatprep.subr.bf16.mxu1 %v7174_v47  ;;  %v7194_v50 = vpack.c.bf16 %v4773_v59, %v4772_v56  ;;  %v4954_v56 = vld [vmem:[%s9993_s3 + $0x780] sm:$0xff]  ;;  %v4955_v59 = vld [vmem:[%s9993_s3 + $0x788] sm:$0xff] }
 0x189   : > { %7521 = vmatpush3.bf16.msra.mxu0 %v7518_v54  ;;  %v8900_v54 = vld [vmem:[#allocation2 + $0x57] sm:$0xff] }
 0x18a   : > { %6067 = vmatmul.mubr.f32.vlgmr.msra.gmra.mrb[56].mxu1 %v8837_v20  ;;  %7523 = vmatprep.subr.bf16.mxu0 %v7522_v22 }
 0x18b   : > { %6069 = vmatprep.mubr.f32.mxu1 %v8680_v42  ;;  %7177 = vmatpush3.bf16.msra.mxu1 %v7174_v47  ;;  %v4769_v42 = vld [vmem:[%s9993_s3 + $0x1b8] sm:$0xff]  ;;  %v8909_v47 = vld [vmem:[#allocation2 + $0x63] sm:$0xff] }
 0x18c   : > { %7179 = vmatprep.subr.bf16.mxu1 %v7178_v18  ;;  %v7186_v40 = vpack.c.bf16 %v4769_v42, %v4768_v35  ;;  %v4950_v35 = vld [vmem:[%s9993_s3 + $0x760] sm:$0xff]  ;;  %v4951_v42 = vld [vmem:[%s9993_s3 + $0x768] sm:$0xff] }
 0x18d   : > { %7525 = vmatpush3.bf16.msra.mxu0 %v7522_v22  ;;  %v4775_v22 = vld [vmem:[%s9993_s3 + $0x1e8] sm:$0xff] }
 0x18e   : > { %6070 = vmatmul.mubr.f32.gmra.mrb[58].mxu1 %v8728_v8  ;;  %7527 = vmatprep.subr.bf16.mxu0 %v7526_v31 }
 0x18f   : > { %6072 = vmatprep.mubr.f32.mxu1 %v8737_v13  ;;  %7181 = vmatpush3.bf16.msra.mxu1 %v7178_v18  ;;  %v4948_v18 = vld [vmem:[%s9993_s3 + $0x750] sm:$0xff] }
 0x190   : > { %6551 = vmatmul.mubr.f32.vlgmr.msra.gmra.mrb[16].mxu0 %v8861_v10  ;;  %7183 = vmatprep.subr.bf16.mxu1 %v7182_v32 }
 0x191   : > { %6553 = vmatprep.mubr.f32.mxu0 %v8870_v11  ;;  %7529 = vmatpush3.bf16.msra.mxu0 %v7526_v31  ;;  %v7198_v31 = vpack.c.bf16 %v4775_v22, %v4774_v7  ;;  %v4956_v7 = vld [vmem:[%s9993_s3 + $0x790] sm:$0xff]  ;;  %v4957_v22 = vld [vmem:[%s9993_s3 + $0x798] sm:$0xff] }
 0x192   : > { %6073 = vmatmul.mubr.f32.gmra.mrb[60].mxu1 %v8750_v21  ;;  %7531 = vmatprep.subr.bf16.mxu0 %v7530_v30 }
 0x193   : > { %6075 = vmatprep.mubr.f32.mxu1 %v8759_v27  ;;  %7185 = vmatpush3.bf16.msra.mxu1 %v7182_v32  ;;  %v7546_v32 = vpack.c.bf16 %v4949_v26, %v4948_v18  ;;  %v4784_v18 = vld [vmem:[%s9993_s3 + $0x230] sm:$0xff]  ;;  %v7562_v26 = vpack.c.bf16 %v4957_v22, %v4956_v7  ;;  %v4965_v22 = vld [vmem:[%s9993_s3 + $0x7d8] sm:$0xff] }
 0x194   : > { %6554 = vmatmul.mubr.f32.gmra.mrb[18].mxu0 %v8881_v48  ;;  %7187 = vmatprep.subr.bf16.mxu1 %v7186_v40  ;;  %v4964_v7 = vld [vmem:[%s9993_s3 + $0x7d0] sm:$0xff] }
 0x195   : > { %6556 = vmatprep.mubr.f32.mxu0 %v8890_v16  ;;  %7533 = vmatpush3.bf16.msra.mxu0 %v7530_v30  ;;  %v7202_v30 = vpack.c.bf16 %v4777_v33, %v4776_v29  ;;  %v4959_v29 = vld [vmem:[%s9993_s3 + $0x7a8] sm:$0xff]  ;;  %v8997_v33 = vld [vmem:[#allocation2 + $0x34] sm:$0xff] }
 0x196   : > { %6076 = vmatmul.mubr.f32.gmra.mrb[62].mxu1 %v8771_v39  ;;  %7535 = vmatprep.subr.bf16.mxu0 %v7534_v51 }
 0x197   : > { %7189 = vmatpush3.bf16.msra.mxu1 %v7186_v40  ;;  %6110 = vmatprep.mubr.f32.mxu1 %v1650_v63  ;;  %v7550_v40 = vpack.c.bf16 %v4951_v42, %v4950_v35  ;;  %v7210_v63 = vpack.c.bf16 %v4781_v49, %v4780_v53  ;;  %v4786_v35 = vld [vmem:[%s9993_s3 + $0x240] sm:$0xff]  ;;  %v4787_v42 = vld [vmem:[%s9993_s3 + $0x248] sm:$0xff] }
 0x198   : > { %6557 = vmatmul.mubr.f32.gmra.mrb[20].mxu0 %v8900_v54  ;;  %7191 = vmatprep.subr.bf16.mxu1 %v7190_v17  ;;  %v1788_v53 = vld [vmem:[#allocation2 + $0x4] sm:$0xff] }
 0x199   : > { %6559 = vmatprep.mubr.f32.mxu0 %v8909_v47  ;;  %7537 = vmatpush3.bf16.msra.mxu0 %v7534_v51  ;;  %v7206_v51 = vpack.c.bf16 %v4779_v45, %v4778_v61  ;;  %v4960_v61 = vld [vmem:[%s9993_s3 + $0x7b0] sm:$0xff]  ;;  %v4961_v45 = vld [vmem:[%s9993_s3 + $0x7b8] sm:$0xff] }
 0x19a   : > { %7539 = vmatprep.subr.bf16.mxu0 %v7538_v0  ;;  %v7570_v49 = vpack.c.bf16 %v4961_v45, %v4960_v61  ;;  %v4796_v45 = vld [vmem:[%s9993_s3 + $0x290] sm:$0xff] }
 0x19b   : > { %7193 = vmatpush3.bf16.msra.mxu1 %v7190_v17  ;;  %v7554_v17 = vpack.c.bf16 %v4953_v43, %v4952_v41  ;;  %v7222_v41 = vpack.c.bf16 %v4787_v42, %v4786_v35  ;;  %v4788_v43 = vld [vmem:[%s9993_s3 + $0x250] sm:$0xff] }
 0x19c   : > { %6560 = vmatmul.mubr.f32.gmra.mrb[22].mxu0 %v8918_v14  ;;  %7195 = vmatprep.subr.bf16.mxu1 %v7194_v50  ;;  %v4968_v42 = vld [vmem:[%s9993_s3 + $0x7f0] sm:$0xff] }
 0x19d   : > { %7541 = vmatpush3.bf16.msra.mxu0 %v7538_v0  ;;  %6594 = vmatprep.mubr.f32.mxu0 %v8927_v24  ;;  %v8966_v0 = vld [vmem:[#allocation2 + $0xf] sm:$0xff] }
 0x19e   : > { %7543 = vmatprep.subr.bf16.mxu0 %v7542_v62 }
 0x19f   : > { %7197 = vmatpush3.bf16.msra.mxu1 %v7194_v50  ;;  %v7558_v50 = vpack.c.bf16 %v4955_v59, %v4954_v56  ;;  %v4963_v56 = vld [vmem:[%s9993_s3 + $0x7c8] sm:$0xff] }
 0x1a0   : > { %7199 = vmatprep.subr.bf16.mxu1 %v7198_v31  ;;  %v9032_v59 = vld [vmem:[#allocation2 + $0x64] sm:$0xff] }
 0x1a1   : > { %7545 = vmatpush3.bf16.msra.mxu0 %v7542_v62  ;;  %v7214_v62 = vpack.c.bf16 %v4783_v2, %v4782_v1  ;;  %v4790_v1 = vld [vmem:[%s9993_s3 + $0x260] sm:$0xff]  ;;  %v4791_v2 = vld [vmem:[%s9993_s3 + $0x268] sm:$0xff] }
 0x1a2   : > { %7547 = vmatprep.subr.bf16.mxu0 %v7546_v32 }
 0x1a3   : > { %7201 = vmatpush3.bf16.msra.mxu1 %v7198_v31  ;;  %v4958_v31 = vld [vmem:[%s9993_s3 + $0x7a0] sm:$0xff] }
 0x1a4   : > { %7203 = vmatprep.subr.bf16.mxu1 %v7202_v30 }
 0x1a5   : > { %7549 = vmatpush3.bf16.msra.mxu0 %v7546_v32 }
 0x1a6   : > { %7551 = vmatprep.subr.bf16.mxu0 %v7550_v40 }
 0x1a7   : > { %7205 = vmatpush3.bf16.msra.mxu1 %v7202_v30  ;;  %v7566_v30 = vpack.c.bf16 %v4959_v29, %v4958_v31  ;;  %v4794_v29 = vld [vmem:[%s9993_s3 + $0x280] sm:$0xff] }
 0x1a8   : > { %7207 = vmatprep.subr.bf16.mxu1 %v7206_v51 }
 0x1a9   : > { %7553 = vmatpush3.bf16.msra.mxu0 %v7550_v40  ;;  %v9015_v40 = vld [vmem:[#allocation2 + $0x4c] sm:$0xff] }
 0x1aa   : > { %6111 = vmatmul.mubr.f32.vlgmr.msra.gmra.mrb[56].mxu1 %v8966_v0  ;;  %7555 = vmatprep.subr.bf16.mxu0 %v7554_v17 }
 0x1ab   : > { %6113 = vmatprep.mubr.f32.mxu1 %v8798_v52  ;;  %7209 = vmatpush3.bf16.msra.mxu1 %v7206_v51  ;;  %v4785_v52 = vld [vmem:[%s9993_s3 + $0x238] sm:$0xff] }
 0x1ac   : > { %7211 = vmatprep.subr.bf16.mxu1 %v7210_v63  ;;  %v7218_v32 = vpack.c.bf16 %v4785_v52, %v4784_v18  ;;  %v4789_v51 = vld [vmem:[%s9993_s3 + $0x258] sm:$0xff]  ;;  %v4792_v18 = vld [vmem:[%s9993_s3 + $0x270] sm:$0xff] }
 0x1ad   : > { %7557 = vmatpush3.bf16.msra.mxu0 %v7554_v17  ;;  %v4962_v17 = vld [vmem:[%s9993_s3 + $0x7c0] sm:$0xff]  ;;  %v4793_v52 = vld [vmem:[%s9993_s3 + $0x278] sm:$0xff] }
 0x1ae   : > { %6114 = vmatmul.mubr.f32.gmra.mrb[58].mxu1 %v8861_v10  ;;  %7559 = vmatprep.subr.bf16.mxu0 %v7558_v50  ;;  %v7234_v31 = vpack.c.bf16 %v4793_v52, %v4792_v18  ;;  %v4974_v18 = vld [vmem:[%s9993_s3 + $0x820] sm:$0xff]  ;;  %v4975_v52 = vld [vmem:[%s9993_s3 + $0x828] sm:$0xff] }
 0x1af   : > { %6116 = vmatprep.mubr.f32.mxu1 %v8870_v11  ;;  %7213 = vmatpush3.bf16.msra.mxu1 %v7210_v63  ;;  %v7226_v63 = vpack.c.bf16 %v4789_v51, %v4788_v43  ;;  %v4970_v51 = vld [vmem:[%s9993_s3 + $0x800] sm:$0xff] }
 0x1b0   : > { %6595 = vmatmul.mubr.f32.vlgmr.msra.gmra.mrb[16].mxu0 %v8524_v58  ;;  %7215 = vmatprep.subr.bf16.mxu1 %v7214_v62 }
 0x1b1   : > { %6597 = vmatprep.mubr.f32.mxu0 %v8997_v33  ;;  %7561 = vmatpush3.bf16.msra.mxu0 %v7558_v50  ;;  %v7574_v50 = vpack.c.bf16 %v4963_v56, %v4962_v17  ;;  %v9086_v17 = vld [vmem:[#allocation2 + $0x10] sm:$0xff]  ;;  %v4798_v56 = vld [vmem:[%s9993_s3 + $0x2a0] sm:$0xff] }
 0x1b2   : > { %6117 = vmatmul.mubr.f32.gmra.mrb[60].mxu1 %v8881_v48  ;;  %7563 = vmatprep.subr.bf16.mxu0 %v7562_v26 }
 0x1b3   : > { %6119 = vmatprep.mubr.f32.mxu1 %v8890_v16  ;;  %7217 = vmatpush3.bf16.msra.mxu1 %v7214_v62  ;;  %v7230_v62 = vpack.c.bf16 %v4791_v2, %v4790_v1  ;;  %v4972_v2 = vld [vmem:[%s9993_s3 + $0x810] sm:$0xff] }
 0x1b4   : > { %6598 = vmatmul.mubr.f32.gmra.mrb[18].mxu0 %v8560_v38  ;;  %7219 = vmatprep.subr.bf16.mxu1 %v7218_v32 }
 0x1b5   : > { %6600 = vmatprep.mubr.f32.mxu0 %v9015_v40  ;;  %7565 = vmatpush3.bf16.msra.mxu0 %v7562_v26  ;;  %v7578_v26 = vpack.c.bf16 %v4965_v22, %v4964_v7  ;;  %v4800_v22 = vld [vmem:[%s9993_s3 + $0x2b0] sm:$0xff] }
 0x1b6   : > { %6120 = vmatmul.mubr.f32.gmra.mrb[62].mxu1 %v8900_v54  ;;  %7567 = vmatprep.subr.bf16.mxu0 %v7566_v30 }
 0x1b7   : > { %7221 = vmatpush3.bf16.msra.mxu1 %v7218_v32  ;;  %6154 = vmatprep.mubr.f32.mxu1 %v1788_v53  ;;  %v4795_v32 = vld [vmem:[%s9993_s3 + $0x288] sm:$0xff] }
 0x1b8   : > { %6601 = vmatmul.mubr.f32.gmra.mrb[20].mxu0 %v8579_v44  ;;  %7223 = vmatprep.subr.bf16.mxu1 %v7222_v41  ;;  %v7238_v61 = vpack.c.bf16 %v4795_v32, %v4794_v29  ;;  %v4971_v53 = vld [vmem:[%s9993_s3 + $0x808] sm:$0xff]  ;;  %v4805_v32 = vld [vmem:[%s9993_s3 + $0x2d8] sm:$0xff] }
 0x1b9   : > { %6603 = vmatprep.mubr.f32.mxu0 %v9032_v59  ;;  %7569 = vmatpush3.bf16.msra.mxu0 %v7566_v30  ;;  %v4969_v30 = vld [vmem:[%s9993_s3 + $0x7f8] sm:$0xff]  ;;  %v7590_v1 = vpack.c.bf16 %v4971_v53, %v4970_v51  ;;  %v4808_v51 = vld [vmem:[%s9993_s3 + $0x2f0] sm:$0xff] }
 0x1ba   : > { %7571 = vmatprep.subr.bf16.mxu0 %v7570_v49  ;;  %v7586_v43 = vpack.c.bf16 %v4969_v30, %v4968_v42  ;;  %v4979_v42 = vld [vmem:[%s9993_s3 + $0x848] sm:$0xff]  ;;  %v4809_v53 = vld [vmem:[%s9993_s3 + $0x2f8] sm:$0xff] }
 0x1bb   : > { %7225 = vmatpush3.bf16.msra.mxu1 %v7222_v41  ;;  %v4797_v41 = vld [vmem:[%s9993_s3 + $0x298] sm:$0xff]  ;;  %v9150_v30 = vld [vmem:[#allocation2 + $0x6c] sm:$0xff] }
 0x1bc   : > { %6604 = vmatmul.mubr.f32.gmra.mrb[22].mxu0 %v1231_v19  ;;  %7227 = vmatprep.subr.bf16.mxu1 %v7226_v63  ;;  %v4967_v19 = vld [vmem:[%s9993_s3 + $0x7e8] sm:$0xff] }
 0x1bd   : > { %7573 = vmatpush3.bf16.msra.mxu0 %v7570_v49  ;;  %6638 = vmatprep.mubr.f32.mxu0 %v8718_v60  ;;  %v7582_v35 = vpack.c.bf16 %v4967_v19, %v4966_v23  ;;  %v7242_v49 = vpack.c.bf16 %v4797_v41, %v4796_v45  ;;  %v4803_v23 = vld [vmem:[%s9993_s3 + $0x2c8] sm:$0xff]  ;;  %v7598_v19 = vpack.c.bf16 %v4975_v52, %v4974_v18  ;;  %v4986_v52 = vld [vmem:[%s9993_s3 + $0x880] sm:$0xff] }
 0x1be   : > { %7575 = vmatprep.subr.bf16.mxu0 %v7574_v50 }
 0x1bf   : > { %7229 = vmatpush3.bf16.msra.mxu1 %v7226_v63  ;;  %v4799_v63 = vld [vmem:[%s9993_s3 + $0x2a8] sm:$0xff] }
 0x1c0   : > { %7231 = vmatprep.subr.bf16.mxu1 %v7230_v62  ;;  %v7246_v7 = vpack.c.bf16 %v4799_v63, %v4798_v56  ;;  %v7266_v56 = vpack.c.bf16 %v4809_v53, %v4808_v51  ;;  %v4810_v63 = vld [vmem:[%s9993_s3 + $0x300] sm:$0xff]  ;;  %v4992_v53 = vld [vmem:[%s9993_s3 + $0x8b0] sm:$0xff] }
 0x1c1   : > { %7577 = vmatpush3.bf16.msra.mxu0 %v7574_v50  ;;  %v4973_v50 = vld [vmem:[%s9993_s3 + $0x818] sm:$0xff] }
 0x1c2   : > { %7579 = vmatprep.subr.bf16.mxu0 %v7578_v26 }
 0x1c3   : > { %7233 = vmatpush3.bf16.msra.mxu1 %v7230_v62  ;;  %v7594_v62 = vpack.c.bf16 %v4973_v50, %v4972_v2  ;;  %v4984_v50 = vld [vmem:[%s9993_s3 + $0x870] sm:$0xff] }
 0x1c4   : > { %7235 = vmatprep.subr.bf16.mxu1 %v7234_v31 }
 0x1c5   : > { %7581 = vmatpush3.bf16.msra.mxu0 %v7578_v26 }
 0x1c6   : > { %7583 = vmatprep.subr.bf16.mxu0 %v7582_v35 }
 0x1c7   : > { %7237 = vmatpush3.bf16.msra.mxu1 %v7234_v31  ;;  %v4977_v31 = vld [vmem:[%s9993_s3 + $0x838] sm:$0xff] }
 0x1c8   : > { %7239 = vmatprep.subr.bf16.mxu1 %v7238_v61 }
 0x1c9   : > { %7585 = vmatpush3.bf16.msra.mxu0 %v7582_v35 }
 0x1ca   : > { %6155 = vmatmul.mubr.f32.vlgmr.msra.gmra.mrb[56].mxu1 %v9086_v17  ;;  %7587 = vmatprep.subr.bf16.mxu0 %v7586_v43 }
 0x1cb   : > { %6157 = vmatprep.mubr.f32.mxu1 %v8927_v24  ;;  %7241 = vmatpush3.bf16.msra.mxu1 %v7238_v61  ;;  %v4801_v24 = vld [vmem:[%s9993_s3 + $0x2b8] sm:$0xff]  ;;  %v4807_v61 = vld [vmem:[%s9993_s3 + $0x2e8] sm:$0xff] }
 0x1cc   : > { %7243 = vmatprep.subr.bf16.mxu1 %v7242_v49  ;;  %v7250_v26 = vpack.c.bf16 %v4801_v24, %v4800_v22  ;;  %v4812_v24 = vld [vmem:[%s9993_s3 + $0x310] sm:$0xff] }
 0x1cd   : > { %7589 = vmatpush3.bf16.msra.mxu0 %v7586_v43  ;;  %v9167_v43 = vld [vmem:[#allocation2 + $0x25] sm:$0xff] }
 0x1ce   : > { %6158 = vmatmul.mubr.f32.gmra.mrb[58].mxu1 %v8524_v58  ;;  %7591 = vmatprep.subr.bf16.mxu0 %v7590_v1  ;;  %v4802_v58 = vld [vmem:[%s9993_s3 + $0x2c0] sm:$0xff] }
 0x1cf   : > { %6160 = vmatprep.mubr.f32.mxu1 %v8997_v33  ;;  %7245 = vmatpush3.bf16.msra.mxu1 %v7242_v49  ;;  %v7254_v29 = vpack.c.bf16 %v4803_v23, %v4802_v58  ;;  %v4814_v23 = vld [vmem:[%s9993_s3 + $0x320] sm:$0xff] }
 0x1d0   : > { %6639 = vmatmul.mubr.f32.vlgmr.msra.gmra.mrb[16].mxu0 %v8538_v12  ;;  %7247 = vmatprep.subr.bf16.mxu1 %v7246_v7  ;;  %v4976_v12 = vld [vmem:[%s9993_s3 + $0x830] sm:$0xff] }
 0x1d1   : > { %6641 = vmatprep.mubr.f32.mxu0 %v8740_v15  ;;  %7593 = vmatpush3.bf16.msra.mxu0 %v7590_v1  ;;  %v7602_v35 = vpack.c.bf16 %v4977_v31, %v4976_v12  ;;  %v4811_v1 = vld [vmem:[%s9993_s3 + $0x308] sm:$0xff]  ;;  %v9212_v12 = vld [vmem:[#allocation2 + $0x18] sm:$0xff] }
 0x1d2   : > { %6161 = vmatmul.mubr.f32.gmra.mrb[60].mxu1 %v8560_v38  ;;  %7595 = vmatprep.subr.bf16.mxu0 %v7594_v62  ;;  %v4804_v38 = vld [vmem:[%s9993_s3 + $0x2d0] sm:$0xff]  ;;  %v7270_v22 = vpack.c.bf16 %v4811_v1, %v4810_v63  ;;  %v4995_v1 = vld [vmem:[%s9993_s3 + $0x8c8] sm:$0xff] }
 0x1d3   : > { %6163 = vmatprep.mubr.f32.mxu1 %v9015_v40  ;;  %7249 = vmatpush3.bf16.msra.mxu1 %v7246_v7  ;;  %v4985_v7 = vld [vmem:[%s9993_s3 + $0x878] sm:$0xff] }
 0x1d4   : > { %6642 = vmatmul.mubr.f32.gmra.mrb[18].mxu0 %v8556_v25  ;;  %7251 = vmatprep.subr.bf16.mxu1 %v7250_v26  ;;  %v4978_v25 = vld [vmem:[%s9993_s3 + $0x840] sm:$0xff]  ;;  %v7618_v18 = vpack.c.bf16 %v4985_v7, %v4984_v50  ;;  %v4823_v7 = vld [vmem:[%s9993_s3 + $0x368] sm:$0xff] }
 0x1d5   : > { %6644 = vmatprep.mubr.f32.mxu0 %v8762_v28  ;;  %7597 = vmatpush3.bf16.msra.mxu0 %v7594_v62  ;;  %v7606_v45 = vpack.c.bf16 %v4979_v42, %v4978_v25  ;;  %v4813_v62 = vld [vmem:[%s9993_s3 + $0x318] sm:$0xff]  ;;  %v9228_v25 = vld [vmem:[#allocation2 + $0x30] sm:$0xff]  ;;  %v4822_v50 = vld [vmem:[%s9993_s3 + $0x360] sm:$0xff] }
 0x1d6   : > { %6164 = vmatmul.mubr.f32.gmra.mrb[62].mxu1 %v8579_v44  ;;  %7599 = vmatprep.subr.bf16.mxu0 %v7598_v19  ;;  %v7258_v44 = vpack.c.bf16 %v4805_v32, %v4804_v38  ;;  %v7274_v58 = vpack.c.bf16 %v4813_v62, %v4812_v24  ;;  %v4989_v38 = vld [vmem:[%s9993_s3 + $0x898] sm:$0xff]  ;;  %v7294_v62 = vpack.c.bf16 %v4823_v7, %v4822_v50  ;;  %v4834_v50 = vld [vmem:[%s9993_s3 + $0x3c0] sm:$0xff]  ;;  %v4835_v7 = vld [vmem:[%s9993_s3 + $0x3c8] sm:$0xff] }
 0x1d7   : > { %7253 = vmatpush3.bf16.msra.mxu1 %v7250_v26  ;;  %6198 = vmatprep.mubr.f32.mxu1 %v8701_v57  ;;  %v4806_v57 = vld [vmem:[%s9993_s3 + $0x2e0] sm:$0xff]  ;;  %v4987_v26 = vld [vmem:[%s9993_s3 + $0x888] sm:$0xff] }
 0x1d8   : > { %6645 = vmatmul.mubr.f32.gmra.mrb[20].mxu0 %v1229_v55  ;;  %7255 = vmatprep.subr.bf16.mxu1 %v7254_v29  ;;  %v4981_v55 = vld [vmem:[%s9993_s3 + $0x858] sm:$0xff]  ;;  %v7262_v41 = vpack.c.bf16 %v4807_v61, %v4806_v57  ;;  %v7622_v31 = vpack.c.bf16 %v4987_v26, %v4986_v52  ;;  %v4991_v57 = vld [vmem:[%s9993_s3 + $0x8a8] sm:$0xff] }
 0x1d9   : > { %6647 = vmatprep.mubr.f32.mxu0 %v9150_v30  ;;  %7601 = vmatpush3.bf16.msra.mxu0 %v7598_v19  ;;  %v7610_v49 = vpack.c.bf16 %v4981_v55, %v4980_v3  ;;  %v4815_v19 = vld [vmem:[%s9993_s3 + $0x328] sm:$0xff]  ;;  %v9238_v61 = vld [vmem:[#allocation2 + $0x31] sm:$0xff]  ;;  %v9241_v3 = vld [vmem:[#allocation2 + $0x3d] sm:$0xff] }
 0x1da   : > { %7603 = vmatprep.subr.bf16.mxu0 %v7602_v35  ;;  %v7278_v32 = vpack.c.bf16 %v4815_v19, %v4814_v23  ;;  %v4819_v55 = vld [vmem:[%s9993_s3 + $0x348] sm:$0xff]  ;;  %v9285_v24 = vld [vmem:[#allocation2 + $0x79] sm:$0xff] }
 0x1db   : > { %7257 = vmatpush3.bf16.msra.mxu1 %v7254_v29  ;;  %v4988_v29 = vld [vmem:[%s9993_s3 + $0x890] sm:$0xff]  ;;  %v4825_v52 = vld [vmem:[%s9993_s3 + $0x378] sm:$0xff]  ;;  %v4999_v23 = vld [vmem:[%s9993_s3 + $0x8e8] sm:$0xff] }
 0x1dc   : > { %6648 = vmatmul.mubr.f32.gmra.mrb[22].mxu0 %v1232_v9  ;;  %7259 = vmatprep.subr.bf16.mxu1 %v7258_v44  ;;  %v4983_v9 = vld [vmem:[%s9993_s3 + $0x868] sm:$0xff]  ;;  %v7626_v42 = vpack.c.bf16 %v4989_v38, %v4988_v29  ;;  %v4826_v19 = vld [vmem:[%s9993_s3 + $0x380] sm:$0xff]  ;;  %v5000_v38 = vld [vmem:[%s9993_s3 + $0x8f0] sm:$0xff] }
 0x1dd   : > { %7605 = vmatpush3.bf16.msra.mxu0 %v7602_v35  ;;  %6682 = vmatprep.mubr.f32.mxu0 %v9167_v43  ;;  %v7614_v2 = vpack.c.bf16 %v4983_v9, %v4982_v6  ;;  %v4816_v35 = vld [vmem:[%s9993_s3 + $0x330] sm:$0xff]  ;;  %v4821_v9 = vld [vmem:[%s9993_s3 + $0x358] sm:$0xff] }
 0x1de   : > { %7607 = vmatprep.subr.bf16.mxu0 %v7606_v45 }
 0x1df   : > { %7261 = vmatpush3.bf16.msra.mxu1 %v7258_v44  ;;  %v4990_v44 = vld [vmem:[%s9993_s3 + $0x8a0] sm:$0xff] }
 0x1e0   : > { %7263 = vmatprep.subr.bf16.mxu1 %v7262_v41  ;;  %v7630_v51 = vpack.c.bf16 %v4991_v57, %v4990_v44  ;;  %v5002_v57 = vld [vmem:[%s9993_s3 + $0x900] sm:$0xff] }
 0x1e1   : > { %7609 = vmatpush3.bf16.msra.mxu0 %v7606_v45 }
 0x1e2   : > { %7611 = vmatprep.subr.bf16.mxu0 %v7610_v49 }
 0x1e3   : > { %7265 = vmatpush3.bf16.msra.mxu1 %v7262_v41  ;;  %v9250_v41 = vld [vmem:[#allocation2 + $0x48] sm:$0xff] }
 0x1e4   : > { %7267 = vmatprep.subr.bf16.mxu1 %v7266_v56 }
 0x1e5   : > { %7613 = vmatpush3.bf16.msra.mxu0 %v7610_v49  ;;  %v4993_v49 = vld [vmem:[%s9993_s3 + $0x8b8] sm:$0xff] }
 0x1e6   : > { %7615 = vmatprep.subr.bf16.mxu0 %v7614_v2  ;;  %v7634_v63 = vpack.c.bf16 %v4993_v49, %v4992_v53  ;;  %v8091_v53 = vld [vmem:[#allocation2 + $0x19] sm:$0xff] }
 0x1e7   : > { %7269 = vmatpush3.bf16.msra.mxu1 %v7266_v56  ;;  %v9268_v56 = vld [vmem:[#allocation2 + $0x60] sm:$0xff] }
 0x1e8   : > { %7271 = vmatprep.subr.bf16.mxu1 %v7270_v22 }
 0x1e9   : > { %7617 = vmatpush3.bf16.msra.mxu0 %v7614_v2 }
 0x1ea   : > { %6199 = vmatmul.mubr.f32.vlgmr.msra.gmra.mrb[56].mxu1 %v9212_v12  ;;  %7619 = vmatprep.subr.bf16.mxu0 %v7618_v18 }
 0x1eb   : > { %6201 = vmatprep.mubr.f32.mxu1 %v8718_v60  ;;  %7273 = vmatpush3.bf16.msra.mxu1 %v7270_v22  ;;  %v4817_v60 = vld [vmem:[%s9993_s3 + $0x338] sm:$0xff] }
 0x1ec   : > { %7275 = vmatprep.subr.bf16.mxu1 %v7274_v58  ;;  %v7282_v45 = vpack.c.bf16 %v4817_v60, %v4816_v35  ;;  %v4828_v60 = vld [vmem:[%s9993_s3 + $0x390] sm:$0xff] }
 0x1ed   : > { %7621 = vmatpush3.bf16.msra.mxu0 %v7618_v18  ;;  %v4824_v18 = vld [vmem:[%s9993_s3 + $0x370] sm:$0xff] }
 0x1ee   : > { %6202 = vmatmul.mubr.f32.gmra.mrb[58].mxu1 %v9228_v25  ;;  %7623 = vmatprep.subr.bf16.mxu0 %v7622_v31 }
 0x1ef   : > { %6204 = vmatprep.mubr.f32.mxu1 %v8740_v15  ;;  %7277 = vmatpush3.bf16.msra.mxu1 %v7274_v58  ;;  %v4818_v15 = vld [vmem:[%s9993_s3 + $0x340] sm:$0xff] }
 0x1f0   : > { %6683 = vmatmul.mubr.f32.vlgmr.msra.gmra.mrb[16].mxu0 %v9238_v61  ;;  %7279 = vmatprep.subr.bf16.mxu1 %v7278_v32  ;;  %v7286_v6 = vpack.c.bf16 %v4819_v55, %v4818_v15  ;;  %v4998_v58 = vld [vmem:[%s9993_s3 + $0x8e0] sm:$0xff] }
 0x1f1   : > { %6685 = vmatprep.mubr.f32.mxu0 %v9241_v3  ;;  %7625 = vmatpush3.bf16.msra.mxu0 %v7622_v31  ;;  %v4827_v31 = vld [vmem:[%s9993_s3 + $0x388] sm:$0xff]  ;;  %v7646_v29 = vpack.c.bf16 %v4999_v23, %v4998_v58  ;;  %v4830_v55 = vld [vmem:[%s9993_s3 + $0x3a0] sm:$0xff] }
 0x1f2   : > { %6205 = vmatmul.mubr.f32.gmra.mrb[60].mxu1 %v9250_v41  ;;  %7627 = vmatprep.subr.bf16.mxu0 %v7626_v42  ;;  %v7302_v35 = vpack.c.bf16 %v4827_v31, %v4826_v19  ;;  %v9404_v31 = vld [vmem:[#allocation2 + $0x7a] sm:$0xff] }
 0x1f3   : > { %6207 = vmatprep.mubr.f32.mxu1 %v8762_v28  ;;  %7281 = vmatpush3.bf16.msra.mxu1 %v7278_v32  ;;  %v4820_v28 = vld [vmem:[%s9993_s3 + $0x350] sm:$0xff]  ;;  %v5001_v32 = vld [vmem:[%s9993_s3 + $0x8f8] sm:$0xff] }
 0x1f4   : > { %6686 = vmatmul.mubr.f32.gmra.mrb[18].mxu0 %v8634_v4  ;;  %7283 = vmatprep.subr.bf16.mxu1 %v7282_v45  ;;  %v8090_v4 = vld [vmem:[#allocation2 + $0xd] sm:$0xff]  ;;  %v7290_v2 = vpack.c.bf16 %v4821_v9, %v4820_v28  ;;  %v7650_v44 = vpack.c.bf16 %v5001_v32, %v5000_v38  ;;  %v5005_v28 = vld [vmem:[%s9993_s3 + $0x918] sm:$0xff] }
 0x1f5   : > { %6688 = vmatprep.mubr.f32.mxu0 %v8636_v5  ;;  %7629 = vmatpush3.bf16.msra.mxu0 %v7626_v42  ;;  %v4994_v5 = vld [vmem:[%s9993_s3 + $0x8c0] sm:$0xff]  ;;  %v4829_v42 = vld [vmem:[%s9993_s3 + $0x398] sm:$0xff]  ;;  %v4840_v38 = vld [vmem:[%s9993_s3 + $0x3f0] sm:$0xff] }
 0x1f6   : > { %6208 = vmatmul.mubr.f32.gmra.mrb[62].mxu1 %v9268_v56  ;;  %7631 = vmatprep.subr.bf16.mxu0 %v7630_v51  ;;  %v7638_v22 = vpack.c.bf16 %v4995_v1, %v4994_v5  ;;  %v7306_v15 = vpack.c.bf16 %v4829_v42, %v4828_v60  ;;  %v5006_v5 = vld [vmem:[%s9993_s3 + $0x920] sm:$0xff]  ;;  %v5007_v1 = vld [vmem:[%s9993_s3 + $0x928] sm:$0xff]  ;;  %v4841_v32 = vld [vmem:[%s9993_s3 + $0x3f8] sm:$0xff] }
 0x1f7   : > { %7285 = vmatpush3.bf16.msra.mxu1 %v7282_v45  ;;  %6242 = vmatprep.mubr.f32.mxu1 %v8090_v4  ;;  %v5003_v45 = vld [vmem:[%s9993_s3 + $0x908] sm:$0xff]  ;;  %v5014_v60 = vld [vmem:[%s9993_s3 + $0x960] sm:$0xff] }
 0x1f8   : > { %6689 = vmatmul.mubr.f32.gmra.mrb[20].mxu0 %v8656_v37  ;;  %7287 = vmatprep.subr.bf16.mxu1 %v7286_v6  ;;  %v4996_v37 = vld [vmem:[%s9993_s3 + $0x8d0] sm:$0xff]  ;;  %v7654_v49 = vpack.c.bf16 %v5003_v45, %v5002_v57  ;;  %v5015_v42 = vld [vmem:[%s9993_s3 + $0x968] sm:$0xff] }
 0x1f9   : > { %6691 = vmatprep.mubr.f32.mxu0 %v8671_v36  ;;  %7633 = vmatpush3.bf16.msra.mxu0 %v7630_v51  ;;  %v4997_v36 = vld [vmem:[%s9993_s3 + $0x8d8] sm:$0xff]  ;;  %v4831_v51 = vld [vmem:[%s9993_s3 + $0x3a8] sm:$0xff]  ;;  %v7678_v45 = vpack.c.bf16 %v5015_v42, %v5014_v60  ;;  %v4854_v42 = vld [vmem:[%s9993_s3 + $0x460] sm:$0xff] }
 0x1fa   : > { %7635 = vmatprep.subr.bf16.mxu0 %v7634_v63  ;;  %v7642_v26 = vpack.c.bf16 %v4997_v36, %v4996_v37  ;;  %v7310_v9 = vpack.c.bf16 %v4831_v51, %v4830_v55  ;;  %v7662_v37 = vpack.c.bf16 %v5007_v1, %v5006_v5  ;;  %v5009_v36 = vld [vmem:[%s9993_s3 + $0x938] sm:$0xff]  ;;  %v4843_v57 = vld [vmem:[%s9993_s3 + $0x408] sm:$0xff] }
 0x1fb   : > { %7289 = vmatpush3.bf16.msra.mxu1 %v7286_v6  ;;  %v5004_v6 = vld [vmem:[%s9993_s3 + $0x910] sm:$0xff]  ;;  %v5017_v55 = vld [vmem:[%s9993_s3 + $0x978] sm:$0xff] }
 0x1fc   : > { %6692 = vmatmul.mubr.f32.gmra.mrb[22].mxu0 %v9285_v24  ;;  %7291 = vmatprep.subr.bf16.mxu1 %v7290_v2  ;;  %v7658_v4 = vpack.c.bf16 %v5005_v28, %v5004_v6  ;;  %v5018_v28 = vld [vmem:[%s9993_s3 + $0x980] sm:$0xff] }
 0x1fd   : > { %7637 = vmatpush3.bf16.msra.mxu0 %v7634_v63  ;;  %6726 = vmatprep.mubr.f32.mxu0 %v8728_v8  ;;  %v7298_v8 = vpack.c.bf16 %v4825_v52, %v4824_v18  ;;  %v4832_v63 = vld [vmem:[%s9993_s3 + $0x3b0] sm:$0xff]  ;;  %v4837_v52 = vld [vmem:[%s9993_s3 + $0x3d8] sm:$0xff] }
 0x1fe   : > { %7639 = vmatprep.subr.bf16.mxu0 %v7638_v22  ;;  %v4836_v18 = vld [vmem:[%s9993_s3 + $0x3d0] sm:$0xff]  ;;  %v8095_v5 = vld [vmem:[#allocation2 + $0x1a] sm:$0xff] }
 0x1ff   : > { %7293 = vmatpush3.bf16.msra.mxu1 %v7290_v2  ;;  %v7322_v23 = vpack.c.bf16 %v4837_v52, %v4836_v18  ;;  %v9471_v52 = vld [vmem:[#allocation2 + $0x3e] sm:$0xff] }
 0x200   : > { %7295 = vmatprep.subr.bf16.mxu1 %v7294_v62 }
 0x201   : > { %7641 = vmatpush3.bf16.msra.mxu0 %v7638_v22  ;;  %v9366_v22 = vld [vmem:[#allocation2 + $0x49] sm:$0xff] }
 0x202   : > { %7643 = vmatprep.subr.bf16.mxu0 %v7642_v26 }
 0x203   : > { %7297 = vmatpush3.bf16.msra.mxu1 %v7294_v62  ;;  %v7318_v62 = vpack.c.bf16 %v4835_v7, %v4834_v50  ;;  %v5020_v50 = vld [vmem:[%s9993_s3 + $0x990] sm:$0xff]  ;;  %v5021_v7 = vld [vmem:[%s9993_s3 + $0x998] sm:$0xff] }
 0x204   : > { %7299 = vmatprep.subr.bf16.mxu1 %v7298_v8  ;;  %v7690_v18 = vpack.c.bf16 %v5021_v7, %v5020_v50  ;;  %v5034_v7 = vld [vmem:[%s9993_s3 + $0xa00] sm:$0xff] }
 0x205   : > { %7645 = vmatpush3.bf16.msra.mxu0 %v7642_v26  ;;  %v9386_v26 = vld [vmem:[#allocation2 + $0x61] sm:$0xff] }
 0x206   : > { %7647 = vmatprep.subr.bf16.mxu0 %v7646_v29 }
 0x207   : > { %7301 = vmatpush3.bf16.msra.mxu1 %v7298_v8  ;;  %v4838_v8 = vld [vmem:[%s9993_s3 + $0x3e0] sm:$0xff] }
 0x208   : > { %7303 = vmatprep.subr.bf16.mxu1 %v7302_v35 }
 0x209   : > { %7649 = vmatpush3.bf16.msra.mxu0 %v7646_v29 }
 0x20a   : > { %6243 = vmatmul.mubr.f32.vlgmr.msra.gmra.mrb[56].mxu1 %v8091_v53  ;;  %7651 = vmatprep.subr.bf16.mxu0 %v7650_v44  ;;  %v4844_v53 = vld [vmem:[%s9993_s3 + $0x410] sm:$0xff] }
 0x20b   : > { %6245 = vmatprep.mubr.f32.mxu1 %v9167_v43  ;;  %7305 = vmatpush3.bf16.msra.mxu1 %v7302_v35  ;;  %v4833_v43 = vld [vmem:[%s9993_s3 + $0x3b8] sm:$0xff] }
 0x20c   : > { %7307 = vmatprep.subr.bf16.mxu1 %v7306_v15  ;;  %v7314_v2 = vpack.c.bf16 %v4833_v43, %v4832_v63  ;;  %v4846_v43 = vld [vmem:[%s9993_s3 + $0x420] sm:$0xff] }
 0x20d   : > { %7653 = vmatpush3.bf16.msra.mxu0 %v7650_v44  ;;  %v4842_v44 = vld [vmem:[%s9993_s3 + $0x400] sm:$0xff] }
 0x20e   : > { %6246 = vmatmul.mubr.f32.gmra.mrb[58].mxu1 %v9238_v61  ;;  %7655 = vmatprep.subr.bf16.mxu0 %v7654_v49  ;;  %v7334_v51 = vpack.c.bf16 %v4843_v57, %v4842_v44  ;;  %v9526_v44 = vld [vmem:[#allocation2 + $0x7b] sm:$0xff] }
 0x20f   : > { %6248 = vmatprep.mubr.f32.mxu1 %v9241_v3  ;;  %7309 = vmatpush3.bf16.msra.mxu1 %v7306_v15  ;;  %v5016_v15 = vld [vmem:[%s9993_s3 + $0x970] sm:$0xff] }
 0x210   : > { %6727 = vmatmul.mubr.f32.vlgmr.msra.gmra.mrb[16].mxu0 %v8737_v13  ;;  %7311 = vmatprep.subr.bf16.mxu1 %v7310_v9  ;;  %v9369_v13 = vld [vmem:[#allocation2 + $0x55] sm:$0xff]  ;;  %v7682_v6 = vpack.c.bf16 %v5017_v55, %v5016_v15 }
 0x211   : > { %6729 = vmatprep.mubr.f32.mxu0 %v8750_v21  ;;  %7657 = vmatpush3.bf16.msra.mxu0 %v7654_v49  ;;  %v5008_v21 = vld [vmem:[%s9993_s3 + $0x930] sm:$0xff]  ;;  %v4845_v49 = vld [vmem:[%s9993_s3 + $0x418] sm:$0xff] }
 0x212   : > { %6249 = vmatmul.mubr.f32.gmra.mrb[60].mxu1 %v9366_v22  ;;  %7659 = vmatprep.subr.bf16.mxu0 %v7658_v4  ;;  %v7666_v58 = vpack.c.bf16 %v5009_v36, %v5008_v21  ;;  %v7338_v63 = vpack.c.bf16 %v4845_v49, %v4844_v53  ;;  %v4848_v21 = vld [vmem:[%s9993_s3 + $0x430] sm:$0xff]  ;;  %v4849_v36 = vld [vmem:[%s9993_s3 + $0x438] sm:$0xff]  ;;  %v5030_v53 = vld [vmem:[%s9993_s3 + $0x9e0] sm:$0xff] }
 0x213   : > { %6251 = vmatprep.mubr.f32.mxu1 %v9369_v13  ;;  %7313 = vmatpush3.bf16.msra.mxu1 %v7310_v9  ;;  %v5019_v9 = vld [vmem:[%s9993_s3 + $0x988] sm:$0xff]  ;;  %v4856_v15 = vld [vmem:[%s9993_s3 + $0x470] sm:$0xff]  ;;  %v4857_v55 = vld [vmem:[%s9993_s3 + $0x478] sm:$0xff] }
 0x214   : > { %6730 = vmatmul.mubr.f32.gmra.mrb[18].mxu0 %v8759_v27  ;;  %7315 = vmatprep.subr.bf16.mxu1 %v7314_v2  ;;  %v5010_v27 = vld [vmem:[%s9993_s3 + $0x940] sm:$0xff]  ;;  %v7686_v1 = vpack.c.bf16 %v5019_v9, %v5018_v28  ;;  %v5031_v49 = vld [vmem:[%s9993_s3 + $0x9e8] sm:$0xff] }
 0x215   : > { %6732 = vmatprep.mubr.f32.mxu0 %v8771_v39  ;;  %7661 = vmatpush3.bf16.msra.mxu0 %v7658_v4  ;;  %v5011_v39 = vld [vmem:[%s9993_s3 + $0x948] sm:$0xff]  ;;  %v4858_v28 = vld [vmem:[%s9993_s3 + $0x480] sm:$0xff] }
 0x216   : > { %6252 = vmatmul.mubr.f32.gmra.mrb[62].mxu1 %v9386_v26  ;;  %7663 = vmatprep.subr.bf16.mxu0 %v7662_v37  ;;  %v7670_v19 = vpack.c.bf16 %v5011_v39, %v5010_v27  ;;  %v4847_v4 = vld [vmem:[%s9993_s3 + $0x428] sm:$0xff]  ;;  %v7346_v39 = vpack.c.bf16 %v4849_v36, %v4848_v21  ;;  %v4862_v36 = vld [vmem:[%s9993_s3 + $0x4a0] sm:$0xff] }
 0x217   : > { %7317 = vmatpush3.bf16.msra.mxu1 %v7314_v2  ;;  %6286 = vmatprep.mubr.f32.mxu1 %v8837_v20  ;;  %v4839_v20 = vld [vmem:[%s9993_s3 + $0x3e8] sm:$0xff] }
 0x218   : > { %6733 = vmatmul.mubr.f32.gmra.mrb[20].mxu0 %v8780_v34  ;;  %7319 = vmatprep.subr.bf16.mxu1 %v7318_v62  ;;  %v5012_v34 = vld [vmem:[%s9993_s3 + $0x950] sm:$0xff]  ;;  %v7326_v29 = vpack.c.bf16 %v4839_v20, %v4838_v8  ;;  %v8096_v2 = vld [vmem:[#allocation2 + $0x26] sm:$0xff] }
 0x219   : > { %6735 = vmatprep.mubr.f32.mxu0 %v8789_v46  ;;  %7665 = vmatpush3.bf16.msra.mxu0 %v7662_v37  ;;  %v5013_v46 = vld [vmem:[%s9993_s3 + $0x958] sm:$0xff]  ;;  %v7342_v37 = vpack.c.bf16 %v4847_v4, %v4846_v43  ;;  %v5023_v27 = vld [vmem:[%s9993_s3 + $0x9a8] sm:$0xff]  ;;  %v5032_v43 = vld [vmem:[%s9993_s3 + $0x9f0] sm:$0xff] }
 0x21a   : > { %7667 = vmatprep.subr.bf16.mxu0 %v7666_v58  ;;  %v7674_v35 = vpack.c.bf16 %v5013_v46, %v5012_v34  ;;  %v4851_v8 = vld [vmem:[%s9993_s3 + $0x448] sm:$0xff]  ;;  %v5025_v34 = vld [vmem:[%s9993_s3 + $0x9b8] sm:$0xff] }
 0x21b   : > { %7321 = vmatpush3.bf16.msra.mxu1 %v7318_v62  ;;  %v9468_v62 = vld [vmem:[#allocation2 + $0x32] sm:$0xff]  ;;  %v9488_v20 = vld [vmem:[#allocation2 + $0x4a] sm:$0xff] }
 0x21c   : > { %6736 = vmatmul.mubr.f32.gmra.mrb[22].mxu0 %v9404_v31  ;;  %7323 = vmatprep.subr.bf16.mxu1 %v7322_v23  ;;  %v4859_v9 = vld [vmem:[%s9993_s3 + $0x488] sm:$0xff]  ;;  %v5033_v4 = vld [vmem:[%s9993_s3 + $0x9f8] sm:$0xff] }
 0x21d   : > { %7669 = vmatpush3.bf16.msra.mxu0 %v7666_v58  ;;  %6770 = vmatprep.mubr.f32.mxu0 %v8861_v10  ;;  %v7330_v10 = vpack.c.bf16 %v4841_v32, %v4840_v38  ;;  %v5022_v58 = vld [vmem:[%s9993_s3 + $0x9a0] sm:$0xff]  ;;  %v4853_v38 = vld [vmem:[%s9993_s3 + $0x458] sm:$0xff]  ;;  %v7714_v50 = vpack.c.bf16 %v5033_v4, %v5032_v43  ;;  %v4871_v43 = vld [vmem:[%s9993_s3 + $0x4e8] sm:$0xff] }
 0x21e   : > { %7671 = vmatprep.subr.bf16.mxu0 %v7670_v19  ;;  %v9508_v32 = vld [vmem:[#allocation2 + $0x62] sm:$0xff] }
 0x21f   : > { %7325 = vmatpush3.bf16.msra.mxu1 %v7322_v23  ;;  %v4850_v23 = vld [vmem:[%s9993_s3 + $0x440] sm:$0xff] }
 0x220   : > { %7327 = vmatprep.subr.bf16.mxu1 %v7326_v29  ;;  %v7350_v46 = vpack.c.bf16 %v4851_v8, %v4850_v23  ;;  %v5036_v23 = vld [vmem:[%s9993_s3 + $0xa10] sm:$0xff]  ;;  %v5037_v8 = vld [vmem:[%s9993_s3 + $0xa18] sm:$0xff] }
 0x221   : > { %7673 = vmatpush3.bf16.msra.mxu0 %v7670_v19  ;;  %v7694_v19 = vpack.c.bf16 %v5023_v27, %v5022_v58  ;;  %v8103_v58 = vld [vmem:[#allocation2 + $0x1b] sm:$0xff] }
 0x222   : > { %7675 = vmatprep.subr.bf16.mxu0 %v7674_v35 }
 0x223   : > { %7329 = vmatpush3.bf16.msra.mxu1 %v7326_v29  ;;  %v4852_v29 = vld [vmem:[%s9993_s3 + $0x450] sm:$0xff] }
 0x224   : > { %7331 = vmatprep.subr.bf16.mxu1 %v7330_v10  ;;  %v7354_v60 = vpack.c.bf16 %v4853_v38, %v4852_v29  ;;  %v7722_v29 = vpack.c.bf16 %v5037_v8, %v5036_v23  ;;  %v9595_v38 = vld [vmem:[#allocation2 + $0x3f] sm:$0xff]  ;;  %v5048_v23 = vld [vmem:[%s9993_s3 + $0xa70] sm:$0xff] }
 0x225   : > { %7677 = vmatpush3.bf16.msra.mxu0 %v7674_v35  ;;  %v5049_v8 = vld [vmem:[%s9993_s3 + $0xa78] sm:$0xff] }
 0x226   : > { %7679 = vmatprep.subr.bf16.mxu0 %v7678_v45 }
 0x227   : > { %7333 = vmatpush3.bf16.msra.mxu1 %v7330_v10 }
 0x228   : > { %7335 = vmatprep.subr.bf16.mxu1 %v7334_v51 }
 0x229   : > { %7681 = vmatpush3.bf16.msra.mxu0 %v7678_v45  ;;  %v9535_v45 = vld [vmem:[#allocation2 + $0x28] sm:$0xff] }
 0x22a   : > { %6287 = vmatmul.mubr.f32.vlgmr.msra.gmra.mrb[56].mxu1 %v8095_v5  ;;  %7683 = vmatprep.subr.bf16.mxu0 %v7682_v6  ;;  %v7366_v5 = vpack.c.bf16 %v4859_v9, %v4858_v28  ;;  %v5043_v28 = vld [vmem:[%s9993_s3 + $0xa48] sm:$0xff] }
 0x22b   : > { %6289 = vmatprep.mubr.f32.mxu1 %v8096_v2  ;;  %7337 = vmatpush3.bf16.msra.mxu1 %v7334_v51  ;;  %v4861_v2 = vld [vmem:[%s9993_s3 + $0x498] sm:$0xff] }
 0x22c   : > { %7339 = vmatprep.subr.bf16.mxu1 %v7338_v63 }
 0x22d   : > { %7685 = vmatpush3.bf16.msra.mxu0 %v7682_v6  ;;  %v7362_v6 = vpack.c.bf16 %v4857_v55, %v4856_v15  ;;  %v9627_v55 = vld [vmem:[#allocation2 + $0x58] sm:$0xff] }
 0x22e   : > { %6290 = vmatmul.mubr.f32.gmra.mrb[58].mxu1 %v9468_v62  ;;  %7687 = vmatprep.subr.bf16.mxu0 %v7686_v1 }
 0x22f   : > { %6292 = vmatprep.mubr.f32.mxu1 %v9471_v52  ;;  %7341 = vmatpush3.bf16.msra.mxu1 %v7338_v63  ;;  %v7710_v63 = vpack.c.bf16 %v5031_v49, %v5030_v53  ;;  %v4869_v53 = vld [vmem:[%s9993_s3 + $0x4d8] sm:$0xff]  ;;  %v9636_v49 = vld [vmem:[#allocation2 + $0x63] sm:$0xff] }
 0x230   : > { %6771 = vmatmul.mubr.f32.vlgmr.msra.gmra.mrb[16].mxu0 %v8870_v11  ;;  %7343 = vmatprep.subr.bf16.mxu1 %v7342_v37  ;;  %v9491_v11 = vld [vmem:[#allocation2 + $0x56] sm:$0xff] }
 0x231   : > { %6773 = vmatprep.mubr.f32.mxu0 %v8881_v48  ;;  %7689 = vmatpush3.bf16.msra.mxu0 %v7686_v1  ;;  %v5024_v48 = vld [vmem:[%s9993_s3 + $0x9b0] sm:$0xff] }
 0x232   : > { %6293 = vmatmul.mubr.f32.gmra.mrb[60].mxu1 %v9488_v20  ;;  %7691 = vmatprep.subr.bf16.mxu0 %v7690_v18  ;;  %v7698_v35 = vpack.c.bf16 %v5025_v34, %v5024_v48  ;;  %v4860_v1 = vld [vmem:[%s9993_s3 + $0x490] sm:$0xff]  ;;  %v4865_v34 = vld [vmem:[%s9993_s3 + $0x4b8] sm:$0xff] }
 0x233   : > { %6295 = vmatprep.mubr.f32.mxu1 %v9491_v11  ;;  %7345 = vmatpush3.bf16.msra.mxu1 %v7342_v37  ;;  %v5035_v37 = vld [vmem:[%s9993_s3 + $0xa08] sm:$0xff]  ;;  %v7370_v21 = vpack.c.bf16 %v4861_v2, %v4860_v1  ;;  %v4864_v48 = vld [vmem:[%s9993_s3 + $0x4b0] sm:$0xff]  ;;  %v5045_v1 = vld [vmem:[%s9993_s3 + $0xa58] sm:$0xff] }
 0x234   : > { %6774 = vmatmul.mubr.f32.gmra.mrb[18].mxu0 %v8890_v16  ;;  %7347 = vmatprep.subr.bf16.mxu1 %v7346_v39  ;;  %v5026_v16 = vld [vmem:[%s9993_s3 + $0x9c0] sm:$0xff]  ;;  %v7718_v27 = vpack.c.bf16 %v5035_v37, %v5034_v7  ;;  %v4873_v7 = vld [vmem:[%s9993_s3 + $0x4f8] sm:$0xff] }
 0x235   : > { %6776 = vmatprep.mubr.f32.mxu0 %v8900_v54  ;;  %7693 = vmatpush3.bf16.msra.mxu0 %v7690_v18  ;;  %v5027_v54 = vld [vmem:[%s9993_s3 + $0x9c8] sm:$0xff] }
 0x236   : > { %6296 = vmatmul.mubr.f32.gmra.mrb[62].mxu1 %v9508_v32  ;;  %7695 = vmatprep.subr.bf16.mxu0 %v7694_v19  ;;  %v7702_v10 = vpack.c.bf16 %v5027_v54, %v5026_v16  ;;  %v4863_v18 = vld [vmem:[%s9993_s3 + $0x4a8] sm:$0xff]  ;;  %v7378_v54 = vpack.c.bf16 %v4865_v34, %v4864_v48  ;;  %v4876_v48 = vld [vmem:[%s9993_s3 + $0x510] sm:$0xff]  ;;  %v4877_v34 = vld [vmem:[%s9993_s3 + $0x518] sm:$0xff] }
 0x237   : > { %7349 = vmatpush3.bf16.msra.mxu1 %v7346_v39  ;;  %6330 = vmatprep.mubr.f32.mxu1 %v8966_v0  ;;  %v4855_v0 = vld [vmem:[%s9993_s3 + $0x468] sm:$0xff] }
 0x238   : > { %6777 = vmatmul.mubr.f32.gmra.mrb[20].mxu0 %v8909_v47  ;;  %7351 = vmatprep.subr.bf16.mxu1 %v7350_v46  ;;  %v5028_v47 = vld [vmem:[%s9993_s3 + $0x9d0] sm:$0xff]  ;;  %v7358_v57 = vpack.c.bf16 %v4855_v0, %v4854_v42  ;;  %v8104_v39 = vld [vmem:[#allocation2 + $0x27] sm:$0xff] }
 0x239   : > { %6779 = vmatprep.mubr.f32.mxu0 %v8918_v14  ;;  %7697 = vmatpush3.bf16.msra.mxu0 %v7694_v19  ;;  %v5029_v14 = vld [vmem:[%s9993_s3 + $0x9d8] sm:$0xff]  ;;  %v7374_v19 = vpack.c.bf16 %v4863_v18, %v4862_v36  ;;  %v5039_v16 = vld [vmem:[%s9993_s3 + $0xa28] sm:$0xff]  ;;  %v4866_v42 = vld [vmem:[%s9993_s3 + $0x4c0] sm:$0xff] }
 0x23a   : > { %7699 = vmatprep.subr.bf16.mxu0 %v7698_v35  ;;  %v7706_v51 = vpack.c.bf16 %v5029_v14, %v5028_v47  ;;  %v4867_v0 = vld [vmem:[%s9993_s3 + $0x4c8] sm:$0xff]  ;;  %v9617_v47 = vld [vmem:[#allocation2 + $0x57] sm:$0xff] }
 0x23b   : > { %7353 = vmatpush3.bf16.msra.mxu1 %v7350_v46  ;;  %v9592_v46 = vld [vmem:[#allocation2 + $0x33] sm:$0xff]  ;;  %v7382_v15 = vpack.c.bf16 %v4867_v0, %v4866_v42  ;;  %v5047_v36 = vld [vmem:[%s9993_s3 + $0xa68] sm:$0xff]  ;;  %v4878_v42 = vld [vmem:[%s9993_s3 + $0x520] sm:$0xff] }
 0x23c   : > { %6780 = vmatmul.mubr.f32.gmra.mrb[22].mxu0 %v9526_v44  ;;  %7355 = vmatprep.subr.bf16.mxu1 %v7354_v60  ;;  %v5040_v14 = vld [vmem:[%s9993_s3 + $0xa30] sm:$0xff]  ;;  %v4879_v0 = vld [vmem:[%s9993_s3 + $0x528] sm:$0xff] }
 0x23d   : > { %7701 = vmatpush3.bf16.msra.mxu0 %v7698_v35  ;;  %6814 = vmatprep.mubr.f32.mxu0 %v9535_v45  ;;  %v5038_v35 = vld [vmem:[%s9993_s3 + $0xa20] sm:$0xff] }
 0x23e   : > { %7703 = vmatprep.subr.bf16.mxu0 %v7702_v10 }
 0x23f   : > { %7357 = vmatpush3.bf16.msra.mxu1 %v7354_v60  ;;  %v9605_v60 = vld [vmem:[#allocation2 + $0x40] sm:$0xff] }
 0x240   : > { %7359 = vmatprep.subr.bf16.mxu1 %v7358_v57 }
 0x241   : > { %7705 = vmatpush3.bf16.msra.mxu0 %v7702_v10  ;;  %v9614_v10 = vld [vmem:[#allocation2 + $0x4b] sm:$0xff] }
 0x242   : > { %7707 = vmatprep.subr.bf16.mxu0 %v7706_v51 }
 0x243   : > { %7361 = vmatpush3.bf16.msra.mxu1 %v7358_v57  ;;  %v5041_v57 = vld [vmem:[%s9993_s3 + $0xa38] sm:$0xff] }
 0x244   : > { %7363 = vmatprep.subr.bf16.mxu1 %v7362_v6 }
 0x245   : > { %7709 = vmatpush3.bf16.msra.mxu0 %v7706_v51  ;;  %v4868_v51 = vld [vmem:[%s9993_s3 + $0x4d0] sm:$0xff] }
 0x246   : > { %7711 = vmatprep.subr.bf16.mxu0 %v7710_v63  ;;  %v7386_v9 = vpack.c.bf16 %v4869_v53, %v4868_v51  ;;  %v7406_v51 = vpack.c.bf16 %v4879_v0, %v4878_v42  ;;  %v4880_v53 = vld [vmem:[%s9993_s3 + $0x530] sm:$0xff]  ;;  %v4889_v42 = vld [vmem:[%s9993_s3 + $0x578] sm:$0xff] }
 0x247   : > { %7365 = vmatpush3.bf16.msra.mxu1 %v7362_v6  ;;  %v5042_v6 = vld [vmem:[%s9993_s3 + $0xa40] sm:$0xff] }
 0x248   : > { %7367 = vmatprep.subr.bf16.mxu1 %v7366_v5  ;;  %v7734_v4 = vpack.c.bf16 %v5043_v28, %v5042_v6  ;;  %v5054_v28 = vld [vmem:[%s9993_s3 + $0xaa0] sm:$0xff] }
 0x249   : > { %7713 = vmatpush3.bf16.msra.mxu0 %v7710_v63  ;;  %v9647_v63 = vld [vmem:[#allocation2 + $0x70] sm:$0xff] }
 0x24a   : > { %6331 = vmatmul.mubr.f32.vlgmr.msra.gmra.mrb[56].mxu1 %v8103_v58  ;;  %7715 = vmatprep.subr.bf16.mxu0 %v7714_v50  ;;  %v4874_v58 = vld [vmem:[%s9993_s3 + $0x500] sm:$0xff] }
 0x24b   : > { %6333 = vmatprep.mubr.f32.mxu1 %v8104_v39  ;;  %7369 = vmatpush3.bf16.msra.mxu1 %v7366_v5  ;;  %v9656_v5 = vld [vmem:[#allocation2 + $0x7c] sm:$0xff] }
 0x24c   : > { %7371 = vmatprep.subr.bf16.mxu1 %v7370_v21 }
 0x24d   : > { %7717 = vmatpush3.bf16.msra.mxu0 %v7714_v50  ;;  %v4872_v50 = vld [vmem:[%s9993_s3 + $0x4f0] sm:$0xff] }
 0x24e   : > { %6334 = vmatmul.mubr.f32.gmra.mrb[58].mxu1 %v9592_v46  ;;  %7719 = vmatprep.subr.bf16.mxu0 %v7718_v27  ;;  %v7394_v18 = vpack.c.bf16 %v4873_v7, %v4872_v50  ;;  %v5056_v50 = vld [vmem:[%s9993_s3 + $0xab0] sm:$0xff]  ;;  %v5057_v7 = vld [vmem:[%s9993_s3 + $0xab8] sm:$0xff] }
 0x24f   : > { %6336 = vmatprep.mubr.f32.mxu1 %v9595_v38  ;;  %7373 = vmatpush3.bf16.msra.mxu1 %v7370_v21  ;;  %v5046_v21 = vld [vmem:[%s9993_s3 + $0xa60] sm:$0xff] }
 0x250   : > { %6815 = vmatmul.mubr.f32.vlgmr.msra.gmra.mrb[16].mxu0 %v8997_v33  ;;  %7375 = vmatprep.subr.bf16.mxu1 %v7374_v19  ;;  %v7726_v33 = vpack.c.bf16 %v5039_v16, %v5038_v35  ;;  %v7742_v39 = vpack.c.bf16 %v5047_v36, %v5046_v21  ;;  %v5050_v35 = vld [vmem:[%s9993_s3 + $0xa80] sm:$0xff]  ;;  %v5051_v16 = vld [vmem:[%s9993_s3 + $0xa88] sm:$0xff]  ;;  %v4884_v36 = vld [vmem:[%s9993_s3 + $0x550] sm:$0xff] }
 0x251   : > { %6817 = vmatprep.mubr.f32.mxu0 %v9605_v60  ;;  %7721 = vmatpush3.bf16.msra.mxu0 %v7718_v27  ;;  %v4875_v27 = vld [vmem:[%s9993_s3 + $0x508] sm:$0xff] }
 0x252   : > { %6337 = vmatmul.mubr.f32.gmra.mrb[60].mxu1 %v9614_v10  ;;  %7723 = vmatprep.subr.bf16.mxu0 %v7722_v29 }
 0x253   : > { %6339 = vmatprep.mubr.f32.mxu1 %v9617_v47  ;;  %7377 = vmatpush3.bf16.msra.mxu1 %v7374_v19  ;;  %v7398_v19 = vpack.c.bf16 %v4875_v27, %v4874_v58  ;;  %v9761_v58 = vld [vmem:[#allocation2 + $0x64] sm:$0xff]  ;;  %v7762_v27 = vpack.c.bf16 %v5057_v7, %v5056_v50  ;;  %v5073_v50 = vld [vmem:[%s9993_s3 + $0xb38] sm:$0xff] }
 0x254   : > { %6818 = vmatmul.mubr.f32.gmra.mrb[18].mxu0 %v9015_v40  ;;  %7379 = vmatprep.subr.bf16.mxu1 %v7378_v54  ;;  %v7730_v40 = vpack.c.bf16 %v5041_v57, %v5040_v14  ;;  %v7750_v14 = vpack.c.bf16 %v5051_v16, %v5050_v35  ;;  %v5052_v57 = vld [vmem:[%s9993_s3 + $0xa90] sm:$0xff]  ;;  %v5061_v35 = vld [vmem:[%s9993_s3 + $0xad8] sm:$0xff]  ;;  %v5075_v7 = vld [vmem:[%s9993_s3 + $0xb48] sm:$0xff] }
 0x255   : > { %6820 = vmatprep.mubr.f32.mxu0 %v9627_v55  ;;  %7725 = vmatpush3.bf16.msra.mxu0 %v7722_v29  ;;  %v7746_v29 = vpack.c.bf16 %v5049_v8, %v5048_v23  ;;  %v5059_v23 = vld [vmem:[%s9993_s3 + $0xac8] sm:$0xff] }
 0x256   : > { %6340 = vmatmul.mubr.f32.gmra.mrb[62].mxu1 %v9636_v49  ;;  %7727 = vmatprep.subr.bf16.mxu0 %v7726_v33 }
 0x257   : > { %7381 = vmatpush3.bf16.msra.mxu1 %v7378_v54  ;;  %6374 = vmatprep.mubr.f32.mxu1 %v9086_v17  ;;  %v4870_v17 = vld [vmem:[%s9993_s3 + $0x4e0] sm:$0xff]  ;;  %v7402_v54 = vpack.c.bf16 %v4877_v34, %v4876_v48 }
 0x258   : > { %6821 = vmatmul.mubr.f32.gmra.mrb[20].mxu0 %v9032_v59  ;;  %7383 = vmatprep.subr.bf16.mxu1 %v7382_v15  ;;  %v5044_v59 = vld [vmem:[%s9993_s3 + $0xa50] sm:$0xff]  ;;  %v7390_v2 = vpack.c.bf16 %v4871_v43, %v4870_v17  ;;  %v9731_v17 = vld [vmem:[#allocation2 + $0x3c] sm:$0xff] }
 0x259   : > { %6823 = vmatprep.mubr.f32.mxu0 %v9647_v63  ;;  %7729 = vmatpush3.bf16.msra.mxu0 %v7726_v33  ;;  %v7738_v37 = vpack.c.bf16 %v5045_v1, %v5044_v59  ;;  %v8113_v33 = vld [vmem:[#allocation2 + $0x1c] sm:$0xff]  ;;  %v4883_v59 = vld [vmem:[%s9993_s3 + $0x548] sm:$0xff] }
 0x25a   : > { %7731 = vmatprep.subr.bf16.mxu0 %v7730_v40  ;;  %v9741_v1 = vld [vmem:[#allocation2 + $0x4c] sm:$0xff]  ;;  %v4886_v48 = vld [vmem:[%s9993_s3 + $0x560] sm:$0xff] }
 0x25b   : > { %7385 = vmatpush3.bf16.msra.mxu1 %v7382_v15  ;;  %v5053_v15 = vld [vmem:[%s9993_s3 + $0xa98] sm:$0xff] }
 0x25c   : > { %6824 = vmatmul.mubr.f32.gmra.mrb[22].mxu0 %v9656_v5  ;;  %7387 = vmatprep.subr.bf16.mxu1 %v7386_v9  ;;  %v7754_v6 = vpack.c.bf16 %v5053_v15, %v5052_v57  ;;  %v5064_v15 = vld [vmem:[%s9993_s3 + $0xaf0] sm:$0xff] }
 0x25d   : > { %7733 = vmatpush3.bf16.msra.mxu0 %v7730_v40  ;;  %6858 = vmatprep.mubr.f32.mxu0 %v9228_v25  ;;  %v9721_v40 = vld [vmem:[#allocation2 + $0x34] sm:$0xff] }
 0x25e   : > { %7735 = vmatprep.subr.bf16.mxu0 %v7734_v4 }
 0x25f   : > { %7389 = vmatpush3.bf16.msra.mxu1 %v7386_v9  ;;  %v5055_v9 = vld [vmem:[%s9993_s3 + $0xaa8] sm:$0xff] }
 0x260   : > { %7391 = vmatprep.subr.bf16.mxu1 %v7390_v2 }
 0x261   : > { %7737 = vmatpush3.bf16.msra.mxu0 %v7734_v4  ;;  %v4882_v4 = vld [vmem:[%s9993_s3 + $0x540] sm:$0xff] }
 0x262   : > { %7739 = vmatprep.subr.bf16.mxu0 %v7738_v37  ;;  %v7414_v21 = vpack.c.bf16 %v4883_v59, %v4882_v4  ;;  %v5069_v4 = vld [vmem:[%s9993_s3 + $0xb18] sm:$0xff] }
 0x263   : > { %7393 = vmatpush3.bf16.msra.mxu1 %v7390_v2  ;;  %v7758_v2 = vpack.c.bf16 %v5055_v9, %v5054_v28  ;;  %v8120_v28 = vld [vmem:[#allocation2 + $0x24] sm:$0xff] }
 0x264   : > { %7395 = vmatprep.subr.bf16.mxu1 %v7394_v18 }
 0x265   : > { %7741 = vmatpush3.bf16.msra.mxu0 %v7738_v37  ;;  %v9751_v37 = vld [vmem:[#allocation2 + $0x54] sm:$0xff] }
 0x266   : > { %7743 = vmatprep.subr.bf16.mxu0 %v7742_v39 }
 0x267   : > { %7397 = vmatpush3.bf16.msra.mxu1 %v7394_v18  ;;  %v4885_v18 = vld [vmem:[%s9993_s3 + $0x558] sm:$0xff] }
 0x268   : > { %7399 = vmatprep.subr.bf16.mxu1 %v7398_v19  ;;  %v7418_v8 = vpack.c.bf16 %v4885_v18, %v4884_v36  ;;  %v5077_v36 = vld [vmem:[%s9993_s3 + $0xb58] sm:$0xff] }
 0x269   : > { %7745 = vmatpush3.bf16.msra.mxu0 %v7742_v39  ;;  %v5058_v39 = vld [vmem:[%s9993_s3 + $0xac0] sm:$0xff] }
 0x26a   : > { %6375 = vmatmul.mubr.f32.vlgmr.msra.gmra.mrb[56].mxu1 %v8113_v33  ;;  %7747 = vmatprep.subr.bf16.mxu0 %v7746_v29  ;;  %v7766_v34 = vpack.c.bf16 %v5059_v23, %v5058_v39  ;;  %v5062_v33 = vld [vmem:[%s9993_s3 + $0xae0] sm:$0xff]  ;;  %v5080_v23 = vld [vmem:[%s9993_s3 + $0xb70] sm:$0xff] }
 0x26b   : > { %6377 = vmatprep.mubr.f32.mxu1 %v9535_v45  ;;  %7401 = vmatpush3.bf16.msra.mxu1 %v7398_v19  ;;  %v4881_v45 = vld [vmem:[%s9993_s3 + $0x538] sm:$0xff] }
 0x26c   : > { %7403 = vmatprep.subr.bf16.mxu1 %v7402_v54  ;;  %v7410_v43 = vpack.c.bf16 %v4881_v45, %v4880_v53  ;;  %v8119_v19 = vld [vmem:[#allocation2 + $0x78] sm:$0xff]  ;;  %v5066_v45 = vld [vmem:[%s9993_s3 + $0xb00] sm:$0xff] }
 0x26d   : > { %7749 = vmatpush3.bf16.msra.mxu0 %v7746_v29  ;;  %v3891_v29 = vld [vmem:[#allocation2 + $0x84] sm:$0xff] }
 0x26e   : > { %6378 = vmatmul.mubr.f32.gmra.mrb[58].mxu1 %v9721_v40  ;;  %7751 = vmatprep.subr.bf16.mxu0 %v7750_v14 }
 0x26f   : > { %6380 = vmatprep.mubr.f32.mxu1 %v9605_v60  ;;  %7405 = vmatpush3.bf16.msra.mxu1 %v7402_v54  ;;  %v4888_v54 = vld [vmem:[%s9993_s3 + $0x570] sm:$0xff] }
 0x270   : > { %6859 = vmatmul.mubr.f32.vlgmr.msra.gmra.mrb[16].mxu0 %v9731_v17  ;;  %7407 = vmatprep.subr.bf16.mxu1 %v7406_v51 }
 0x271   : > { %6861 = vmatprep.mubr.f32.mxu0 %v9250_v41  ;;  %7753 = vmatpush3.bf16.msra.mxu0 %v7750_v14  ;;  %v5063_v14 = vld [vmem:[%s9993_s3 + $0xae8] sm:$0xff] }
 0x272   : > { %6381 = vmatmul.mubr.f32.gmra.mrb[60].mxu1 %v9741_v1  ;;  %7755 = vmatprep.subr.bf16.mxu0 %v7754_v6  ;;  %v7774_v57 = vpack.c.bf16 %v5063_v14, %v5062_v33  ;;  %v5091_v33 = vld [vmem:[%s9993_s3 + $0xbc8] sm:$0xff] }
 0x273   : > { %6383 = vmatprep.mubr.f32.mxu1 %v9627_v55  ;;  %7409 = vmatpush3.bf16.msra.mxu1 %v7406_v51  ;;  %v5065_v51 = vld [vmem:[%s9993_s3 + $0xaf8] sm:$0xff]  ;;  %v8123_v14 = vld [vmem:[#allocation2 + $0x6e] sm:$0xff] }
 0x274   : > { %6862 = vmatmul.mubr.f32.gmra.mrb[18].mxu0 %v9751_v37  ;;  %7411 = vmatprep.subr.bf16.mxu1 %v7410_v43  ;;  %v7778_v53 = vpack.c.bf16 %v5065_v51, %v5064_v15  ;;  %v5095_v51 = vld [vmem:[%s9993_s3 + $0xbe8] sm:$0xff] }
 0x275   : > { %6864 = vmatprep.mubr.f32.mxu0 %v9268_v56  ;;  %7757 = vmatpush3.bf16.msra.mxu0 %v7754_v6  ;;  %v5067_v6 = vld [vmem:[%s9993_s3 + $0xb08] sm:$0xff] }
 0x276   : > { %6384 = vmatmul.mubr.f32.gmra.mrb[62].mxu1 %v9761_v58  ;;  %7759 = vmatprep.subr.bf16.mxu0 %v7758_v2  ;;  %v7782_v9 = vpack.c.bf16 %v5067_v6, %v5066_v45  ;;  %v5096_v45 = vld [vmem:[%s9993_s3 + $0xbf0] sm:$0xff] }
 0x277   : > { %7413 = vmatpush3.bf16.msra.mxu1 %v7410_v43  ;;  %6418 = vmatprep.mubr.f32.mxu1 %v9212_v12  ;;  %v4887_v12 = vld [vmem:[%s9993_s3 + $0x568] sm:$0xff]  ;;  %v5068_v43 = vld [vmem:[%s9993_s3 + $0xb10] sm:$0xff] }
 0x278   : > { %6865 = vmatmul.mubr.f32.gmra.mrb[20].mxu0 %v9150_v30  ;;  %7415 = vmatprep.subr.bf16.mxu1 %v7414_v21  ;;  %v5060_v30 = vld [vmem:[%s9993_s3 + $0xad0] sm:$0xff]  ;;  %v7422_v16 = vpack.c.bf16 %v4887_v12, %v4886_v48  ;;  %v7786_v59 = vpack.c.bf16 %v5069_v4, %v5068_v43  ;;  %v5083_v48 = vld [vmem:[%s9993_s3 + $0xb88] sm:$0xff] }
 0x279   : > { %6867 = vmatprep.mubr.f32.mxu0 %v8119_v19  ;;  %7761 = vmatpush3.bf16.msra.mxu0 %v7758_v2  ;;  %v7770_v0 = vpack.c.bf16 %v5061_v35, %v5060_v30  ;;  %v5070_v2 = vld [vmem:[%s9993_s3 + $0xb20] sm:$0xff]  ;;  %v5100_v4 = vld [vmem:[%s9993_s3 + $0xc10] sm:$0xff] }
 0x27a   : > { %7763 = vmatprep.subr.bf16.mxu0 %v7762_v27  ;;  %v5082_v19 = vld [vmem:[%s9993_s3 + $0xb80] sm:$0xff] }
 0x27b   : > { %7417 = vmatpush3.bf16.msra.mxu1 %v7414_v21  ;;  %v5076_v21 = vld [vmem:[%s9993_s3 + $0xb50] sm:$0xff]  ;;  %v7814_v12 = vpack.c.bf16 %v5083_v48, %v5082_v19  ;;  %v5086_v35 = vld [vmem:[%s9993_s3 + $0xba0] sm:$0xff] }
 0x27c   : > { %6868 = vmatmul.mubr.f32.gmra.mrb[22].mxu0 %v3891_v29  ;;  %7419 = vmatprep.subr.bf16.mxu1 %v7418_v8  ;;  %v7802_v18 = vpack.c.bf16 %v5077_v36, %v5076_v21  ;;  %v5085_v29 = vld [vmem:[%s9993_s3 + $0xb98] sm:$0xff]  ;;  %v5112_v36 = vld [vmem:[%s9993_s3 + $0xc70] sm:$0xff] }
 0x27d   : > { %7765 = vmatpush3.bf16.msra.mxu0 %v7762_v27  ;;  %6902 = vmatprep.mubr.f32.mxu0 %v9238_v61  ;;  %v7426_v61 = vpack.c.bf16 %v4889_v42, %v4888_v54  ;;  %v5079_v27 = vld [vmem:[%s9993_s3 + $0xb68] sm:$0xff]  ;;  %v5088_v42 = vld [vmem:[%s9993_s3 + $0xbb0] sm:$0xff] }
 0x27e   : > { %7767 = vmatprep.subr.bf16.mxu0 %v7766_v34 }
 0x27f   : > { %7421 = vmatpush3.bf16.msra.mxu1 %v7418_v8 }
 0x280   : > { %7423 = vmatprep.subr.bf16.mxu1 %v7422_v16 }
 0x281   : > { %7769 = vmatpush3.bf16.msra.mxu0 %v7766_v34  ;;  %v5084_v34 = vld [vmem:[%s9993_s3 + $0xb90] sm:$0xff] }
 0x282   : > { %7771 = vmatprep.subr.bf16.mxu0 %v7770_v0  ;;  %v7818_v30 = vpack.c.bf16 %v5085_v29, %v5084_v34 }
 0x283   : > { %7425 = vmatpush3.bf16.msra.mxu1 %v7422_v16  ;;  %v5087_v16 = vld [vmem:[%s9993_s3 + $0xba8] sm:$0xff] }
 0x284   : > { %7427 = vmatprep.subr.bf16.mxu1 %v7426_v61  ;;  %v7822_v54 = vpack.c.bf16 %v5087_v16, %v5086_v35 }
 0x285   : > { %7773 = vmatpush3.bf16.msra.mxu0 %v7770_v0  ;;  %v5089_v0 = vld [vmem:[%s9993_s3 + $0xbb8] sm:$0xff] }
 0x286   : > { %7775 = vmatprep.subr.bf16.mxu0 %v7774_v57 }
 0x287   : > { %7429 = vmatpush3.bf16.msra.mxu1 %v7426_v61  ;;  %v4153_v61 = vld [vmem:[#allocation2 + $0x86] sm:$0xff] }
 0x289   : > { %7777 = vmatpush3.bf16.msra.mxu0 %v7774_v57  ;;  %v5093_v57 = vld [vmem:[%s9993_s3 + $0xbd8] sm:$0xff] }
 0x28a   : > { %6419 = vmatmul.mubr.f32.vlgmr.msra.gmra.mrb[56].mxu1 %v8120_v28  ;;  %7779 = vmatprep.subr.bf16.mxu0 %v7778_v53  ;;  %v5098_v28 = vld [vmem:[%s9993_s3 + $0xc00] sm:$0xff] }
 0x28b   : > { %6421 = vmatprep.mubr.f32.mxu1 %v9228_v25  ;;  %v5071_v25 = vld [vmem:[%s9993_s3 + $0xb28] sm:$0xff] }
 0x28d   : > { %7781 = vmatpush3.bf16.msra.mxu0 %v7778_v53 }
 0x28e   : > { %6422 = vmatmul.mubr.f32.gmra.mrb[58].mxu1 %v9731_v17  ;;  %7783 = vmatprep.subr.bf16.mxu0 %v7782_v9  ;;  %v7790_v17 = vpack.c.bf16 %v5071_v25, %v5070_v2  ;;  %v5102_v25 = vld [vmem:[%s9993_s3 + $0xc20] sm:$0xff] }
 0x28f   : > { %6424 = vmatprep.mubr.f32.mxu1 %v9250_v41  ;;  %v5072_v41 = vld [vmem:[%s9993_s3 + $0xb30] sm:$0xff] }
 0x290   : > { %6903 = vmatmul.mubr.f32.vlgmr.msra.gmra.mrb[16].mxu0 %v9241_v3  ;;  %v8121_v3 = vld [vmem:[#allocation2 + $0x6c] sm:$0xff] }
 0x291   : > { %6905 = vmatprep.mubr.f32.mxu0 %v9366_v22  ;;  %7785 = vmatpush3.bf16.msra.mxu0 %v7782_v9  ;;  %v7794_v22 = vpack.c.bf16 %v5073_v50, %v5072_v41  ;;  %v5099_v9 = vld [vmem:[%s9993_s3 + $0xc08] sm:$0xff]  ;;  %v5104_v50 = vld [vmem:[%s9993_s3 + $0xc30] sm:$0xff] }
 0x292   : > { %6425 = vmatmul.mubr.f32.gmra.mrb[60].mxu1 %v9751_v37  ;;  %7787 = vmatprep.subr.bf16.mxu0 %v7786_v59  ;;  %v8122_v37 = vld [vmem:[#allocation2 + $0x6d] sm:$0xff]  ;;  %v7846_v43 = vpack.c.bf16 %v5099_v9, %v5098_v28 }
 0x293   : > { %6427 = vmatprep.mubr.f32.mxu1 %v9268_v56  ;;  %v5074_v56 = vld [vmem:[%s9993_s3 + $0xb40] sm:$0xff] }
 0x294   : > { %6906 = vmatmul.mubr.f32.gmra.mrb[18].mxu0 %v9369_v13  ;;  %v7798_v13 = vpack.c.bf16 %v5075_v7, %v5074_v56  ;;  %v8124_v56 = vld [vmem:[#allocation2 + $0x6f] sm:$0xff]  ;;  %v4284_v7 = vld [vmem:[#allocation2 + $0x87] sm:$0xff] }
 0x295   : > { %6908 = vmatprep.mubr.f32.mxu0 %v9386_v26  ;;  %7789 = vmatpush3.bf16.msra.mxu0 %v7786_v59  ;;  %v4022_v26 = vld [vmem:[#allocation2 + $0x85] sm:$0xff]  ;;  %v5101_v59 = vld [vmem:[%s9993_s3 + $0xc18] sm:$0xff] }
 0x296   : > { %6428 = vmatmul.mubr.f32.gmra.mrb[62].mxu1 %v8121_v3  ;;  %7791 = vmatprep.subr.bf16.mxu0 %v7790_v17  ;;  %v7850_v2 = vpack.c.bf16 %v5101_v59, %v5100_v4  ;;  %v5105_v3 = vld [vmem:[%s9993_s3 + $0xc38] sm:$0xff] }
 0x298   : > { %6909 = vmatmul.mubr.f32.gmra.mrb[20].mxu0 %v8122_v37  ;;  %v5109_v37 = vld [vmem:[%s9993_s3 + $0xc58] sm:$0xff] }
 0x299   : > { %6911 = vmatprep.mubr.f32.mxu0 %v9285_v24  ;;  %7793 = vmatpush3.bf16.msra.mxu0 %v7790_v17  ;;  %v5078_v24 = vld [vmem:[%s9993_s3 + $0xb60] sm:$0xff]  ;;  %v5103_v17 = vld [vmem:[%s9993_s3 + $0xc28] sm:$0xff] }
 0x29a   : > { %7795 = vmatprep.subr.bf16.mxu0 %v7794_v22  ;;  %v7806_v39 = vpack.c.bf16 %v5079_v27, %v5078_v24  ;;  %v7854_v41 = vpack.c.bf16 %v5103_v17, %v5102_v25  ;;  %v4415_v24 = vld [vmem:[#allocation2 + $0x88] sm:$0xff] }
 0x29c   : > { %6912 = vmatmul.mubr.f32.gmra.mrb[22].mxu0 %v4022_v26  ;;  %v5111_v26 = vld [vmem:[%s9993_s3 + $0xc68] sm:$0xff] }
 0x29d   : > { %7797 = vmatpush3.bf16.msra.mxu0 %v7794_v22  ;;  %6946 = vmatprep.mubr.f32.mxu0 %v9468_v62  ;;  %v5081_v62 = vld [vmem:[%s9993_s3 + $0xb78] sm:$0xff]  ;;  %v5107_v22 = vld [vmem:[%s9993_s3 + $0xc48] sm:$0xff] }
 0x29e   : > { %7799 = vmatprep.subr.bf16.mxu0 %v7798_v13  ;;  %v7810_v8 = vpack.c.bf16 %v5081_v62, %v5080_v23 }
 0x2a1   : > { %7801 = vmatpush3.bf16.msra.mxu0 %v7798_v13 }
 0x2a2   : > { %7803 = vmatprep.subr.bf16.mxu0 %v7802_v18 }
 0x2a5   : > { %7805 = vmatpush3.bf16.msra.mxu0 %v7802_v18 }
 0x2a6   : > { %7807 = vmatprep.subr.bf16.mxu0 %v7806_v39 }
 0x2a9   : > { %7809 = vmatpush3.bf16.msra.mxu0 %v7806_v39 }
 0x2aa   : > { %7811 = vmatprep.subr.bf16.mxu0 %v7810_v8 }
 0x2ad   : > { %7813 = vmatpush3.bf16.msra.mxu0 %v7810_v8 }
 0x2ae   : > { %7815 = vmatprep.subr.bf16.mxu0 %v7814_v12 }
 0x2b0   : > { %6947 = vmatmul.mubr.f32.vlgmr.msra.gmra.mrb[16].mxu0 %v9471_v52  ;;  %v7826_v52 = vpack.c.bf16 %v5089_v0, %v5088_v42 }
 0x2b1   : > { %6949 = vmatprep.mubr.f32.mxu0 %v9488_v20  ;;  %7817 = vmatpush3.bf16.msra.mxu0 %v7814_v12  ;;  %v5090_v20 = vld [vmem:[%s9993_s3 + $0xbc0] sm:$0xff] }
 0x2b2   : > { %7819 = vmatprep.subr.bf16.mxu0 %v7818_v30 }
 0x2b4   : > { %6950 = vmatmul.mubr.f32.gmra.mrb[18].mxu0 %v9491_v11  ;;  %v7830_v11 = vpack.c.bf16 %v5091_v33, %v5090_v20 }
 0x2b5   : > { %6952 = vmatprep.mubr.f32.mxu0 %v9508_v32  ;;  %7821 = vmatpush3.bf16.msra.mxu0 %v7818_v30  ;;  %v5092_v32 = vld [vmem:[%s9993_s3 + $0xbd0] sm:$0xff] }
 0x2b6   : > { %7823 = vmatprep.subr.bf16.mxu0 %v7822_v54  ;;  %v7834_v15 = vpack.c.bf16 %v5093_v57, %v5092_v32 }
 0x2b8   : > { %6953 = vmatmul.mubr.f32.gmra.mrb[20].mxu0 %v8123_v14 }
 0x2b9   : > { %6955 = vmatprep.mubr.f32.mxu0 %v9404_v31  ;;  %7825 = vmatpush3.bf16.msra.mxu0 %v7822_v54  ;;  %v5094_v31 = vld [vmem:[%s9993_s3 + $0xbe0] sm:$0xff] }
 0x2ba   : > { %7827 = vmatprep.subr.bf16.mxu0 %v7826_v52  ;;  %v7838_v53 = vpack.c.bf16 %v5095_v51, %v5094_v31 }
 0x2bc   : > { %6956 = vmatmul.mubr.f32.gmra.mrb[22].mxu0 %v4153_v61 }
 0x2bd   : > { %7829 = vmatpush3.bf16.msra.mxu0 %v7826_v52  ;;  %6990 = vmatprep.mubr.f32.mxu0 %v9592_v46  ;;  %v5097_v46 = vld [vmem:[%s9993_s3 + $0xbf8] sm:$0xff] }
 0x2be   : > { %7831 = vmatprep.subr.bf16.mxu0 %v7830_v11  ;;  %v7842_v6 = vpack.c.bf16 %v5097_v46, %v5096_v45 }
 0x2c1   : > { %7833 = vmatpush3.bf16.msra.mxu0 %v7830_v11 }
 0x2c2   : > { %7835 = vmatprep.subr.bf16.mxu0 %v7834_v15 }
 0x2c5   : > { %7837 = vmatpush3.bf16.msra.mxu0 %v7834_v15 }
 0x2c6   : > { %7839 = vmatprep.subr.bf16.mxu0 %v7838_v53 }
 0x2c9   : > { %7841 = vmatpush3.bf16.msra.mxu0 %v7838_v53 }
 0x2ca   : > { %7843 = vmatprep.subr.bf16.mxu0 %v7842_v6 }
 0x2cd   : > { %7845 = vmatpush3.bf16.msra.mxu0 %v7842_v6 }
 0x2ce   : > { %7847 = vmatprep.subr.bf16.mxu0 %v7846_v43 }
 0x2d0   : > { %6991 = vmatmul.mubr.f32.vlgmr.msra.gmra.mrb[16].mxu0 %v9595_v38  ;;  %v7858_v38 = vpack.c.bf16 %v5105_v3, %v5104_v50 }
 0x2d1   : > { %6993 = vmatprep.mubr.f32.mxu0 %v9614_v10  ;;  %7849 = vmatpush3.bf16.msra.mxu0 %v7846_v43  ;;  %v5106_v10 = vld [vmem:[%s9993_s3 + $0xc40] sm:$0xff] }
 0x2d2   : > { %7851 = vmatprep.subr.bf16.mxu0 %v7850_v2 }
 0x2d4   : > { %6994 = vmatmul.mubr.f32.gmra.mrb[18].mxu0 %v9617_v47  ;;  %v7862_v47 = vpack.c.bf16 %v5107_v22, %v5106_v10 }
 0x2d5   : > { %6996 = vmatprep.mubr.f32.mxu0 %v9636_v49  ;;  %7853 = vmatpush3.bf16.msra.mxu0 %v7850_v2  ;;  %v5108_v49 = vld [vmem:[%s9993_s3 + $0xc50] sm:$0xff] }
 0x2d6   : > { %7855 = vmatprep.subr.bf16.mxu0 %v7854_v41  ;;  %v7866_v13 = vpack.c.bf16 %v5109_v37, %v5108_v49 }
 0x2d8   : > { %6997 = vmatmul.mubr.f32.gmra.mrb[20].mxu0 %v8124_v56 }
 0x2d9   : > { %6999 = vmatprep.mubr.f32.mxu0 %v9526_v44  ;;  %7857 = vmatpush3.bf16.msra.mxu0 %v7854_v41  ;;  %v5110_v44 = vld [vmem:[%s9993_s3 + $0xc60] sm:$0xff] }
 0x2da   : > { %7859 = vmatprep.subr.bf16.mxu0 %v7858_v38  ;;  %v7870_v21 = vpack.c.bf16 %v5111_v26, %v5110_v44 }
 0x2dc   : > { %7000 = vmatmul.mubr.f32.gmra.mrb[22].mxu0 %v4284_v7 }
 0x2dd   : > { %7861 = vmatpush3.bf16.msra.mxu0 %v7858_v38  ;;  %7034 = vmatprep.mubr.f32.mxu0 %v9721_v40  ;;  %v5113_v40 = vld [vmem:[%s9993_s3 + $0xc78] sm:$0xff] }
 0x2de   : > { %7863 = vmatprep.subr.bf16.mxu0 %v7862_v47  ;;  %v7874_v18 = vpack.c.bf16 %v5113_v40, %v5112_v36 }
 0x2e1   : > { %7865 = vmatpush3.bf16.msra.mxu0 %v7862_v47 }
 0x2e2   : > { %7867 = vmatprep.subr.bf16.mxu0 %v7866_v13 }
 0x2e5   : > { %7869 = vmatpush3.bf16.msra.mxu0 %v7866_v13 }
 0x2e6   : > { %7871 = vmatprep.subr.bf16.mxu0 %v7870_v21 }
 0x2e9   : > { %7873 = vmatpush3.bf16.msra.mxu0 %v7870_v21 }
 0x2ea   : > { %7875 = vmatprep.subr.bf16.mxu0 %v7874_v18 }
 0x2ed   : > { %7877 = vmatpush3.bf16.msra.mxu0 %v7874_v18 }
 0x2f0   : > { %7035 = vmatmul.mubr.f32.vlgmr.msra.gmra.mrb[16].mxu0 %v9605_v60 }
 0x2f1   : > { %7037 = vmatprep.mubr.f32.mxu0 %v9741_v1 }
 0x2f4   : > { %7038 = vmatmul.mubr.f32.gmra.mrb[18].mxu0 %v9627_v55  ;;  %v5114_v55 = vld [vmem:[%s9994_s4] ss:$0 sm:$0xff] }
 0x2f5   : > { %7040 = vmatprep.mubr.f32.mxu0 %v9761_v58 }
 0x2f8   : > { %7041 = vmatmul.mubr.f32.gmra.mrb[20].mxu0 %v9647_v63 }
 0x2f9   : > { %7043 = vmatprep.mubr.f32.mxu0 %v9656_v5 }
 0x2fc   : > { %7044 = vmatmul.mubr.f32.gmra.mrb[22].mxu0 %v4415_v24 }
 0x35d   : > { %v6420_v27 = vpop.f32.mrb[56].mxu1 }
 0x35e   : > { %v2665_v39 = vpop.f32.mrb[57].mxu1 }
 0x361   : > { %v6423_v23 = vpop.f32.mrb[58].mxu1 }
 0x362   : > { %v2675_v62 = vpop.f32.mrb[59].mxu1 }
 0x365   : > { %v6426_v8 = vpop.f32.mrb[60].mxu1 }
 0x366   : > { %v2685_v19 = vpop.f32.mrb[61].mxu1 }
 0x369   : > { %v6429_v48 = vpop.f32.mrb[62].mxu1 }
 0x36a   : > { %v2695_v60 = vpop.f32.mrb[63].mxu1 }
 0x3c3   : > { %v7036_v12 = vpop.f32.mrb[16].mxu0 }
 0x3c4   : > { %v7882_v1 = vadd.f32 %v7036_v12, %v6420_v27  ;;  %v4499_v63 = vpop.f32.mrb[17].mxu0 }
 0x3c5   : > { %v7883_v58 = vadd.f32 %v4499_v63, %v2665_v39 }
 0x3c6   : > { %v4554_v5 = vadd.f32 %v7882_v1, %v5114_v55 }
 0x3c7   : > { %v4553_v34 = vadd.f32 %v7883_v58, %v5114_v55  ;;  %v7039_v29 = vpop.f32.mrb[18].mxu0 }
 0x3c8   : > { %v7884_v30 = vadd.f32 %v7039_v29, %v6423_v23  ;;  %v4509_v35 = vpop.f32.mrb[19].mxu0 }
 0x3c9   : > { %v4561_v16 = vmax.f32 %v4553_v34, %v4554_v5  ;;  %v7885_v54 = vadd.f32 %v4509_v35, %v2675_v62 }
 0x3ca   : > { %v4556_v42 = vadd.f32 %v7884_v30, %v5114_v55 }
 0x3cb   : > { %v4569_v0 = vrot.slane %v4561_v16, 1  ;;  %v4555_v52 = vadd.f32 %v7885_v54, %v5114_v55  ;;  %v7042_v20 = vpop.f32.mrb[20].mxu0 }
 0x3cc   : > { %v7886_v33 = vadd.f32 %v7042_v20, %v6426_v8  ;;  %v4519_v14 = vpop.f32.mrb[21].mxu0 }
 0x3cd   : > { %v4578_v11 = vsel %vm4577_vm1, %v4569_v0, %v4561_v16  ;;  %v4562_v61 = vmax.f32 %v4555_v52, %v4556_v42  ;;  %v7887_v32 = vadd.f32 %v4519_v14, %v2685_v19 }
 0x3ce   : > { %v4582_v57 = vmax.f32 %v4561_v16, %v4578_v11  ;;  %v4558_v15 = vadd.f32 %v7886_v33, %v5114_v55 }
 0x3cf   : > { %v4570_v31 = vrot.slane %v4562_v61, 1  ;;  %v4557_v51 = vadd.f32 %v7887_v32, %v5114_v55  ;;  %v7045_v53 = vpop.f32.mrb[22].mxu0 }
 0x3d0   : > { %v4586_v45 = vmax.f32 %v4582_v57, 0.0  ;;  %v7888_v46 = vadd.f32 %v7045_v53, %v6429_v48  ;;  %v4529_v6 = vpop.f32.mrb[23].mxu0 }
 0x3d1   : > { %v4579_v28 = vsel %vm4577_vm1, %v4570_v31, %v4562_v61  ;;  %v4563_v9 = vmax.f32 %v4557_v51, %v4558_v15  ;;  %v7889_v43 = vadd.f32 %v4529_v6, %v2695_v60 }
 0x3d2   : > { %4590 = vst [vmem:[%s224_s9] sm:$0xff] %v4586_v45  ;;  %v4583_v4 = vmax.f32 %v4562_v61, %v4579_v28  ;;  %v4560_v59 = vadd.f32 %v7888_v46, %v5114_v55 }
 0x3d3   : > { %v4571_v2 = vrot.slane %v4563_v9, 1  ;;  %v4559_v25 = vadd.f32 %v7889_v43, %v5114_v55 }
 0x3d4   : > { %v4587_v17 = vmax.f32 %v4583_v4, 0.0 }
 0x3d5   : > { %v4580_v41 = vsel %vm4577_vm1, %v4571_v2, %v4563_v9  ;;  %v4564_v50 = vmax.f32 %v4559_v25, %v4560_v59 }
 0x3d6   : > { %4591 = vst [vmem:[%s224_s9 + $0x8] sm:$0xff] %v4587_v17  ;;  %v4584_v3 = vmax.f32 %v4563_v9, %v4580_v41 }
 0x3d7   : > { %v4572_v38 = vrot.slane %v4564_v50, 1 }
 0x3d8   : > { %v4588_v10 = vmax.f32 %v4584_v3, 0.0 }
 0x3d9   : > { %v4581_v22 = vsel %vm4577_vm1, %v4572_v38, %v4564_v50 }
 0x3da   : > { %4592 = vst [vmem:[%s224_s9 + $0x10] sm:$0xff] %v4588_v10  ;;  %v4585_v56 = vmax.f32 %v4564_v50, %v4581_v22 }
 0x3dc   : > { %v4589_v47 = vmax.f32 %v4585_v56, 0.0 }
 0x3de   : > { %4593 = vst [vmem:[%s224_s9 + $0x18] sm:$0xff] %v4589_v47 }
 0x3df PF: > { %s15_s18 = sadd.s32 1, %s8131_s18  }
 0x3e0   : > { %p12_p4 = scmp.ge.s32.totalorder %s15_s18, 4  }
 0x3e2   :  { %14 = sbr.rel (!%p12_p4) target bundleno = 1 (0x1), region = 94 }

</bundles_post_ra>
